<compile_context>
chip_gen: v5e
topology: v5e:2x2
jax: 0.10.0
libtpu: 0.0.40
codegen_flags: <defaults>
</compile_context>

<pallas_src>
import functools

import jax
import jax.numpy as jnp
from jax.experimental import pallas as pl
from jax.experimental.pallas import tpu as pltpu

_SUBLANES = 8
_LANES = 128
_TILE = _SUBLANES * _LANES  # batch rows handled per grid step


def _mlp_kernel(*refs, use_dropout):
    if use_dropout:
        (w1_ref, b1_ref, w2_ref, b2_ref, w3_ref, b3_ref,
         x_ref, m1_ref, m2_ref, o_ref) = refs
    else:
        (w1_ref, b1_ref, w2_ref, b2_ref, w3_ref, b3_ref, x_ref, o_ref) = refs
        m1_ref = m2_ref = None

    x = x_ref[...]                        # (4, 8, 128) f32, lane-dense
    rows = [x[k] for k in range(4)]       # each (8, 128): one dense vreg

    def dense(in_rows, w_ref, b_ref, n_in, n_out):
        # out[j] = sum_k in_rows[k] * W[k, j] + b[j]; W stored flat row-major
        # [in, out] in SMEM, read as scalars (scalar slot, VPU broadcast-FMA).
        outs = []
        for j in range(n_out):
            acc = in_rows[0] * w_ref[j]
            for k in range(1, n_in):
                acc = acc + in_rows[k] * w_ref[k * n_out + j]
            outs.append(acc + b_ref[j])
        return outs

    def relu_dropout(pre_rows, m_ref):
        if m_ref is None:                 # eval mode: plain ReLU
            return [jnp.maximum(r, 0.0) for r in pre_rows]
        m = m_ref[...]                    # (n_out, 8, 128) f32 keep mask (0/1)
        # ReLU fused with the keep-mask select; 1/(1-p) is folded into the
        # next layer's weights in the wrapper.
        return [jnp.where((m[j] > 0.5) & (pre_rows[j] > 0.0), pre_rows[j], 0.0)
                for j in range(len(pre_rows))]

    h1 = relu_dropout(dense(rows, w1_ref, b1_ref, 4, 12), m1_ref)
    h2 = relu_dropout(dense(h1, w2_ref, b2_ref, 12, 12), m2_ref)
    out = dense(h2, w3_ref, b3_ref, 12, 3)
    o_ref[...] = jnp.stack(out, axis=0)   # (3, 8, 128): lane-dense store


def _dropout_masks(seed, dropout_rate, b_pad):
    """Deterministic per-seed Bernoulli keep masks, shape (12, b_pad) f32."""
    keep_p = max(0.0, 1.0 - float(dropout_rate))
    k1, k2 = jax.random.split(jax.random.PRNGKey(seed))
    m1 = jax.random.bernoulli(k1, keep_p, (12, b_pad)).astype(jnp.float32)
    m2 = jax.random.bernoulli(k2, keep_p, (12, b_pad)).astype(jnp.float32)
    return m1, m2


def mlp_forward(x, params, *, dropout_rate, training, seed=0):
    """x: [B, 4] float32 -> [B, 3] float32, matching theModelClass.forward."""
    w1, b1, w2, b2, w3, b3 = params
    B = x.shape[0]
    nb = max(1, pl.cdiv(B, _TILE))
    b_pad = nb * _TILE

    p = float(dropout_rate)
    use_dropout = bool(training) and p > 0.0
    if use_dropout:
        # Fold the inverted-dropout scale into the *next* layer's weights:
        # (h * mask * s) @ W == (h * mask) @ (s * W).  p >= 1 -> zeros (torch).
        scale = 0.0 if p >= 1.0 else 1.0 / (1.0 - p)
        w2 = w2 * scale
        w3 = w3 * scale

    # Feature-major, (sublane, lane)-dense batch layout.
    xt = jnp.zeros((4, b_pad), jnp.float32).at[:, :B].set(
        jnp.asarray(x, jnp.float32).T)
    xt = xt.reshape(4, nb * _SUBLANES, _LANES)

    flat = lambda a: jnp.asarray(a, jnp.float32).reshape(-1)
    smem = pl.BlockSpec(memory_space=pltpu.MemorySpace.SMEM)

    args = [flat(w1), flat(b1), flat(w2), flat(b2), flat(w3), flat(b3), xt]
    in_specs = [smem] * 6 + [
        pl.BlockSpec((4, _SUBLANES, _LANES), lambda i: (0, i, 0))]

    if use_dropout:
        # TODO(synk): when targeting real TPUs only, generate the keep masks
        # in-kernel via pltpu.prng_seed(seed + pl.program_id(0)) /
        # prng_random_bits to remove this mask HBM traffic; the wrapper-side
        # jax.random path is used because those primitives have no
        # CPU/interpreter lowering.
        m1, m2 = _dropout_masks(seed, p, b_pad)
        args += [m1.reshape(12, nb * _SUBLANES, _LANES),
                 m2.reshape(12, nb * _SUBLANES, _LANES)]
        in_specs += [pl.BlockSpec((12, _SUBLANES, _LANES),
                                  lambda i: (0, i, 0))] * 2

    kernel = functools.partial(_mlp_kernel, use_dropout=use_dropout)
    y = pl.pallas_call(
        kernel,
        out_shape=jax.ShapeDtypeStruct((3, nb * _SUBLANES, _LANES), jnp.float32),
        grid=(nb,),
        in_specs=in_specs,
        out_specs=pl.BlockSpec((3, _SUBLANES, _LANES), lambda i: (0, i, 0)),
        compiler_params=pltpu.CompilerParams(
            dimension_semantics=("parallel",)),
    )(*args)
    return y.reshape(3, b_pad)[:, :B].T


def init_params(key):
    """Mimics nn.Linear's U(-1/sqrt(fan_in), +1/sqrt(fan_in)) init.

    Weights are stored [in_features, out_features] (transposed vs. PyTorch)
    so the forward computes y = x @ W + b; biases are [out_features]."""
    def linear(key, fan_in, fan_out):
        kw, kb = jax.random.split(key)
        bound = 1.0 / (fan_in ** 0.5)
        w = jax.random.uniform(kw, (fan_in, fan_out), jnp.float32, -bound, bound)
        b = jax.random.uniform(kb, (fan_out,), jnp.float32, -bound, bound)
        return w, b

    k1, k2, k3 = jax.random.split(key, 3)
    w1, b1 = linear(k1, 4, 12)
    w2, b2 = linear(k2, 12, 12)
    w3, b3 = linear(k3, 12, 3)
    return (w1, b1, w2, b2, w3, b3)


if __name__ == "__main__":
    key = jax.random.PRNGKey(0)
    k_params, k_x = jax.random.split(key)
    params = init_params(k_params)

    B = 8
    x = jax.random.normal(k_x, (B, 4), dtype=jnp.float32)
    p = 0.5
    seed = 123

    w1, b1, w2, b2, w3, b3 = params
    hi = jax.lax.Precision.HIGHEST

    # --- eval mode (model.eval(): dropout is identity) ---
    y_eval = jax.block_until_ready(
        mlp_forward(x, params, dropout_rate=p, training=False))
    h = jnp.maximum(jnp.dot(x, w1, precision=hi) + b1, 0.0)
    h = jnp.maximum(jnp.dot(h, w2, precision=hi) + b2, 0.0)
    ref_eval = jnp.dot(h, w3, precision=hi) + b3
    assert y_eval.shape == (B, 3)
    assert jnp.allclose(y_eval, ref_eval, atol=1e-4, rtol=1e-4), "eval mismatch"

    # --- training mode (inverted dropout, deterministic per seed) ---
    y_train = jax.block_until_ready(
        mlp_forward(x, params, dropout_rate=p, training=True, seed=seed))
    b_pad = max(1, pl.cdiv(B, _TILE)) * _TILE
    m1, m2 = _dropout_masks(seed, p, b_pad)
    s = 1.0 / (1.0 - p)
    h = jnp.maximum(jnp.dot(x, w1, precision=hi) + b1, 0.0) * m1[:, :B].T * s
    h = jnp.maximum(jnp.dot(h, w2, precision=hi) + b2, 0.0) * m2[:, :B].T * s
    ref_train = jnp.dot(h, w3, precision=hi) + b3
    assert y_train.shape == (B, 3)
    assert jnp.allclose(y_train, ref_train, atol=1e-4, rtol=1e-4), "train mismatch"

    print("KERNEL_OK")
</pallas_src>

<mosaic_0001>
module attributes {stable_mosaic.version = 11 : i64} {
  func.func @_mlp_kernel(%arg0: i32, %arg1: memref<48xf32, #tpu.memory_space<smem>>, %arg2: memref<12xf32, #tpu.memory_space<smem>>, %arg3: memref<144xf32, #tpu.memory_space<smem>>, %arg4: memref<12xf32, #tpu.memory_space<smem>>, %arg5: memref<36xf32, #tpu.memory_space<smem>>, %arg6: memref<3xf32, #tpu.memory_space<smem>>, %arg7: memref<4x8x128xf32, #tpu.memory_space<vmem>>, %arg8: memref<3x8x128xf32, #tpu.memory_space<vmem>>) attributes {dimension_semantics = [#tpu.dimension_semantics<parallel>], iteration_bounds = array<i64: 1>, scalar_prefetch = 0 : i64, scratch_operands = 0 : i64, tpu.core_type = #tpu.core_type<tc>, window_params = [{transform_indices = @transform_0, window_bounds = array<i64: 48>}, {transform_indices = @transform_1, window_bounds = array<i64: 12>}, {transform_indices = @transform_2, window_bounds = array<i64: 144>}, {transform_indices = @transform_3, window_bounds = array<i64: 12>}, {transform_indices = @transform_4, window_bounds = array<i64: 36>}, {transform_indices = @transform_5, window_bounds = array<i64: 3>}, {transform_indices = @transform_6, window_bounds = array<i64: 4, 8, 128>}, {transform_indices = @transform_7, window_bounds = array<i64: 3, 8, 128>}]} {
    %c0 = arith.constant 0 : index
    %c0_0 = arith.constant 0 : index
    %c0_1 = arith.constant 0 : index
    %0 = vector.load %arg7[%c0, %c0_0, %c0_1] : memref<4x8x128xf32, #tpu.memory_space<vmem>>, vector<4x8x128xf32>
    %1 = vector.extract_strided_slice %0 {offsets = [0, 0, 0], sizes = [1, 8, 128], strides = [1, 1, 1]} : vector<4x8x128xf32> to vector<1x8x128xf32>
    %2 = vector.shape_cast %1 : vector<1x8x128xf32> to vector<8x128xf32>
    %3 = vector.extract_strided_slice %0 {offsets = [1, 0, 0], sizes = [1, 8, 128], strides = [1, 1, 1]} : vector<4x8x128xf32> to vector<1x8x128xf32>
    %4 = vector.shape_cast %3 : vector<1x8x128xf32> to vector<8x128xf32>
    %5 = vector.extract_strided_slice %0 {offsets = [2, 0, 0], sizes = [1, 8, 128], strides = [1, 1, 1]} : vector<4x8x128xf32> to vector<1x8x128xf32>
    %6 = vector.shape_cast %5 : vector<1x8x128xf32> to vector<8x128xf32>
    %7 = vector.extract_strided_slice %0 {offsets = [3, 0, 0], sizes = [1, 8, 128], strides = [1, 1, 1]} : vector<4x8x128xf32> to vector<1x8x128xf32>
    %8 = vector.shape_cast %7 : vector<1x8x128xf32> to vector<8x128xf32>
    %c0_2 = arith.constant 0 : index
    %9 = memref.load %arg1[%c0_2] : memref<48xf32, #tpu.memory_space<smem>>
    %10 = vector.broadcast %9 : f32 to vector<8x128xf32>
    %11 = arith.mulf %2, %10 : vector<8x128xf32>
    %c12 = arith.constant 12 : index
    %12 = memref.load %arg1[%c12] : memref<48xf32, #tpu.memory_space<smem>>
    %13 = vector.broadcast %12 : f32 to vector<8x128xf32>
    %14 = arith.mulf %4, %13 : vector<8x128xf32>
    %15 = arith.addf %11, %14 : vector<8x128xf32>
    %c24 = arith.constant 24 : index
    %16 = memref.load %arg1[%c24] : memref<48xf32, #tpu.memory_space<smem>>
    %17 = vector.broadcast %16 : f32 to vector<8x128xf32>
    %18 = arith.mulf %6, %17 : vector<8x128xf32>
    %19 = arith.addf %15, %18 : vector<8x128xf32>
    %c36 = arith.constant 36 : index
    %20 = memref.load %arg1[%c36] : memref<48xf32, #tpu.memory_space<smem>>
    %21 = vector.broadcast %20 : f32 to vector<8x128xf32>
    %22 = arith.mulf %8, %21 : vector<8x128xf32>
    %23 = arith.addf %19, %22 : vector<8x128xf32>
    %c0_3 = arith.constant 0 : index
    %24 = memref.load %arg2[%c0_3] : memref<12xf32, #tpu.memory_space<smem>>
    %25 = vector.broadcast %24 : f32 to vector<8x128xf32>
    %26 = arith.addf %23, %25 : vector<8x128xf32>
    %c1 = arith.constant 1 : index
    %27 = memref.load %arg1[%c1] : memref<48xf32, #tpu.memory_space<smem>>
    %28 = vector.broadcast %27 : f32 to vector<8x128xf32>
    %29 = arith.mulf %2, %28 : vector<8x128xf32>
    %c13 = arith.constant 13 : index
    %30 = memref.load %arg1[%c13] : memref<48xf32, #tpu.memory_space<smem>>
    %31 = vector.broadcast %30 : f32 to vector<8x128xf32>
    %32 = arith.mulf %4, %31 : vector<8x128xf32>
    %33 = arith.addf %29, %32 : vector<8x128xf32>
    %c25 = arith.constant 25 : index
    %34 = memref.load %arg1[%c25] : memref<48xf32, #tpu.memory_space<smem>>
    %35 = vector.broadcast %34 : f32 to vector<8x128xf32>
    %36 = arith.mulf %6, %35 : vector<8x128xf32>
    %37 = arith.addf %33, %36 : vector<8x128xf32>
    %c37 = arith.constant 37 : index
    %38 = memref.load %arg1[%c37] : memref<48xf32, #tpu.memory_space<smem>>
    %39 = vector.broadcast %38 : f32 to vector<8x128xf32>
    %40 = arith.mulf %8, %39 : vector<8x128xf32>
    %41 = arith.addf %37, %40 : vector<8x128xf32>
    %c1_4 = arith.constant 1 : index
    %42 = memref.load %arg2[%c1_4] : memref<12xf32, #tpu.memory_space<smem>>
    %43 = vector.broadcast %42 : f32 to vector<8x128xf32>
    %44 = arith.addf %41, %43 : vector<8x128xf32>
    %c2 = arith.constant 2 : index
    %45 = memref.load %arg1[%c2] : memref<48xf32, #tpu.memory_space<smem>>
    %46 = vector.broadcast %45 : f32 to vector<8x128xf32>
    %47 = arith.mulf %2, %46 : vector<8x128xf32>
    %c14 = arith.constant 14 : index
    %48 = memref.load %arg1[%c14] : memref<48xf32, #tpu.memory_space<smem>>
    %49 = vector.broadcast %48 : f32 to vector<8x128xf32>
    %50 = arith.mulf %4, %49 : vector<8x128xf32>
    %51 = arith.addf %47, %50 : vector<8x128xf32>
    %c26 = arith.constant 26 : index
    %52 = memref.load %arg1[%c26] : memref<48xf32, #tpu.memory_space<smem>>
    %53 = vector.broadcast %52 : f32 to vector<8x128xf32>
    %54 = arith.mulf %6, %53 : vector<8x128xf32>
    %55 = arith.addf %51, %54 : vector<8x128xf32>
    %c38 = arith.constant 38 : index
    %56 = memref.load %arg1[%c38] : memref<48xf32, #tpu.memory_space<smem>>
    %57 = vector.broadcast %56 : f32 to vector<8x128xf32>
    %58 = arith.mulf %8, %57 : vector<8x128xf32>
    %59 = arith.addf %55, %58 : vector<8x128xf32>
    %c2_5 = arith.constant 2 : index
    %60 = memref.load %arg2[%c2_5] : memref<12xf32, #tpu.memory_space<smem>>
    %61 = vector.broadcast %60 : f32 to vector<8x128xf32>
    %62 = arith.addf %59, %61 : vector<8x128xf32>
    %c3 = arith.constant 3 : index
    %63 = memref.load %arg1[%c3] : memref<48xf32, #tpu.memory_space<smem>>
    %64 = vector.broadcast %63 : f32 to vector<8x128xf32>
    %65 = arith.mulf %2, %64 : vector<8x128xf32>
    %c15 = arith.constant 15 : index
    %66 = memref.load %arg1[%c15] : memref<48xf32, #tpu.memory_space<smem>>
    %67 = vector.broadcast %66 : f32 to vector<8x128xf32>
    %68 = arith.mulf %4, %67 : vector<8x128xf32>
    %69 = arith.addf %65, %68 : vector<8x128xf32>
    %c27 = arith.constant 27 : index
    %70 = memref.load %arg1[%c27] : memref<48xf32, #tpu.memory_space<smem>>
    %71 = vector.broadcast %70 : f32 to vector<8x128xf32>
    %72 = arith.mulf %6, %71 : vector<8x128xf32>
    %73 = arith.addf %69, %72 : vector<8x128xf32>
    %c39 = arith.constant 39 : index
    %74 = memref.load %arg1[%c39] : memref<48xf32, #tpu.memory_space<smem>>
    %75 = vector.broadcast %74 : f32 to vector<8x128xf32>
    %76 = arith.mulf %8, %75 : vector<8x128xf32>
    %77 = arith.addf %73, %76 : vector<8x128xf32>
    %c3_6 = arith.constant 3 : index
    %78 = memref.load %arg2[%c3_6] : memref<12xf32, #tpu.memory_space<smem>>
    %79 = vector.broadcast %78 : f32 to vector<8x128xf32>
    %80 = arith.addf %77, %79 : vector<8x128xf32>
    %c4 = arith.constant 4 : index
    %81 = memref.load %arg1[%c4] : memref<48xf32, #tpu.memory_space<smem>>
    %82 = vector.broadcast %81 : f32 to vector<8x128xf32>
    %83 = arith.mulf %2, %82 : vector<8x128xf32>
    %c16 = arith.constant 16 : index
    %84 = memref.load %arg1[%c16] : memref<48xf32, #tpu.memory_space<smem>>
    %85 = vector.broadcast %84 : f32 to vector<8x128xf32>
    %86 = arith.mulf %4, %85 : vector<8x128xf32>
    %87 = arith.addf %83, %86 : vector<8x128xf32>
    %c28 = arith.constant 28 : index
    %88 = memref.load %arg1[%c28] : memref<48xf32, #tpu.memory_space<smem>>
    %89 = vector.broadcast %88 : f32 to vector<8x128xf32>
    %90 = arith.mulf %6, %89 : vector<8x128xf32>
    %91 = arith.addf %87, %90 : vector<8x128xf32>
    %c40 = arith.constant 40 : index
    %92 = memref.load %arg1[%c40] : memref<48xf32, #tpu.memory_space<smem>>
    %93 = vector.broadcast %92 : f32 to vector<8x128xf32>
    %94 = arith.mulf %8, %93 : vector<8x128xf32>
    %95 = arith.addf %91, %94 : vector<8x128xf32>
    %c4_7 = arith.constant 4 : index
    %96 = memref.load %arg2[%c4_7] : memref<12xf32, #tpu.memory_space<smem>>
    %97 = vector.broadcast %96 : f32 to vector<8x128xf32>
    %98 = arith.addf %95, %97 : vector<8x128xf32>
    %c5 = arith.constant 5 : index
    %99 = memref.load %arg1[%c5] : memref<48xf32, #tpu.memory_space<smem>>
    %100 = vector.broadcast %99 : f32 to vector<8x128xf32>
    %101 = arith.mulf %2, %100 : vector<8x128xf32>
    %c17 = arith.constant 17 : index
    %102 = memref.load %arg1[%c17] : memref<48xf32, #tpu.memory_space<smem>>
    %103 = vector.broadcast %102 : f32 to vector<8x128xf32>
    %104 = arith.mulf %4, %103 : vector<8x128xf32>
    %105 = arith.addf %101, %104 : vector<8x128xf32>
    %c29 = arith.constant 29 : index
    %106 = memref.load %arg1[%c29] : memref<48xf32, #tpu.memory_space<smem>>
    %107 = vector.broadcast %106 : f32 to vector<8x128xf32>
    %108 = arith.mulf %6, %107 : vector<8x128xf32>
    %109 = arith.addf %105, %108 : vector<8x128xf32>
    %c41 = arith.constant 41 : index
    %110 = memref.load %arg1[%c41] : memref<48xf32, #tpu.memory_space<smem>>
    %111 = vector.broadcast %110 : f32 to vector<8x128xf32>
    %112 = arith.mulf %8, %111 : vector<8x128xf32>
    %113 = arith.addf %109, %112 : vector<8x128xf32>
    %c5_8 = arith.constant 5 : index
    %114 = memref.load %arg2[%c5_8] : memref<12xf32, #tpu.memory_space<smem>>
    %115 = vector.broadcast %114 : f32 to vector<8x128xf32>
    %116 = arith.addf %113, %115 : vector<8x128xf32>
    %c6 = arith.constant 6 : index
    %117 = memref.load %arg1[%c6] : memref<48xf32, #tpu.memory_space<smem>>
    %118 = vector.broadcast %117 : f32 to vector<8x128xf32>
    %119 = arith.mulf %2, %118 : vector<8x128xf32>
    %c18 = arith.constant 18 : index
    %120 = memref.load %arg1[%c18] : memref<48xf32, #tpu.memory_space<smem>>
    %121 = vector.broadcast %120 : f32 to vector<8x128xf32>
    %122 = arith.mulf %4, %121 : vector<8x128xf32>
    %123 = arith.addf %119, %122 : vector<8x128xf32>
    %c30 = arith.constant 30 : index
    %124 = memref.load %arg1[%c30] : memref<48xf32, #tpu.memory_space<smem>>
    %125 = vector.broadcast %124 : f32 to vector<8x128xf32>
    %126 = arith.mulf %6, %125 : vector<8x128xf32>
    %127 = arith.addf %123, %126 : vector<8x128xf32>
    %c42 = arith.constant 42 : index
    %128 = memref.load %arg1[%c42] : memref<48xf32, #tpu.memory_space<smem>>
    %129 = vector.broadcast %128 : f32 to vector<8x128xf32>
    %130 = arith.mulf %8, %129 : vector<8x128xf32>
    %131 = arith.addf %127, %130 : vector<8x128xf32>
    %c6_9 = arith.constant 6 : index
    %132 = memref.load %arg2[%c6_9] : memref<12xf32, #tpu.memory_space<smem>>
    %133 = vector.broadcast %132 : f32 to vector<8x128xf32>
    %134 = arith.addf %131, %133 : vector<8x128xf32>
    %c7 = arith.constant 7 : index
    %135 = memref.load %arg1[%c7] : memref<48xf32, #tpu.memory_space<smem>>
    %136 = vector.broadcast %135 : f32 to vector<8x128xf32>
    %137 = arith.mulf %2, %136 : vector<8x128xf32>
    %c19 = arith.constant 19 : index
    %138 = memref.load %arg1[%c19] : memref<48xf32, #tpu.memory_space<smem>>
    %139 = vector.broadcast %138 : f32 to vector<8x128xf32>
    %140 = arith.mulf %4, %139 : vector<8x128xf32>
    %141 = arith.addf %137, %140 : vector<8x128xf32>
    %c31 = arith.constant 31 : index
    %142 = memref.load %arg1[%c31] : memref<48xf32, #tpu.memory_space<smem>>
    %143 = vector.broadcast %142 : f32 to vector<8x128xf32>
    %144 = arith.mulf %6, %143 : vector<8x128xf32>
    %145 = arith.addf %141, %144 : vector<8x128xf32>
    %c43 = arith.constant 43 : index
    %146 = memref.load %arg1[%c43] : memref<48xf32, #tpu.memory_space<smem>>
    %147 = vector.broadcast %146 : f32 to vector<8x128xf32>
    %148 = arith.mulf %8, %147 : vector<8x128xf32>
    %149 = arith.addf %145, %148 : vector<8x128xf32>
    %c7_10 = arith.constant 7 : index
    %150 = memref.load %arg2[%c7_10] : memref<12xf32, #tpu.memory_space<smem>>
    %151 = vector.broadcast %150 : f32 to vector<8x128xf32>
    %152 = arith.addf %149, %151 : vector<8x128xf32>
    %c8 = arith.constant 8 : index
    %153 = memref.load %arg1[%c8] : memref<48xf32, #tpu.memory_space<smem>>
    %154 = vector.broadcast %153 : f32 to vector<8x128xf32>
    %155 = arith.mulf %2, %154 : vector<8x128xf32>
    %c20 = arith.constant 20 : index
    %156 = memref.load %arg1[%c20] : memref<48xf32, #tpu.memory_space<smem>>
    %157 = vector.broadcast %156 : f32 to vector<8x128xf32>
    %158 = arith.mulf %4, %157 : vector<8x128xf32>
    %159 = arith.addf %155, %158 : vector<8x128xf32>
    %c32 = arith.constant 32 : index
    %160 = memref.load %arg1[%c32] : memref<48xf32, #tpu.memory_space<smem>>
    %161 = vector.broadcast %160 : f32 to vector<8x128xf32>
    %162 = arith.mulf %6, %161 : vector<8x128xf32>
    %163 = arith.addf %159, %162 : vector<8x128xf32>
    %c44 = arith.constant 44 : index
    %164 = memref.load %arg1[%c44] : memref<48xf32, #tpu.memory_space<smem>>
    %165 = vector.broadcast %164 : f32 to vector<8x128xf32>
    %166 = arith.mulf %8, %165 : vector<8x128xf32>
    %167 = arith.addf %163, %166 : vector<8x128xf32>
    %c8_11 = arith.constant 8 : index
    %168 = memref.load %arg2[%c8_11] : memref<12xf32, #tpu.memory_space<smem>>
    %169 = vector.broadcast %168 : f32 to vector<8x128xf32>
    %170 = arith.addf %167, %169 : vector<8x128xf32>
    %c9 = arith.constant 9 : index
    %171 = memref.load %arg1[%c9] : memref<48xf32, #tpu.memory_space<smem>>
    %172 = vector.broadcast %171 : f32 to vector<8x128xf32>
    %173 = arith.mulf %2, %172 : vector<8x128xf32>
    %c21 = arith.constant 21 : index
    %174 = memref.load %arg1[%c21] : memref<48xf32, #tpu.memory_space<smem>>
    %175 = vector.broadcast %174 : f32 to vector<8x128xf32>
    %176 = arith.mulf %4, %175 : vector<8x128xf32>
    %177 = arith.addf %173, %176 : vector<8x128xf32>
    %c33 = arith.constant 33 : index
    %178 = memref.load %arg1[%c33] : memref<48xf32, #tpu.memory_space<smem>>
    %179 = vector.broadcast %178 : f32 to vector<8x128xf32>
    %180 = arith.mulf %6, %179 : vector<8x128xf32>
    %181 = arith.addf %177, %180 : vector<8x128xf32>
    %c45 = arith.constant 45 : index
    %182 = memref.load %arg1[%c45] : memref<48xf32, #tpu.memory_space<smem>>
    %183 = vector.broadcast %182 : f32 to vector<8x128xf32>
    %184 = arith.mulf %8, %183 : vector<8x128xf32>
    %185 = arith.addf %181, %184 : vector<8x128xf32>
    %c9_12 = arith.constant 9 : index
    %186 = memref.load %arg2[%c9_12] : memref<12xf32, #tpu.memory_space<smem>>
    %187 = vector.broadcast %186 : f32 to vector<8x128xf32>
    %188 = arith.addf %185, %187 : vector<8x128xf32>
    %c10 = arith.constant 10 : index
    %189 = memref.load %arg1[%c10] : memref<48xf32, #tpu.memory_space<smem>>
    %190 = vector.broadcast %189 : f32 to vector<8x128xf32>
    %191 = arith.mulf %2, %190 : vector<8x128xf32>
    %c22 = arith.constant 22 : index
    %192 = memref.load %arg1[%c22] : memref<48xf32, #tpu.memory_space<smem>>
    %193 = vector.broadcast %192 : f32 to vector<8x128xf32>
    %194 = arith.mulf %4, %193 : vector<8x128xf32>
    %195 = arith.addf %191, %194 : vector<8x128xf32>
    %c34 = arith.constant 34 : index
    %196 = memref.load %arg1[%c34] : memref<48xf32, #tpu.memory_space<smem>>
    %197 = vector.broadcast %196 : f32 to vector<8x128xf32>
    %198 = arith.mulf %6, %197 : vector<8x128xf32>
    %199 = arith.addf %195, %198 : vector<8x128xf32>
    %c46 = arith.constant 46 : index
    %200 = memref.load %arg1[%c46] : memref<48xf32, #tpu.memory_space<smem>>
    %201 = vector.broadcast %200 : f32 to vector<8x128xf32>
    %202 = arith.mulf %8, %201 : vector<8x128xf32>
    %203 = arith.addf %199, %202 : vector<8x128xf32>
    %c10_13 = arith.constant 10 : index
    %204 = memref.load %arg2[%c10_13] : memref<12xf32, #tpu.memory_space<smem>>
    %205 = vector.broadcast %204 : f32 to vector<8x128xf32>
    %206 = arith.addf %203, %205 : vector<8x128xf32>
    %c11 = arith.constant 11 : index
    %207 = memref.load %arg1[%c11] : memref<48xf32, #tpu.memory_space<smem>>
    %208 = vector.broadcast %207 : f32 to vector<8x128xf32>
    %209 = arith.mulf %2, %208 : vector<8x128xf32>
    %c23 = arith.constant 23 : index
    %210 = memref.load %arg1[%c23] : memref<48xf32, #tpu.memory_space<smem>>
    %211 = vector.broadcast %210 : f32 to vector<8x128xf32>
    %212 = arith.mulf %4, %211 : vector<8x128xf32>
    %213 = arith.addf %209, %212 : vector<8x128xf32>
    %c35 = arith.constant 35 : index
    %214 = memref.load %arg1[%c35] : memref<48xf32, #tpu.memory_space<smem>>
    %215 = vector.broadcast %214 : f32 to vector<8x128xf32>
    %216 = arith.mulf %6, %215 : vector<8x128xf32>
    %217 = arith.addf %213, %216 : vector<8x128xf32>
    %c47 = arith.constant 47 : index
    %218 = memref.load %arg1[%c47] : memref<48xf32, #tpu.memory_space<smem>>
    %219 = vector.broadcast %218 : f32 to vector<8x128xf32>
    %220 = arith.mulf %8, %219 : vector<8x128xf32>
    %221 = arith.addf %217, %220 : vector<8x128xf32>
    %c11_14 = arith.constant 11 : index
    %222 = memref.load %arg2[%c11_14] : memref<12xf32, #tpu.memory_space<smem>>
    %223 = vector.broadcast %222 : f32 to vector<8x128xf32>
    %224 = arith.addf %221, %223 : vector<8x128xf32>
    %cst = arith.constant 0.000000e+00 : f32
    %225 = vector.broadcast %cst : f32 to vector<8x128xf32>
    %226 = arith.maximumf %26, %225 : vector<8x128xf32>
    %cst_15 = arith.constant 0.000000e+00 : f32
    %227 = vector.broadcast %cst_15 : f32 to vector<8x128xf32>
    %228 = arith.maximumf %44, %227 : vector<8x128xf32>
    %cst_16 = arith.constant 0.000000e+00 : f32
    %229 = vector.broadcast %cst_16 : f32 to vector<8x128xf32>
    %230 = arith.maximumf %62, %229 : vector<8x128xf32>
    %cst_17 = arith.constant 0.000000e+00 : f32
    %231 = vector.broadcast %cst_17 : f32 to vector<8x128xf32>
    %232 = arith.maximumf %80, %231 : vector<8x128xf32>
    %cst_18 = arith.constant 0.000000e+00 : f32
    %233 = vector.broadcast %cst_18 : f32 to vector<8x128xf32>
    %234 = arith.maximumf %98, %233 : vector<8x128xf32>
    %cst_19 = arith.constant 0.000000e+00 : f32
    %235 = vector.broadcast %cst_19 : f32 to vector<8x128xf32>
    %236 = arith.maximumf %116, %235 : vector<8x128xf32>
    %cst_20 = arith.constant 0.000000e+00 : f32
    %237 = vector.broadcast %cst_20 : f32 to vector<8x128xf32>
    %238 = arith.maximumf %134, %237 : vector<8x128xf32>
    %cst_21 = arith.constant 0.000000e+00 : f32
    %239 = vector.broadcast %cst_21 : f32 to vector<8x128xf32>
    %240 = arith.maximumf %152, %239 : vector<8x128xf32>
    %cst_22 = arith.constant 0.000000e+00 : f32
    %241 = vector.broadcast %cst_22 : f32 to vector<8x128xf32>
    %242 = arith.maximumf %170, %241 : vector<8x128xf32>
    %cst_23 = arith.constant 0.000000e+00 : f32
    %243 = vector.broadcast %cst_23 : f32 to vector<8x128xf32>
    %244 = arith.maximumf %188, %243 : vector<8x128xf32>
    %cst_24 = arith.constant 0.000000e+00 : f32
    %245 = vector.broadcast %cst_24 : f32 to vector<8x128xf32>
    %246 = arith.maximumf %206, %245 : vector<8x128xf32>
    %cst_25 = arith.constant 0.000000e+00 : f32
    %247 = vector.broadcast %cst_25 : f32 to vector<8x128xf32>
    %248 = arith.maximumf %224, %247 : vector<8x128xf32>
    %c0_26 = arith.constant 0 : index
    %249 = memref.load %arg3[%c0_26] : memref<144xf32, #tpu.memory_space<smem>>
    %250 = vector.broadcast %249 : f32 to vector<8x128xf32>
    %251 = arith.mulf %226, %250 : vector<8x128xf32>
    %c12_27 = arith.constant 12 : index
    %252 = memref.load %arg3[%c12_27] : memref<144xf32, #tpu.memory_space<smem>>
    %253 = vector.broadcast %252 : f32 to vector<8x128xf32>
    %254 = arith.mulf %228, %253 : vector<8x128xf32>
    %255 = arith.addf %251, %254 : vector<8x128xf32>
    %c24_28 = arith.constant 24 : index
    %256 = memref.load %arg3[%c24_28] : memref<144xf32, #tpu.memory_space<smem>>
    %257 = vector.broadcast %256 : f32 to vector<8x128xf32>
    %258 = arith.mulf %230, %257 : vector<8x128xf32>
    %259 = arith.addf %255, %258 : vector<8x128xf32>
    %c36_29 = arith.constant 36 : index
    %260 = memref.load %arg3[%c36_29] : memref<144xf32, #tpu.memory_space<smem>>
    %261 = vector.broadcast %260 : f32 to vector<8x128xf32>
    %262 = arith.mulf %232, %261 : vector<8x128xf32>
    %263 = arith.addf %259, %262 : vector<8x128xf32>
    %c48 = arith.constant 48 : index
    %264 = memref.load %arg3[%c48] : memref<144xf32, #tpu.memory_space<smem>>
    %265 = vector.broadcast %264 : f32 to vector<8x128xf32>
    %266 = arith.mulf %234, %265 : vector<8x128xf32>
    %267 = arith.addf %263, %266 : vector<8x128xf32>
    %c60 = arith.constant 60 : index
    %268 = memref.load %arg3[%c60] : memref<144xf32, #tpu.memory_space<smem>>
    %269 = vector.broadcast %268 : f32 to vector<8x128xf32>
    %270 = arith.mulf %236, %269 : vector<8x128xf32>
    %271 = arith.addf %267, %270 : vector<8x128xf32>
    %c72 = arith.constant 72 : index
    %272 = memref.load %arg3[%c72] : memref<144xf32, #tpu.memory_space<smem>>
    %273 = vector.broadcast %272 : f32 to vector<8x128xf32>
    %274 = arith.mulf %238, %273 : vector<8x128xf32>
    %275 = arith.addf %271, %274 : vector<8x128xf32>
    %c84 = arith.constant 84 : index
    %276 = memref.load %arg3[%c84] : memref<144xf32, #tpu.memory_space<smem>>
    %277 = vector.broadcast %276 : f32 to vector<8x128xf32>
    %278 = arith.mulf %240, %277 : vector<8x128xf32>
    %279 = arith.addf %275, %278 : vector<8x128xf32>
    %c96 = arith.constant 96 : index
    %280 = memref.load %arg3[%c96] : memref<144xf32, #tpu.memory_space<smem>>
    %281 = vector.broadcast %280 : f32 to vector<8x128xf32>
    %282 = arith.mulf %242, %281 : vector<8x128xf32>
    %283 = arith.addf %279, %282 : vector<8x128xf32>
    %c108 = arith.constant 108 : index
    %284 = memref.load %arg3[%c108] : memref<144xf32, #tpu.memory_space<smem>>
    %285 = vector.broadcast %284 : f32 to vector<8x128xf32>
    %286 = arith.mulf %244, %285 : vector<8x128xf32>
    %287 = arith.addf %283, %286 : vector<8x128xf32>
    %c120 = arith.constant 120 : index
    %288 = memref.load %arg3[%c120] : memref<144xf32, #tpu.memory_space<smem>>
    %289 = vector.broadcast %288 : f32 to vector<8x128xf32>
    %290 = arith.mulf %246, %289 : vector<8x128xf32>
    %291 = arith.addf %287, %290 : vector<8x128xf32>
    %c132 = arith.constant 132 : index
    %292 = memref.load %arg3[%c132] : memref<144xf32, #tpu.memory_space<smem>>
    %293 = vector.broadcast %292 : f32 to vector<8x128xf32>
    %294 = arith.mulf %248, %293 : vector<8x128xf32>
    %295 = arith.addf %291, %294 : vector<8x128xf32>
    %c0_30 = arith.constant 0 : index
    %296 = memref.load %arg4[%c0_30] : memref<12xf32, #tpu.memory_space<smem>>
    %297 = vector.broadcast %296 : f32 to vector<8x128xf32>
    %298 = arith.addf %295, %297 : vector<8x128xf32>
    %c1_31 = arith.constant 1 : index
    %299 = memref.load %arg3[%c1_31] : memref<144xf32, #tpu.memory_space<smem>>
    %300 = vector.broadcast %299 : f32 to vector<8x128xf32>
    %301 = arith.mulf %226, %300 : vector<8x128xf32>
    %c13_32 = arith.constant 13 : index
    %302 = memref.load %arg3[%c13_32] : memref<144xf32, #tpu.memory_space<smem>>
    %303 = vector.broadcast %302 : f32 to vector<8x128xf32>
    %304 = arith.mulf %228, %303 : vector<8x128xf32>
    %305 = arith.addf %301, %304 : vector<8x128xf32>
    %c25_33 = arith.constant 25 : index
    %306 = memref.load %arg3[%c25_33] : memref<144xf32, #tpu.memory_space<smem>>
    %307 = vector.broadcast %306 : f32 to vector<8x128xf32>
    %308 = arith.mulf %230, %307 : vector<8x128xf32>
    %309 = arith.addf %305, %308 : vector<8x128xf32>
    %c37_34 = arith.constant 37 : index
    %310 = memref.load %arg3[%c37_34] : memref<144xf32, #tpu.memory_space<smem>>
    %311 = vector.broadcast %310 : f32 to vector<8x128xf32>
    %312 = arith.mulf %232, %311 : vector<8x128xf32>
    %313 = arith.addf %309, %312 : vector<8x128xf32>
    %c49 = arith.constant 49 : index
    %314 = memref.load %arg3[%c49] : memref<144xf32, #tpu.memory_space<smem>>
    %315 = vector.broadcast %314 : f32 to vector<8x128xf32>
    %316 = arith.mulf %234, %315 : vector<8x128xf32>
    %317 = arith.addf %313, %316 : vector<8x128xf32>
    %c61 = arith.constant 61 : index
    %318 = memref.load %arg3[%c61] : memref<144xf32, #tpu.memory_space<smem>>
    %319 = vector.broadcast %318 : f32 to vector<8x128xf32>
    %320 = arith.mulf %236, %319 : vector<8x128xf32>
    %321 = arith.addf %317, %320 : vector<8x128xf32>
    %c73 = arith.constant 73 : index
    %322 = memref.load %arg3[%c73] : memref<144xf32, #tpu.memory_space<smem>>
    %323 = vector.broadcast %322 : f32 to vector<8x128xf32>
    %324 = arith.mulf %238, %323 : vector<8x128xf32>
    %325 = arith.addf %321, %324 : vector<8x128xf32>
    %c85 = arith.constant 85 : index
    %326 = memref.load %arg3[%c85] : memref<144xf32, #tpu.memory_space<smem>>
    %327 = vector.broadcast %326 : f32 to vector<8x128xf32>
    %328 = arith.mulf %240, %327 : vector<8x128xf32>
    %329 = arith.addf %325, %328 : vector<8x128xf32>
    %c97 = arith.constant 97 : index
    %330 = memref.load %arg3[%c97] : memref<144xf32, #tpu.memory_space<smem>>
    %331 = vector.broadcast %330 : f32 to vector<8x128xf32>
    %332 = arith.mulf %242, %331 : vector<8x128xf32>
    %333 = arith.addf %329, %332 : vector<8x128xf32>
    %c109 = arith.constant 109 : index
    %334 = memref.load %arg3[%c109] : memref<144xf32, #tpu.memory_space<smem>>
    %335 = vector.broadcast %334 : f32 to vector<8x128xf32>
    %336 = arith.mulf %244, %335 : vector<8x128xf32>
    %337 = arith.addf %333, %336 : vector<8x128xf32>
    %c121 = arith.constant 121 : index
    %338 = memref.load %arg3[%c121] : memref<144xf32, #tpu.memory_space<smem>>
    %339 = vector.broadcast %338 : f32 to vector<8x128xf32>
    %340 = arith.mulf %246, %339 : vector<8x128xf32>
    %341 = arith.addf %337, %340 : vector<8x128xf32>
    %c133 = arith.constant 133 : index
    %342 = memref.load %arg3[%c133] : memref<144xf32, #tpu.memory_space<smem>>
    %343 = vector.broadcast %342 : f32 to vector<8x128xf32>
    %344 = arith.mulf %248, %343 : vector<8x128xf32>
    %345 = arith.addf %341, %344 : vector<8x128xf32>
    %c1_35 = arith.constant 1 : index
    %346 = memref.load %arg4[%c1_35] : memref<12xf32, #tpu.memory_space<smem>>
    %347 = vector.broadcast %346 : f32 to vector<8x128xf32>
    %348 = arith.addf %345, %347 : vector<8x128xf32>
    %c2_36 = arith.constant 2 : index
    %349 = memref.load %arg3[%c2_36] : memref<144xf32, #tpu.memory_space<smem>>
    %350 = vector.broadcast %349 : f32 to vector<8x128xf32>
    %351 = arith.mulf %226, %350 : vector<8x128xf32>
    %c14_37 = arith.constant 14 : index
    %352 = memref.load %arg3[%c14_37] : memref<144xf32, #tpu.memory_space<smem>>
    %353 = vector.broadcast %352 : f32 to vector<8x128xf32>
    %354 = arith.mulf %228, %353 : vector<8x128xf32>
    %355 = arith.addf %351, %354 : vector<8x128xf32>
    %c26_38 = arith.constant 26 : index
    %356 = memref.load %arg3[%c26_38] : memref<144xf32, #tpu.memory_space<smem>>
    %357 = vector.broadcast %356 : f32 to vector<8x128xf32>
    %358 = arith.mulf %230, %357 : vector<8x128xf32>
    %359 = arith.addf %355, %358 : vector<8x128xf32>
    %c38_39 = arith.constant 38 : index
    %360 = memref.load %arg3[%c38_39] : memref<144xf32, #tpu.memory_space<smem>>
    %361 = vector.broadcast %360 : f32 to vector<8x128xf32>
    %362 = arith.mulf %232, %361 : vector<8x128xf32>
    %363 = arith.addf %359, %362 : vector<8x128xf32>
    %c50 = arith.constant 50 : index
    %364 = memref.load %arg3[%c50] : memref<144xf32, #tpu.memory_space<smem>>
    %365 = vector.broadcast %364 : f32 to vector<8x128xf32>
    %366 = arith.mulf %234, %365 : vector<8x128xf32>
    %367 = arith.addf %363, %366 : vector<8x128xf32>
    %c62 = arith.constant 62 : index
    %368 = memref.load %arg3[%c62] : memref<144xf32, #tpu.memory_space<smem>>
    %369 = vector.broadcast %368 : f32 to vector<8x128xf32>
    %370 = arith.mulf %236, %369 : vector<8x128xf32>
    %371 = arith.addf %367, %370 : vector<8x128xf32>
    %c74 = arith.constant 74 : index
    %372 = memref.load %arg3[%c74] : memref<144xf32, #tpu.memory_space<smem>>
    %373 = vector.broadcast %372 : f32 to vector<8x128xf32>
    %374 = arith.mulf %238, %373 : vector<8x128xf32>
    %375 = arith.addf %371, %374 : vector<8x128xf32>
    %c86 = arith.constant 86 : index
    %376 = memref.load %arg3[%c86] : memref<144xf32, #tpu.memory_space<smem>>
    %377 = vector.broadcast %376 : f32 to vector<8x128xf32>
    %378 = arith.mulf %240, %377 : vector<8x128xf32>
    %379 = arith.addf %375, %378 : vector<8x128xf32>
    %c98 = arith.constant 98 : index
    %380 = memref.load %arg3[%c98] : memref<144xf32, #tpu.memory_space<smem>>
    %381 = vector.broadcast %380 : f32 to vector<8x128xf32>
    %382 = arith.mulf %242, %381 : vector<8x128xf32>
    %383 = arith.addf %379, %382 : vector<8x128xf32>
    %c110 = arith.constant 110 : index
    %384 = memref.load %arg3[%c110] : memref<144xf32, #tpu.memory_space<smem>>
    %385 = vector.broadcast %384 : f32 to vector<8x128xf32>
    %386 = arith.mulf %244, %385 : vector<8x128xf32>
    %387 = arith.addf %383, %386 : vector<8x128xf32>
    %c122 = arith.constant 122 : index
    %388 = memref.load %arg3[%c122] : memref<144xf32, #tpu.memory_space<smem>>
    %389 = vector.broadcast %388 : f32 to vector<8x128xf32>
    %390 = arith.mulf %246, %389 : vector<8x128xf32>
    %391 = arith.addf %387, %390 : vector<8x128xf32>
    %c134 = arith.constant 134 : index
    %392 = memref.load %arg3[%c134] : memref<144xf32, #tpu.memory_space<smem>>
    %393 = vector.broadcast %392 : f32 to vector<8x128xf32>
    %394 = arith.mulf %248, %393 : vector<8x128xf32>
    %395 = arith.addf %391, %394 : vector<8x128xf32>
    %c2_40 = arith.constant 2 : index
    %396 = memref.load %arg4[%c2_40] : memref<12xf32, #tpu.memory_space<smem>>
    %397 = vector.broadcast %396 : f32 to vector<8x128xf32>
    %398 = arith.addf %395, %397 : vector<8x128xf32>
    %c3_41 = arith.constant 3 : index
    %399 = memref.load %arg3[%c3_41] : memref<144xf32, #tpu.memory_space<smem>>
    %400 = vector.broadcast %399 : f32 to vector<8x128xf32>
    %401 = arith.mulf %226, %400 : vector<8x128xf32>
    %c15_42 = arith.constant 15 : index
    %402 = memref.load %arg3[%c15_42] : memref<144xf32, #tpu.memory_space<smem>>
    %403 = vector.broadcast %402 : f32 to vector<8x128xf32>
    %404 = arith.mulf %228, %403 : vector<8x128xf32>
    %405 = arith.addf %401, %404 : vector<8x128xf32>
    %c27_43 = arith.constant 27 : index
    %406 = memref.load %arg3[%c27_43] : memref<144xf32, #tpu.memory_space<smem>>
    %407 = vector.broadcast %406 : f32 to vector<8x128xf32>
    %408 = arith.mulf %230, %407 : vector<8x128xf32>
    %409 = arith.addf %405, %408 : vector<8x128xf32>
    %c39_44 = arith.constant 39 : index
    %410 = memref.load %arg3[%c39_44] : memref<144xf32, #tpu.memory_space<smem>>
    %411 = vector.broadcast %410 : f32 to vector<8x128xf32>
    %412 = arith.mulf %232, %411 : vector<8x128xf32>
    %413 = arith.addf %409, %412 : vector<8x128xf32>
    %c51 = arith.constant 51 : index
    %414 = memref.load %arg3[%c51] : memref<144xf32, #tpu.memory_space<smem>>
    %415 = vector.broadcast %414 : f32 to vector<8x128xf32>
    %416 = arith.mulf %234, %415 : vector<8x128xf32>
    %417 = arith.addf %413, %416 : vector<8x128xf32>
    %c63 = arith.constant 63 : index
    %418 = memref.load %arg3[%c63] : memref<144xf32, #tpu.memory_space<smem>>
    %419 = vector.broadcast %418 : f32 to vector<8x128xf32>
    %420 = arith.mulf %236, %419 : vector<8x128xf32>
    %421 = arith.addf %417, %420 : vector<8x128xf32>
    %c75 = arith.constant 75 : index
    %422 = memref.load %arg3[%c75] : memref<144xf32, #tpu.memory_space<smem>>
    %423 = vector.broadcast %422 : f32 to vector<8x128xf32>
    %424 = arith.mulf %238, %423 : vector<8x128xf32>
    %425 = arith.addf %421, %424 : vector<8x128xf32>
    %c87 = arith.constant 87 : index
    %426 = memref.load %arg3[%c87] : memref<144xf32, #tpu.memory_space<smem>>
    %427 = vector.broadcast %426 : f32 to vector<8x128xf32>
    %428 = arith.mulf %240, %427 : vector<8x128xf32>
    %429 = arith.addf %425, %428 : vector<8x128xf32>
    %c99 = arith.constant 99 : index
    %430 = memref.load %arg3[%c99] : memref<144xf32, #tpu.memory_space<smem>>
    %431 = vector.broadcast %430 : f32 to vector<8x128xf32>
    %432 = arith.mulf %242, %431 : vector<8x128xf32>
    %433 = arith.addf %429, %432 : vector<8x128xf32>
    %c111 = arith.constant 111 : index
    %434 = memref.load %arg3[%c111] : memref<144xf32, #tpu.memory_space<smem>>
    %435 = vector.broadcast %434 : f32 to vector<8x128xf32>
    %436 = arith.mulf %244, %435 : vector<8x128xf32>
    %437 = arith.addf %433, %436 : vector<8x128xf32>
    %c123 = arith.constant 123 : index
    %438 = memref.load %arg3[%c123] : memref<144xf32, #tpu.memory_space<smem>>
    %439 = vector.broadcast %438 : f32 to vector<8x128xf32>
    %440 = arith.mulf %246, %439 : vector<8x128xf32>
    %441 = arith.addf %437, %440 : vector<8x128xf32>
    %c135 = arith.constant 135 : index
    %442 = memref.load %arg3[%c135] : memref<144xf32, #tpu.memory_space<smem>>
    %443 = vector.broadcast %442 : f32 to vector<8x128xf32>
    %444 = arith.mulf %248, %443 : vector<8x128xf32>
    %445 = arith.addf %441, %444 : vector<8x128xf32>
    %c3_45 = arith.constant 3 : index
    %446 = memref.load %arg4[%c3_45] : memref<12xf32, #tpu.memory_space<smem>>
    %447 = vector.broadcast %446 : f32 to vector<8x128xf32>
    %448 = arith.addf %445, %447 : vector<8x128xf32>
    %c4_46 = arith.constant 4 : index
    %449 = memref.load %arg3[%c4_46] : memref<144xf32, #tpu.memory_space<smem>>
    %450 = vector.broadcast %449 : f32 to vector<8x128xf32>
    %451 = arith.mulf %226, %450 : vector<8x128xf32>
    %c16_47 = arith.constant 16 : index
    %452 = memref.load %arg3[%c16_47] : memref<144xf32, #tpu.memory_space<smem>>
    %453 = vector.broadcast %452 : f32 to vector<8x128xf32>
    %454 = arith.mulf %228, %453 : vector<8x128xf32>
    %455 = arith.addf %451, %454 : vector<8x128xf32>
    %c28_48 = arith.constant 28 : index
    %456 = memref.load %arg3[%c28_48] : memref<144xf32, #tpu.memory_space<smem>>
    %457 = vector.broadcast %456 : f32 to vector<8x128xf32>
    %458 = arith.mulf %230, %457 : vector<8x128xf32>
    %459 = arith.addf %455, %458 : vector<8x128xf32>
    %c40_49 = arith.constant 40 : index
    %460 = memref.load %arg3[%c40_49] : memref<144xf32, #tpu.memory_space<smem>>
    %461 = vector.broadcast %460 : f32 to vector<8x128xf32>
    %462 = arith.mulf %232, %461 : vector<8x128xf32>
    %463 = arith.addf %459, %462 : vector<8x128xf32>
    %c52 = arith.constant 52 : index
    %464 = memref.load %arg3[%c52] : memref<144xf32, #tpu.memory_space<smem>>
    %465 = vector.broadcast %464 : f32 to vector<8x128xf32>
    %466 = arith.mulf %234, %465 : vector<8x128xf32>
    %467 = arith.addf %463, %466 : vector<8x128xf32>
    %c64 = arith.constant 64 : index
    %468 = memref.load %arg3[%c64] : memref<144xf32, #tpu.memory_space<smem>>
    %469 = vector.broadcast %468 : f32 to vector<8x128xf32>
    %470 = arith.mulf %236, %469 : vector<8x128xf32>
    %471 = arith.addf %467, %470 : vector<8x128xf32>
    %c76 = arith.constant 76 : index
    %472 = memref.load %arg3[%c76] : memref<144xf32, #tpu.memory_space<smem>>
    %473 = vector.broadcast %472 : f32 to vector<8x128xf32>
    %474 = arith.mulf %238, %473 : vector<8x128xf32>
    %475 = arith.addf %471, %474 : vector<8x128xf32>
    %c88 = arith.constant 88 : index
    %476 = memref.load %arg3[%c88] : memref<144xf32, #tpu.memory_space<smem>>
    %477 = vector.broadcast %476 : f32 to vector<8x128xf32>
    %478 = arith.mulf %240, %477 : vector<8x128xf32>
    %479 = arith.addf %475, %478 : vector<8x128xf32>
    %c100 = arith.constant 100 : index
    %480 = memref.load %arg3[%c100] : memref<144xf32, #tpu.memory_space<smem>>
    %481 = vector.broadcast %480 : f32 to vector<8x128xf32>
    %482 = arith.mulf %242, %481 : vector<8x128xf32>
    %483 = arith.addf %479, %482 : vector<8x128xf32>
    %c112 = arith.constant 112 : index
    %484 = memref.load %arg3[%c112] : memref<144xf32, #tpu.memory_space<smem>>
    %485 = vector.broadcast %484 : f32 to vector<8x128xf32>
    %486 = arith.mulf %244, %485 : vector<8x128xf32>
    %487 = arith.addf %483, %486 : vector<8x128xf32>
    %c124 = arith.constant 124 : index
    %488 = memref.load %arg3[%c124] : memref<144xf32, #tpu.memory_space<smem>>
    %489 = vector.broadcast %488 : f32 to vector<8x128xf32>
    %490 = arith.mulf %246, %489 : vector<8x128xf32>
    %491 = arith.addf %487, %490 : vector<8x128xf32>
    %c136 = arith.constant 136 : index
    %492 = memref.load %arg3[%c136] : memref<144xf32, #tpu.memory_space<smem>>
    %493 = vector.broadcast %492 : f32 to vector<8x128xf32>
    %494 = arith.mulf %248, %493 : vector<8x128xf32>
    %495 = arith.addf %491, %494 : vector<8x128xf32>
    %c4_50 = arith.constant 4 : index
    %496 = memref.load %arg4[%c4_50] : memref<12xf32, #tpu.memory_space<smem>>
    %497 = vector.broadcast %496 : f32 to vector<8x128xf32>
    %498 = arith.addf %495, %497 : vector<8x128xf32>
    %c5_51 = arith.constant 5 : index
    %499 = memref.load %arg3[%c5_51] : memref<144xf32, #tpu.memory_space<smem>>
    %500 = vector.broadcast %499 : f32 to vector<8x128xf32>
    %501 = arith.mulf %226, %500 : vector<8x128xf32>
    %c17_52 = arith.constant 17 : index
    %502 = memref.load %arg3[%c17_52] : memref<144xf32, #tpu.memory_space<smem>>
    %503 = vector.broadcast %502 : f32 to vector<8x128xf32>
    %504 = arith.mulf %228, %503 : vector<8x128xf32>
    %505 = arith.addf %501, %504 : vector<8x128xf32>
    %c29_53 = arith.constant 29 : index
    %506 = memref.load %arg3[%c29_53] : memref<144xf32, #tpu.memory_space<smem>>
    %507 = vector.broadcast %506 : f32 to vector<8x128xf32>
    %508 = arith.mulf %230, %507 : vector<8x128xf32>
    %509 = arith.addf %505, %508 : vector<8x128xf32>
    %c41_54 = arith.constant 41 : index
    %510 = memref.load %arg3[%c41_54] : memref<144xf32, #tpu.memory_space<smem>>
    %511 = vector.broadcast %510 : f32 to vector<8x128xf32>
    %512 = arith.mulf %232, %511 : vector<8x128xf32>
    %513 = arith.addf %509, %512 : vector<8x128xf32>
    %c53 = arith.constant 53 : index
    %514 = memref.load %arg3[%c53] : memref<144xf32, #tpu.memory_space<smem>>
    %515 = vector.broadcast %514 : f32 to vector<8x128xf32>
    %516 = arith.mulf %234, %515 : vector<8x128xf32>
    %517 = arith.addf %513, %516 : vector<8x128xf32>
    %c65 = arith.constant 65 : index
    %518 = memref.load %arg3[%c65] : memref<144xf32, #tpu.memory_space<smem>>
    %519 = vector.broadcast %518 : f32 to vector<8x128xf32>
    %520 = arith.mulf %236, %519 : vector<8x128xf32>
    %521 = arith.addf %517, %520 : vector<8x128xf32>
    %c77 = arith.constant 77 : index
    %522 = memref.load %arg3[%c77] : memref<144xf32, #tpu.memory_space<smem>>
    %523 = vector.broadcast %522 : f32 to vector<8x128xf32>
    %524 = arith.mulf %238, %523 : vector<8x128xf32>
    %525 = arith.addf %521, %524 : vector<8x128xf32>
    %c89 = arith.constant 89 : index
    %526 = memref.load %arg3[%c89] : memref<144xf32, #tpu.memory_space<smem>>
    %527 = vector.broadcast %526 : f32 to vector<8x128xf32>
    %528 = arith.mulf %240, %527 : vector<8x128xf32>
    %529 = arith.addf %525, %528 : vector<8x128xf32>
    %c101 = arith.constant 101 : index
    %530 = memref.load %arg3[%c101] : memref<144xf32, #tpu.memory_space<smem>>
    %531 = vector.broadcast %530 : f32 to vector<8x128xf32>
    %532 = arith.mulf %242, %531 : vector<8x128xf32>
    %533 = arith.addf %529, %532 : vector<8x128xf32>
    %c113 = arith.constant 113 : index
    %534 = memref.load %arg3[%c113] : memref<144xf32, #tpu.memory_space<smem>>
    %535 = vector.broadcast %534 : f32 to vector<8x128xf32>
    %536 = arith.mulf %244, %535 : vector<8x128xf32>
    %537 = arith.addf %533, %536 : vector<8x128xf32>
    %c125 = arith.constant 125 : index
    %538 = memref.load %arg3[%c125] : memref<144xf32, #tpu.memory_space<smem>>
    %539 = vector.broadcast %538 : f32 to vector<8x128xf32>
    %540 = arith.mulf %246, %539 : vector<8x128xf32>
    %541 = arith.addf %537, %540 : vector<8x128xf32>
    %c137 = arith.constant 137 : index
    %542 = memref.load %arg3[%c137] : memref<144xf32, #tpu.memory_space<smem>>
    %543 = vector.broadcast %542 : f32 to vector<8x128xf32>
    %544 = arith.mulf %248, %543 : vector<8x128xf32>
    %545 = arith.addf %541, %544 : vector<8x128xf32>
    %c5_55 = arith.constant 5 : index
    %546 = memref.load %arg4[%c5_55] : memref<12xf32, #tpu.memory_space<smem>>
    %547 = vector.broadcast %546 : f32 to vector<8x128xf32>
    %548 = arith.addf %545, %547 : vector<8x128xf32>
    %c6_56 = arith.constant 6 : index
    %549 = memref.load %arg3[%c6_56] : memref<144xf32, #tpu.memory_space<smem>>
    %550 = vector.broadcast %549 : f32 to vector<8x128xf32>
    %551 = arith.mulf %226, %550 : vector<8x128xf32>
    %c18_57 = arith.constant 18 : index
    %552 = memref.load %arg3[%c18_57] : memref<144xf32, #tpu.memory_space<smem>>
    %553 = vector.broadcast %552 : f32 to vector<8x128xf32>
    %554 = arith.mulf %228, %553 : vector<8x128xf32>
    %555 = arith.addf %551, %554 : vector<8x128xf32>
    %c30_58 = arith.constant 30 : index
    %556 = memref.load %arg3[%c30_58] : memref<144xf32, #tpu.memory_space<smem>>
    %557 = vector.broadcast %556 : f32 to vector<8x128xf32>
    %558 = arith.mulf %230, %557 : vector<8x128xf32>
    %559 = arith.addf %555, %558 : vector<8x128xf32>
    %c42_59 = arith.constant 42 : index
    %560 = memref.load %arg3[%c42_59] : memref<144xf32, #tpu.memory_space<smem>>
    %561 = vector.broadcast %560 : f32 to vector<8x128xf32>
    %562 = arith.mulf %232, %561 : vector<8x128xf32>
    %563 = arith.addf %559, %562 : vector<8x128xf32>
    %c54 = arith.constant 54 : index
    %564 = memref.load %arg3[%c54] : memref<144xf32, #tpu.memory_space<smem>>
    %565 = vector.broadcast %564 : f32 to vector<8x128xf32>
    %566 = arith.mulf %234, %565 : vector<8x128xf32>
    %567 = arith.addf %563, %566 : vector<8x128xf32>
    %c66 = arith.constant 66 : index
    %568 = memref.load %arg3[%c66] : memref<144xf32, #tpu.memory_space<smem>>
    %569 = vector.broadcast %568 : f32 to vector<8x128xf32>
    %570 = arith.mulf %236, %569 : vector<8x128xf32>
    %571 = arith.addf %567, %570 : vector<8x128xf32>
    %c78 = arith.constant 78 : index
    %572 = memref.load %arg3[%c78] : memref<144xf32, #tpu.memory_space<smem>>
    %573 = vector.broadcast %572 : f32 to vector<8x128xf32>
    %574 = arith.mulf %238, %573 : vector<8x128xf32>
    %575 = arith.addf %571, %574 : vector<8x128xf32>
    %c90 = arith.constant 90 : index
    %576 = memref.load %arg3[%c90] : memref<144xf32, #tpu.memory_space<smem>>
    %577 = vector.broadcast %576 : f32 to vector<8x128xf32>
    %578 = arith.mulf %240, %577 : vector<8x128xf32>
    %579 = arith.addf %575, %578 : vector<8x128xf32>
    %c102 = arith.constant 102 : index
    %580 = memref.load %arg3[%c102] : memref<144xf32, #tpu.memory_space<smem>>
    %581 = vector.broadcast %580 : f32 to vector<8x128xf32>
    %582 = arith.mulf %242, %581 : vector<8x128xf32>
    %583 = arith.addf %579, %582 : vector<8x128xf32>
    %c114 = arith.constant 114 : index
    %584 = memref.load %arg3[%c114] : memref<144xf32, #tpu.memory_space<smem>>
    %585 = vector.broadcast %584 : f32 to vector<8x128xf32>
    %586 = arith.mulf %244, %585 : vector<8x128xf32>
    %587 = arith.addf %583, %586 : vector<8x128xf32>
    %c126 = arith.constant 126 : index
    %588 = memref.load %arg3[%c126] : memref<144xf32, #tpu.memory_space<smem>>
    %589 = vector.broadcast %588 : f32 to vector<8x128xf32>
    %590 = arith.mulf %246, %589 : vector<8x128xf32>
    %591 = arith.addf %587, %590 : vector<8x128xf32>
    %c138 = arith.constant 138 : index
    %592 = memref.load %arg3[%c138] : memref<144xf32, #tpu.memory_space<smem>>
    %593 = vector.broadcast %592 : f32 to vector<8x128xf32>
    %594 = arith.mulf %248, %593 : vector<8x128xf32>
    %595 = arith.addf %591, %594 : vector<8x128xf32>
    %c6_60 = arith.constant 6 : index
    %596 = memref.load %arg4[%c6_60] : memref<12xf32, #tpu.memory_space<smem>>
    %597 = vector.broadcast %596 : f32 to vector<8x128xf32>
    %598 = arith.addf %595, %597 : vector<8x128xf32>
    %c7_61 = arith.constant 7 : index
    %599 = memref.load %arg3[%c7_61] : memref<144xf32, #tpu.memory_space<smem>>
    %600 = vector.broadcast %599 : f32 to vector<8x128xf32>
    %601 = arith.mulf %226, %600 : vector<8x128xf32>
    %c19_62 = arith.constant 19 : index
    %602 = memref.load %arg3[%c19_62] : memref<144xf32, #tpu.memory_space<smem>>
    %603 = vector.broadcast %602 : f32 to vector<8x128xf32>
    %604 = arith.mulf %228, %603 : vector<8x128xf32>
    %605 = arith.addf %601, %604 : vector<8x128xf32>
    %c31_63 = arith.constant 31 : index
    %606 = memref.load %arg3[%c31_63] : memref<144xf32, #tpu.memory_space<smem>>
    %607 = vector.broadcast %606 : f32 to vector<8x128xf32>
    %608 = arith.mulf %230, %607 : vector<8x128xf32>
    %609 = arith.addf %605, %608 : vector<8x128xf32>
    %c43_64 = arith.constant 43 : index
    %610 = memref.load %arg3[%c43_64] : memref<144xf32, #tpu.memory_space<smem>>
    %611 = vector.broadcast %610 : f32 to vector<8x128xf32>
    %612 = arith.mulf %232, %611 : vector<8x128xf32>
    %613 = arith.addf %609, %612 : vector<8x128xf32>
    %c55 = arith.constant 55 : index
    %614 = memref.load %arg3[%c55] : memref<144xf32, #tpu.memory_space<smem>>
    %615 = vector.broadcast %614 : f32 to vector<8x128xf32>
    %616 = arith.mulf %234, %615 : vector<8x128xf32>
    %617 = arith.addf %613, %616 : vector<8x128xf32>
    %c67 = arith.constant 67 : index
    %618 = memref.load %arg3[%c67] : memref<144xf32, #tpu.memory_space<smem>>
    %619 = vector.broadcast %618 : f32 to vector<8x128xf32>
    %620 = arith.mulf %236, %619 : vector<8x128xf32>
    %621 = arith.addf %617, %620 : vector<8x128xf32>
    %c79 = arith.constant 79 : index
    %622 = memref.load %arg3[%c79] : memref<144xf32, #tpu.memory_space<smem>>
    %623 = vector.broadcast %622 : f32 to vector<8x128xf32>
    %624 = arith.mulf %238, %623 : vector<8x128xf32>
    %625 = arith.addf %621, %624 : vector<8x128xf32>
    %c91 = arith.constant 91 : index
    %626 = memref.load %arg3[%c91] : memref<144xf32, #tpu.memory_space<smem>>
    %627 = vector.broadcast %626 : f32 to vector<8x128xf32>
    %628 = arith.mulf %240, %627 : vector<8x128xf32>
    %629 = arith.addf %625, %628 : vector<8x128xf32>
    %c103 = arith.constant 103 : index
    %630 = memref.load %arg3[%c103] : memref<144xf32, #tpu.memory_space<smem>>
    %631 = vector.broadcast %630 : f32 to vector<8x128xf32>
    %632 = arith.mulf %242, %631 : vector<8x128xf32>
    %633 = arith.addf %629, %632 : vector<8x128xf32>
    %c115 = arith.constant 115 : index
    %634 = memref.load %arg3[%c115] : memref<144xf32, #tpu.memory_space<smem>>
    %635 = vector.broadcast %634 : f32 to vector<8x128xf32>
    %636 = arith.mulf %244, %635 : vector<8x128xf32>
    %637 = arith.addf %633, %636 : vector<8x128xf32>
    %c127 = arith.constant 127 : index
    %638 = memref.load %arg3[%c127] : memref<144xf32, #tpu.memory_space<smem>>
    %639 = vector.broadcast %638 : f32 to vector<8x128xf32>
    %640 = arith.mulf %246, %639 : vector<8x128xf32>
    %641 = arith.addf %637, %640 : vector<8x128xf32>
    %c139 = arith.constant 139 : index
    %642 = memref.load %arg3[%c139] : memref<144xf32, #tpu.memory_space<smem>>
    %643 = vector.broadcast %642 : f32 to vector<8x128xf32>
    %644 = arith.mulf %248, %643 : vector<8x128xf32>
    %645 = arith.addf %641, %644 : vector<8x128xf32>
    %c7_65 = arith.constant 7 : index
    %646 = memref.load %arg4[%c7_65] : memref<12xf32, #tpu.memory_space<smem>>
    %647 = vector.broadcast %646 : f32 to vector<8x128xf32>
    %648 = arith.addf %645, %647 : vector<8x128xf32>
    %c8_66 = arith.constant 8 : index
    %649 = memref.load %arg3[%c8_66] : memref<144xf32, #tpu.memory_space<smem>>
    %650 = vector.broadcast %649 : f32 to vector<8x128xf32>
    %651 = arith.mulf %226, %650 : vector<8x128xf32>
    %c20_67 = arith.constant 20 : index
    %652 = memref.load %arg3[%c20_67] : memref<144xf32, #tpu.memory_space<smem>>
    %653 = vector.broadcast %652 : f32 to vector<8x128xf32>
    %654 = arith.mulf %228, %653 : vector<8x128xf32>
    %655 = arith.addf %651, %654 : vector<8x128xf32>
    %c32_68 = arith.constant 32 : index
    %656 = memref.load %arg3[%c32_68] : memref<144xf32, #tpu.memory_space<smem>>
    %657 = vector.broadcast %656 : f32 to vector<8x128xf32>
    %658 = arith.mulf %230, %657 : vector<8x128xf32>
    %659 = arith.addf %655, %658 : vector<8x128xf32>
    %c44_69 = arith.constant 44 : index
    %660 = memref.load %arg3[%c44_69] : memref<144xf32, #tpu.memory_space<smem>>
    %661 = vector.broadcast %660 : f32 to vector<8x128xf32>
    %662 = arith.mulf %232, %661 : vector<8x128xf32>
    %663 = arith.addf %659, %662 : vector<8x128xf32>
    %c56 = arith.constant 56 : index
    %664 = memref.load %arg3[%c56] : memref<144xf32, #tpu.memory_space<smem>>
    %665 = vector.broadcast %664 : f32 to vector<8x128xf32>
    %666 = arith.mulf %234, %665 : vector<8x128xf32>
    %667 = arith.addf %663, %666 : vector<8x128xf32>
    %c68 = arith.constant 68 : index
    %668 = memref.load %arg3[%c68] : memref<144xf32, #tpu.memory_space<smem>>
    %669 = vector.broadcast %668 : f32 to vector<8x128xf32>
    %670 = arith.mulf %236, %669 : vector<8x128xf32>
    %671 = arith.addf %667, %670 : vector<8x128xf32>
    %c80 = arith.constant 80 : index
    %672 = memref.load %arg3[%c80] : memref<144xf32, #tpu.memory_space<smem>>
    %673 = vector.broadcast %672 : f32 to vector<8x128xf32>
    %674 = arith.mulf %238, %673 : vector<8x128xf32>
    %675 = arith.addf %671, %674 : vector<8x128xf32>
    %c92 = arith.constant 92 : index
    %676 = memref.load %arg3[%c92] : memref<144xf32, #tpu.memory_space<smem>>
    %677 = vector.broadcast %676 : f32 to vector<8x128xf32>
    %678 = arith.mulf %240, %677 : vector<8x128xf32>
    %679 = arith.addf %675, %678 : vector<8x128xf32>
    %c104 = arith.constant 104 : index
    %680 = memref.load %arg3[%c104] : memref<144xf32, #tpu.memory_space<smem>>
    %681 = vector.broadcast %680 : f32 to vector<8x128xf32>
    %682 = arith.mulf %242, %681 : vector<8x128xf32>
    %683 = arith.addf %679, %682 : vector<8x128xf32>
    %c116 = arith.constant 116 : index
    %684 = memref.load %arg3[%c116] : memref<144xf32, #tpu.memory_space<smem>>
    %685 = vector.broadcast %684 : f32 to vector<8x128xf32>
    %686 = arith.mulf %244, %685 : vector<8x128xf32>
    %687 = arith.addf %683, %686 : vector<8x128xf32>
    %c128 = arith.constant 128 : index
    %688 = memref.load %arg3[%c128] : memref<144xf32, #tpu.memory_space<smem>>
    %689 = vector.broadcast %688 : f32 to vector<8x128xf32>
    %690 = arith.mulf %246, %689 : vector<8x128xf32>
    %691 = arith.addf %687, %690 : vector<8x128xf32>
    %c140 = arith.constant 140 : index
    %692 = memref.load %arg3[%c140] : memref<144xf32, #tpu.memory_space<smem>>
    %693 = vector.broadcast %692 : f32 to vector<8x128xf32>
    %694 = arith.mulf %248, %693 : vector<8x128xf32>
    %695 = arith.addf %691, %694 : vector<8x128xf32>
    %c8_70 = arith.constant 8 : index
    %696 = memref.load %arg4[%c8_70] : memref<12xf32, #tpu.memory_space<smem>>
    %697 = vector.broadcast %696 : f32 to vector<8x128xf32>
    %698 = arith.addf %695, %697 : vector<8x128xf32>
    %c9_71 = arith.constant 9 : index
    %699 = memref.load %arg3[%c9_71] : memref<144xf32, #tpu.memory_space<smem>>
    %700 = vector.broadcast %699 : f32 to vector<8x128xf32>
    %701 = arith.mulf %226, %700 : vector<8x128xf32>
    %c21_72 = arith.constant 21 : index
    %702 = memref.load %arg3[%c21_72] : memref<144xf32, #tpu.memory_space<smem>>
    %703 = vector.broadcast %702 : f32 to vector<8x128xf32>
    %704 = arith.mulf %228, %703 : vector<8x128xf32>
    %705 = arith.addf %701, %704 : vector<8x128xf32>
    %c33_73 = arith.constant 33 : index
    %706 = memref.load %arg3[%c33_73] : memref<144xf32, #tpu.memory_space<smem>>
    %707 = vector.broadcast %706 : f32 to vector<8x128xf32>
    %708 = arith.mulf %230, %707 : vector<8x128xf32>
    %709 = arith.addf %705, %708 : vector<8x128xf32>
    %c45_74 = arith.constant 45 : index
    %710 = memref.load %arg3[%c45_74] : memref<144xf32, #tpu.memory_space<smem>>
    %711 = vector.broadcast %710 : f32 to vector<8x128xf32>
    %712 = arith.mulf %232, %711 : vector<8x128xf32>
    %713 = arith.addf %709, %712 : vector<8x128xf32>
    %c57 = arith.constant 57 : index
    %714 = memref.load %arg3[%c57] : memref<144xf32, #tpu.memory_space<smem>>
    %715 = vector.broadcast %714 : f32 to vector<8x128xf32>
    %716 = arith.mulf %234, %715 : vector<8x128xf32>
    %717 = arith.addf %713, %716 : vector<8x128xf32>
    %c69 = arith.constant 69 : index
    %718 = memref.load %arg3[%c69] : memref<144xf32, #tpu.memory_space<smem>>
    %719 = vector.broadcast %718 : f32 to vector<8x128xf32>
    %720 = arith.mulf %236, %719 : vector<8x128xf32>
    %721 = arith.addf %717, %720 : vector<8x128xf32>
    %c81 = arith.constant 81 : index
    %722 = memref.load %arg3[%c81] : memref<144xf32, #tpu.memory_space<smem>>
    %723 = vector.broadcast %722 : f32 to vector<8x128xf32>
    %724 = arith.mulf %238, %723 : vector<8x128xf32>
    %725 = arith.addf %721, %724 : vector<8x128xf32>
    %c93 = arith.constant 93 : index
    %726 = memref.load %arg3[%c93] : memref<144xf32, #tpu.memory_space<smem>>
    %727 = vector.broadcast %726 : f32 to vector<8x128xf32>
    %728 = arith.mulf %240, %727 : vector<8x128xf32>
    %729 = arith.addf %725, %728 : vector<8x128xf32>
    %c105 = arith.constant 105 : index
    %730 = memref.load %arg3[%c105] : memref<144xf32, #tpu.memory_space<smem>>
    %731 = vector.broadcast %730 : f32 to vector<8x128xf32>
    %732 = arith.mulf %242, %731 : vector<8x128xf32>
    %733 = arith.addf %729, %732 : vector<8x128xf32>
    %c117 = arith.constant 117 : index
    %734 = memref.load %arg3[%c117] : memref<144xf32, #tpu.memory_space<smem>>
    %735 = vector.broadcast %734 : f32 to vector<8x128xf32>
    %736 = arith.mulf %244, %735 : vector<8x128xf32>
    %737 = arith.addf %733, %736 : vector<8x128xf32>
    %c129 = arith.constant 129 : index
    %738 = memref.load %arg3[%c129] : memref<144xf32, #tpu.memory_space<smem>>
    %739 = vector.broadcast %738 : f32 to vector<8x128xf32>
    %740 = arith.mulf %246, %739 : vector<8x128xf32>
    %741 = arith.addf %737, %740 : vector<8x128xf32>
    %c141 = arith.constant 141 : index
    %742 = memref.load %arg3[%c141] : memref<144xf32, #tpu.memory_space<smem>>
    %743 = vector.broadcast %742 : f32 to vector<8x128xf32>
    %744 = arith.mulf %248, %743 : vector<8x128xf32>
    %745 = arith.addf %741, %744 : vector<8x128xf32>
    %c9_75 = arith.constant 9 : index
    %746 = memref.load %arg4[%c9_75] : memref<12xf32, #tpu.memory_space<smem>>
    %747 = vector.broadcast %746 : f32 to vector<8x128xf32>
    %748 = arith.addf %745, %747 : vector<8x128xf32>
    %c10_76 = arith.constant 10 : index
    %749 = memref.load %arg3[%c10_76] : memref<144xf32, #tpu.memory_space<smem>>
    %750 = vector.broadcast %749 : f32 to vector<8x128xf32>
    %751 = arith.mulf %226, %750 : vector<8x128xf32>
    %c22_77 = arith.constant 22 : index
    %752 = memref.load %arg3[%c22_77] : memref<144xf32, #tpu.memory_space<smem>>
    %753 = vector.broadcast %752 : f32 to vector<8x128xf32>
    %754 = arith.mulf %228, %753 : vector<8x128xf32>
    %755 = arith.addf %751, %754 : vector<8x128xf32>
    %c34_78 = arith.constant 34 : index
    %756 = memref.load %arg3[%c34_78] : memref<144xf32, #tpu.memory_space<smem>>
    %757 = vector.broadcast %756 : f32 to vector<8x128xf32>
    %758 = arith.mulf %230, %757 : vector<8x128xf32>
    %759 = arith.addf %755, %758 : vector<8x128xf32>
    %c46_79 = arith.constant 46 : index
    %760 = memref.load %arg3[%c46_79] : memref<144xf32, #tpu.memory_space<smem>>
    %761 = vector.broadcast %760 : f32 to vector<8x128xf32>
    %762 = arith.mulf %232, %761 : vector<8x128xf32>
    %763 = arith.addf %759, %762 : vector<8x128xf32>
    %c58 = arith.constant 58 : index
    %764 = memref.load %arg3[%c58] : memref<144xf32, #tpu.memory_space<smem>>
    %765 = vector.broadcast %764 : f32 to vector<8x128xf32>
    %766 = arith.mulf %234, %765 : vector<8x128xf32>
    %767 = arith.addf %763, %766 : vector<8x128xf32>
    %c70 = arith.constant 70 : index
    %768 = memref.load %arg3[%c70] : memref<144xf32, #tpu.memory_space<smem>>
    %769 = vector.broadcast %768 : f32 to vector<8x128xf32>
    %770 = arith.mulf %236, %769 : vector<8x128xf32>
    %771 = arith.addf %767, %770 : vector<8x128xf32>
    %c82 = arith.constant 82 : index
    %772 = memref.load %arg3[%c82] : memref<144xf32, #tpu.memory_space<smem>>
    %773 = vector.broadcast %772 : f32 to vector<8x128xf32>
    %774 = arith.mulf %238, %773 : vector<8x128xf32>
    %775 = arith.addf %771, %774 : vector<8x128xf32>
    %c94 = arith.constant 94 : index
    %776 = memref.load %arg3[%c94] : memref<144xf32, #tpu.memory_space<smem>>
    %777 = vector.broadcast %776 : f32 to vector<8x128xf32>
    %778 = arith.mulf %240, %777 : vector<8x128xf32>
    %779 = arith.addf %775, %778 : vector<8x128xf32>
    %c106 = arith.constant 106 : index
    %780 = memref.load %arg3[%c106] : memref<144xf32, #tpu.memory_space<smem>>
    %781 = vector.broadcast %780 : f32 to vector<8x128xf32>
    %782 = arith.mulf %242, %781 : vector<8x128xf32>
    %783 = arith.addf %779, %782 : vector<8x128xf32>
    %c118 = arith.constant 118 : index
    %784 = memref.load %arg3[%c118] : memref<144xf32, #tpu.memory_space<smem>>
    %785 = vector.broadcast %784 : f32 to vector<8x128xf32>
    %786 = arith.mulf %244, %785 : vector<8x128xf32>
    %787 = arith.addf %783, %786 : vector<8x128xf32>
    %c130 = arith.constant 130 : index
    %788 = memref.load %arg3[%c130] : memref<144xf32, #tpu.memory_space<smem>>
    %789 = vector.broadcast %788 : f32 to vector<8x128xf32>
    %790 = arith.mulf %246, %789 : vector<8x128xf32>
    %791 = arith.addf %787, %790 : vector<8x128xf32>
    %c142 = arith.constant 142 : index
    %792 = memref.load %arg3[%c142] : memref<144xf32, #tpu.memory_space<smem>>
    %793 = vector.broadcast %792 : f32 to vector<8x128xf32>
    %794 = arith.mulf %248, %793 : vector<8x128xf32>
    %795 = arith.addf %791, %794 : vector<8x128xf32>
    %c10_80 = arith.constant 10 : index
    %796 = memref.load %arg4[%c10_80] : memref<12xf32, #tpu.memory_space<smem>>
    %797 = vector.broadcast %796 : f32 to vector<8x128xf32>
    %798 = arith.addf %795, %797 : vector<8x128xf32>
    %c11_81 = arith.constant 11 : index
    %799 = memref.load %arg3[%c11_81] : memref<144xf32, #tpu.memory_space<smem>>
    %800 = vector.broadcast %799 : f32 to vector<8x128xf32>
    %801 = arith.mulf %226, %800 : vector<8x128xf32>
    %c23_82 = arith.constant 23 : index
    %802 = memref.load %arg3[%c23_82] : memref<144xf32, #tpu.memory_space<smem>>
    %803 = vector.broadcast %802 : f32 to vector<8x128xf32>
    %804 = arith.mulf %228, %803 : vector<8x128xf32>
    %805 = arith.addf %801, %804 : vector<8x128xf32>
    %c35_83 = arith.constant 35 : index
    %806 = memref.load %arg3[%c35_83] : memref<144xf32, #tpu.memory_space<smem>>
    %807 = vector.broadcast %806 : f32 to vector<8x128xf32>
    %808 = arith.mulf %230, %807 : vector<8x128xf32>
    %809 = arith.addf %805, %808 : vector<8x128xf32>
    %c47_84 = arith.constant 47 : index
    %810 = memref.load %arg3[%c47_84] : memref<144xf32, #tpu.memory_space<smem>>
    %811 = vector.broadcast %810 : f32 to vector<8x128xf32>
    %812 = arith.mulf %232, %811 : vector<8x128xf32>
    %813 = arith.addf %809, %812 : vector<8x128xf32>
    %c59 = arith.constant 59 : index
    %814 = memref.load %arg3[%c59] : memref<144xf32, #tpu.memory_space<smem>>
    %815 = vector.broadcast %814 : f32 to vector<8x128xf32>
    %816 = arith.mulf %234, %815 : vector<8x128xf32>
    %817 = arith.addf %813, %816 : vector<8x128xf32>
    %c71 = arith.constant 71 : index
    %818 = memref.load %arg3[%c71] : memref<144xf32, #tpu.memory_space<smem>>
    %819 = vector.broadcast %818 : f32 to vector<8x128xf32>
    %820 = arith.mulf %236, %819 : vector<8x128xf32>
    %821 = arith.addf %817, %820 : vector<8x128xf32>
    %c83 = arith.constant 83 : index
    %822 = memref.load %arg3[%c83] : memref<144xf32, #tpu.memory_space<smem>>
    %823 = vector.broadcast %822 : f32 to vector<8x128xf32>
    %824 = arith.mulf %238, %823 : vector<8x128xf32>
    %825 = arith.addf %821, %824 : vector<8x128xf32>
    %c95 = arith.constant 95 : index
    %826 = memref.load %arg3[%c95] : memref<144xf32, #tpu.memory_space<smem>>
    %827 = vector.broadcast %826 : f32 to vector<8x128xf32>
    %828 = arith.mulf %240, %827 : vector<8x128xf32>
    %829 = arith.addf %825, %828 : vector<8x128xf32>
    %c107 = arith.constant 107 : index
    %830 = memref.load %arg3[%c107] : memref<144xf32, #tpu.memory_space<smem>>
    %831 = vector.broadcast %830 : f32 to vector<8x128xf32>
    %832 = arith.mulf %242, %831 : vector<8x128xf32>
    %833 = arith.addf %829, %832 : vector<8x128xf32>
    %c119 = arith.constant 119 : index
    %834 = memref.load %arg3[%c119] : memref<144xf32, #tpu.memory_space<smem>>
    %835 = vector.broadcast %834 : f32 to vector<8x128xf32>
    %836 = arith.mulf %244, %835 : vector<8x128xf32>
    %837 = arith.addf %833, %836 : vector<8x128xf32>
    %c131 = arith.constant 131 : index
    %838 = memref.load %arg3[%c131] : memref<144xf32, #tpu.memory_space<smem>>
    %839 = vector.broadcast %838 : f32 to vector<8x128xf32>
    %840 = arith.mulf %246, %839 : vector<8x128xf32>
    %841 = arith.addf %837, %840 : vector<8x128xf32>
    %c143 = arith.constant 143 : index
    %842 = memref.load %arg3[%c143] : memref<144xf32, #tpu.memory_space<smem>>
    %843 = vector.broadcast %842 : f32 to vector<8x128xf32>
    %844 = arith.mulf %248, %843 : vector<8x128xf32>
    %845 = arith.addf %841, %844 : vector<8x128xf32>
    %c11_85 = arith.constant 11 : index
    %846 = memref.load %arg4[%c11_85] : memref<12xf32, #tpu.memory_space<smem>>
    %847 = vector.broadcast %846 : f32 to vector<8x128xf32>
    %848 = arith.addf %845, %847 : vector<8x128xf32>
    %cst_86 = arith.constant 0.000000e+00 : f32
    %849 = vector.broadcast %cst_86 : f32 to vector<8x128xf32>
    %850 = arith.maximumf %298, %849 : vector<8x128xf32>
    %cst_87 = arith.constant 0.000000e+00 : f32
    %851 = vector.broadcast %cst_87 : f32 to vector<8x128xf32>
    %852 = arith.maximumf %348, %851 : vector<8x128xf32>
    %cst_88 = arith.constant 0.000000e+00 : f32
    %853 = vector.broadcast %cst_88 : f32 to vector<8x128xf32>
    %854 = arith.maximumf %398, %853 : vector<8x128xf32>
    %cst_89 = arith.constant 0.000000e+00 : f32
    %855 = vector.broadcast %cst_89 : f32 to vector<8x128xf32>
    %856 = arith.maximumf %448, %855 : vector<8x128xf32>
    %cst_90 = arith.constant 0.000000e+00 : f32
    %857 = vector.broadcast %cst_90 : f32 to vector<8x128xf32>
    %858 = arith.maximumf %498, %857 : vector<8x128xf32>
    %cst_91 = arith.constant 0.000000e+00 : f32
    %859 = vector.broadcast %cst_91 : f32 to vector<8x128xf32>
    %860 = arith.maximumf %548, %859 : vector<8x128xf32>
    %cst_92 = arith.constant 0.000000e+00 : f32
    %861 = vector.broadcast %cst_92 : f32 to vector<8x128xf32>
    %862 = arith.maximumf %598, %861 : vector<8x128xf32>
    %cst_93 = arith.constant 0.000000e+00 : f32
    %863 = vector.broadcast %cst_93 : f32 to vector<8x128xf32>
    %864 = arith.maximumf %648, %863 : vector<8x128xf32>
    %cst_94 = arith.constant 0.000000e+00 : f32
    %865 = vector.broadcast %cst_94 : f32 to vector<8x128xf32>
    %866 = arith.maximumf %698, %865 : vector<8x128xf32>
    %cst_95 = arith.constant 0.000000e+00 : f32
    %867 = vector.broadcast %cst_95 : f32 to vector<8x128xf32>
    %868 = arith.maximumf %748, %867 : vector<8x128xf32>
    %cst_96 = arith.constant 0.000000e+00 : f32
    %869 = vector.broadcast %cst_96 : f32 to vector<8x128xf32>
    %870 = arith.maximumf %798, %869 : vector<8x128xf32>
    %cst_97 = arith.constant 0.000000e+00 : f32
    %871 = vector.broadcast %cst_97 : f32 to vector<8x128xf32>
    %872 = arith.maximumf %848, %871 : vector<8x128xf32>
    %c0_98 = arith.constant 0 : index
    %873 = memref.load %arg5[%c0_98] : memref<36xf32, #tpu.memory_space<smem>>
    %874 = vector.broadcast %873 : f32 to vector<8x128xf32>
    %875 = arith.mulf %850, %874 : vector<8x128xf32>
    %c3_99 = arith.constant 3 : index
    %876 = memref.load %arg5[%c3_99] : memref<36xf32, #tpu.memory_space<smem>>
    %877 = vector.broadcast %876 : f32 to vector<8x128xf32>
    %878 = arith.mulf %852, %877 : vector<8x128xf32>
    %879 = arith.addf %875, %878 : vector<8x128xf32>
    %c6_100 = arith.constant 6 : index
    %880 = memref.load %arg5[%c6_100] : memref<36xf32, #tpu.memory_space<smem>>
    %881 = vector.broadcast %880 : f32 to vector<8x128xf32>
    %882 = arith.mulf %854, %881 : vector<8x128xf32>
    %883 = arith.addf %879, %882 : vector<8x128xf32>
    %c9_101 = arith.constant 9 : index
    %884 = memref.load %arg5[%c9_101] : memref<36xf32, #tpu.memory_space<smem>>
    %885 = vector.broadcast %884 : f32 to vector<8x128xf32>
    %886 = arith.mulf %856, %885 : vector<8x128xf32>
    %887 = arith.addf %883, %886 : vector<8x128xf32>
    %c12_102 = arith.constant 12 : index
    %888 = memref.load %arg5[%c12_102] : memref<36xf32, #tpu.memory_space<smem>>
    %889 = vector.broadcast %888 : f32 to vector<8x128xf32>
    %890 = arith.mulf %858, %889 : vector<8x128xf32>
    %891 = arith.addf %887, %890 : vector<8x128xf32>
    %c15_103 = arith.constant 15 : index
    %892 = memref.load %arg5[%c15_103] : memref<36xf32, #tpu.memory_space<smem>>
    %893 = vector.broadcast %892 : f32 to vector<8x128xf32>
    %894 = arith.mulf %860, %893 : vector<8x128xf32>
    %895 = arith.addf %891, %894 : vector<8x128xf32>
    %c18_104 = arith.constant 18 : index
    %896 = memref.load %arg5[%c18_104] : memref<36xf32, #tpu.memory_space<smem>>
    %897 = vector.broadcast %896 : f32 to vector<8x128xf32>
    %898 = arith.mulf %862, %897 : vector<8x128xf32>
    %899 = arith.addf %895, %898 : vector<8x128xf32>
    %c21_105 = arith.constant 21 : index
    %900 = memref.load %arg5[%c21_105] : memref<36xf32, #tpu.memory_space<smem>>
    %901 = vector.broadcast %900 : f32 to vector<8x128xf32>
    %902 = arith.mulf %864, %901 : vector<8x128xf32>
    %903 = arith.addf %899, %902 : vector<8x128xf32>
    %c24_106 = arith.constant 24 : index
    %904 = memref.load %arg5[%c24_106] : memref<36xf32, #tpu.memory_space<smem>>
    %905 = vector.broadcast %904 : f32 to vector<8x128xf32>
    %906 = arith.mulf %866, %905 : vector<8x128xf32>
    %907 = arith.addf %903, %906 : vector<8x128xf32>
    %c27_107 = arith.constant 27 : index
    %908 = memref.load %arg5[%c27_107] : memref<36xf32, #tpu.memory_space<smem>>
    %909 = vector.broadcast %908 : f32 to vector<8x128xf32>
    %910 = arith.mulf %868, %909 : vector<8x128xf32>
    %911 = arith.addf %907, %910 : vector<8x128xf32>
    %c30_108 = arith.constant 30 : index
    %912 = memref.load %arg5[%c30_108] : memref<36xf32, #tpu.memory_space<smem>>
    %913 = vector.broadcast %912 : f32 to vector<8x128xf32>
    %914 = arith.mulf %870, %913 : vector<8x128xf32>
    %915 = arith.addf %911, %914 : vector<8x128xf32>
    %c33_109 = arith.constant 33 : index
    %916 = memref.load %arg5[%c33_109] : memref<36xf32, #tpu.memory_space<smem>>
    %917 = vector.broadcast %916 : f32 to vector<8x128xf32>
    %918 = arith.mulf %872, %917 : vector<8x128xf32>
    %919 = arith.addf %915, %918 : vector<8x128xf32>
    %c0_110 = arith.constant 0 : index
    %920 = memref.load %arg6[%c0_110] : memref<3xf32, #tpu.memory_space<smem>>
    %921 = vector.broadcast %920 : f32 to vector<8x128xf32>
    %922 = arith.addf %919, %921 : vector<8x128xf32>
    %c1_111 = arith.constant 1 : index
    %923 = memref.load %arg5[%c1_111] : memref<36xf32, #tpu.memory_space<smem>>
    %924 = vector.broadcast %923 : f32 to vector<8x128xf32>
    %925 = arith.mulf %850, %924 : vector<8x128xf32>
    %c4_112 = arith.constant 4 : index
    %926 = memref.load %arg5[%c4_112] : memref<36xf32, #tpu.memory_space<smem>>
    %927 = vector.broadcast %926 : f32 to vector<8x128xf32>
    %928 = arith.mulf %852, %927 : vector<8x128xf32>
    %929 = arith.addf %925, %928 : vector<8x128xf32>
    %c7_113 = arith.constant 7 : index
    %930 = memref.load %arg5[%c7_113] : memref<36xf32, #tpu.memory_space<smem>>
    %931 = vector.broadcast %930 : f32 to vector<8x128xf32>
    %932 = arith.mulf %854, %931 : vector<8x128xf32>
    %933 = arith.addf %929, %932 : vector<8x128xf32>
    %c10_114 = arith.constant 10 : index
    %934 = memref.load %arg5[%c10_114] : memref<36xf32, #tpu.memory_space<smem>>
    %935 = vector.broadcast %934 : f32 to vector<8x128xf32>
    %936 = arith.mulf %856, %935 : vector<8x128xf32>
    %937 = arith.addf %933, %936 : vector<8x128xf32>
    %c13_115 = arith.constant 13 : index
    %938 = memref.load %arg5[%c13_115] : memref<36xf32, #tpu.memory_space<smem>>
    %939 = vector.broadcast %938 : f32 to vector<8x128xf32>
    %940 = arith.mulf %858, %939 : vector<8x128xf32>
    %941 = arith.addf %937, %940 : vector<8x128xf32>
    %c16_116 = arith.constant 16 : index
    %942 = memref.load %arg5[%c16_116] : memref<36xf32, #tpu.memory_space<smem>>
    %943 = vector.broadcast %942 : f32 to vector<8x128xf32>
    %944 = arith.mulf %860, %943 : vector<8x128xf32>
    %945 = arith.addf %941, %944 : vector<8x128xf32>
    %c19_117 = arith.constant 19 : index
    %946 = memref.load %arg5[%c19_117] : memref<36xf32, #tpu.memory_space<smem>>
    %947 = vector.broadcast %946 : f32 to vector<8x128xf32>
    %948 = arith.mulf %862, %947 : vector<8x128xf32>
    %949 = arith.addf %945, %948 : vector<8x128xf32>
    %c22_118 = arith.constant 22 : index
    %950 = memref.load %arg5[%c22_118] : memref<36xf32, #tpu.memory_space<smem>>
    %951 = vector.broadcast %950 : f32 to vector<8x128xf32>
    %952 = arith.mulf %864, %951 : vector<8x128xf32>
    %953 = arith.addf %949, %952 : vector<8x128xf32>
    %c25_119 = arith.constant 25 : index
    %954 = memref.load %arg5[%c25_119] : memref<36xf32, #tpu.memory_space<smem>>
    %955 = vector.broadcast %954 : f32 to vector<8x128xf32>
    %956 = arith.mulf %866, %955 : vector<8x128xf32>
    %957 = arith.addf %953, %956 : vector<8x128xf32>
    %c28_120 = arith.constant 28 : index
    %958 = memref.load %arg5[%c28_120] : memref<36xf32, #tpu.memory_space<smem>>
    %959 = vector.broadcast %958 : f32 to vector<8x128xf32>
    %960 = arith.mulf %868, %959 : vector<8x128xf32>
    %961 = arith.addf %957, %960 : vector<8x128xf32>
    %c31_121 = arith.constant 31 : index
    %962 = memref.load %arg5[%c31_121] : memref<36xf32, #tpu.memory_space<smem>>
    %963 = vector.broadcast %962 : f32 to vector<8x128xf32>
    %964 = arith.mulf %870, %963 : vector<8x128xf32>
    %965 = arith.addf %961, %964 : vector<8x128xf32>
    %c34_122 = arith.constant 34 : index
    %966 = memref.load %arg5[%c34_122] : memref<36xf32, #tpu.memory_space<smem>>
    %967 = vector.broadcast %966 : f32 to vector<8x128xf32>
    %968 = arith.mulf %872, %967 : vector<8x128xf32>
    %969 = arith.addf %965, %968 : vector<8x128xf32>
    %c1_123 = arith.constant 1 : index
    %970 = memref.load %arg6[%c1_123] : memref<3xf32, #tpu.memory_space<smem>>
    %971 = vector.broadcast %970 : f32 to vector<8x128xf32>
    %972 = arith.addf %969, %971 : vector<8x128xf32>
    %c2_124 = arith.constant 2 : index
    %973 = memref.load %arg5[%c2_124] : memref<36xf32, #tpu.memory_space<smem>>
    %974 = vector.broadcast %973 : f32 to vector<8x128xf32>
    %975 = arith.mulf %850, %974 : vector<8x128xf32>
    %c5_125 = arith.constant 5 : index
    %976 = memref.load %arg5[%c5_125] : memref<36xf32, #tpu.memory_space<smem>>
    %977 = vector.broadcast %976 : f32 to vector<8x128xf32>
    %978 = arith.mulf %852, %977 : vector<8x128xf32>
    %979 = arith.addf %975, %978 : vector<8x128xf32>
    %c8_126 = arith.constant 8 : index
    %980 = memref.load %arg5[%c8_126] : memref<36xf32, #tpu.memory_space<smem>>
    %981 = vector.broadcast %980 : f32 to vector<8x128xf32>
    %982 = arith.mulf %854, %981 : vector<8x128xf32>
    %983 = arith.addf %979, %982 : vector<8x128xf32>
    %c11_127 = arith.constant 11 : index
    %984 = memref.load %arg5[%c11_127] : memref<36xf32, #tpu.memory_space<smem>>
    %985 = vector.broadcast %984 : f32 to vector<8x128xf32>
    %986 = arith.mulf %856, %985 : vector<8x128xf32>
    %987 = arith.addf %983, %986 : vector<8x128xf32>
    %c14_128 = arith.constant 14 : index
    %988 = memref.load %arg5[%c14_128] : memref<36xf32, #tpu.memory_space<smem>>
    %989 = vector.broadcast %988 : f32 to vector<8x128xf32>
    %990 = arith.mulf %858, %989 : vector<8x128xf32>
    %991 = arith.addf %987, %990 : vector<8x128xf32>
    %c17_129 = arith.constant 17 : index
    %992 = memref.load %arg5[%c17_129] : memref<36xf32, #tpu.memory_space<smem>>
    %993 = vector.broadcast %992 : f32 to vector<8x128xf32>
    %994 = arith.mulf %860, %993 : vector<8x128xf32>
    %995 = arith.addf %991, %994 : vector<8x128xf32>
    %c20_130 = arith.constant 20 : index
    %996 = memref.load %arg5[%c20_130] : memref<36xf32, #tpu.memory_space<smem>>
    %997 = vector.broadcast %996 : f32 to vector<8x128xf32>
    %998 = arith.mulf %862, %997 : vector<8x128xf32>
    %999 = arith.addf %995, %998 : vector<8x128xf32>
    %c23_131 = arith.constant 23 : index
    %1000 = memref.load %arg5[%c23_131] : memref<36xf32, #tpu.memory_space<smem>>
    %1001 = vector.broadcast %1000 : f32 to vector<8x128xf32>
    %1002 = arith.mulf %864, %1001 : vector<8x128xf32>
    %1003 = arith.addf %999, %1002 : vector<8x128xf32>
    %c26_132 = arith.constant 26 : index
    %1004 = memref.load %arg5[%c26_132] : memref<36xf32, #tpu.memory_space<smem>>
    %1005 = vector.broadcast %1004 : f32 to vector<8x128xf32>
    %1006 = arith.mulf %866, %1005 : vector<8x128xf32>
    %1007 = arith.addf %1003, %1006 : vector<8x128xf32>
    %c29_133 = arith.constant 29 : index
    %1008 = memref.load %arg5[%c29_133] : memref<36xf32, #tpu.memory_space<smem>>
    %1009 = vector.broadcast %1008 : f32 to vector<8x128xf32>
    %1010 = arith.mulf %868, %1009 : vector<8x128xf32>
    %1011 = arith.addf %1007, %1010 : vector<8x128xf32>
    %c32_134 = arith.constant 32 : index
    %1012 = memref.load %arg5[%c32_134] : memref<36xf32, #tpu.memory_space<smem>>
    %1013 = vector.broadcast %1012 : f32 to vector<8x128xf32>
    %1014 = arith.mulf %870, %1013 : vector<8x128xf32>
    %1015 = arith.addf %1011, %1014 : vector<8x128xf32>
    %c35_135 = arith.constant 35 : index
    %1016 = memref.load %arg5[%c35_135] : memref<36xf32, #tpu.memory_space<smem>>
    %1017 = vector.broadcast %1016 : f32 to vector<8x128xf32>
    %1018 = arith.mulf %872, %1017 : vector<8x128xf32>
    %1019 = arith.addf %1015, %1018 : vector<8x128xf32>
    %c2_136 = arith.constant 2 : index
    %1020 = memref.load %arg6[%c2_136] : memref<3xf32, #tpu.memory_space<smem>>
    %1021 = vector.broadcast %1020 : f32 to vector<8x128xf32>
    %1022 = arith.addf %1019, %1021 : vector<8x128xf32>
    %1023 = vector.shape_cast %922 : vector<8x128xf32> to vector<1x8x128xf32>
    %1024 = vector.shape_cast %972 : vector<8x128xf32> to vector<1x8x128xf32>
    %1025 = vector.shape_cast %1022 : vector<8x128xf32> to vector<1x8x128xf32>
    %1026 = tpu.concatenate %1023, %1024, %1025 in 0 : vector<1x8x128xf32>, vector<1x8x128xf32>, vector<1x8x128xf32> -> vector<3x8x128xf32>
    %c0_137 = arith.constant 0 : index
    %c0_138 = arith.constant 0 : index
    %c0_139 = arith.constant 0 : index
    %1027 = vector.load %arg8[%c0_137, %c0_138, %c0_139] : memref<3x8x128xf32, #tpu.memory_space<vmem>>, vector<3x8x128xf32>
    tpu.vector_store %arg8[%c0_137, %c0_138, %c0_139], %1026 {strides = array<i32>} : memref<3x8x128xf32, #tpu.memory_space<vmem>>, vector<3x8x128xf32>,
    return
  }
  func.func @transform_0(%arg0: i32) -> i32 {
    %c0_i32 = arith.constant 0 : i32
    %c0_i32_0 = arith.constant 0 : i32
    return %c0_i32 : i32
  }
  func.func @transform_1(%arg0: i32) -> i32 {
    %c0_i32 = arith.constant 0 : i32
    %c0_i32_0 = arith.constant 0 : i32
    return %c0_i32 : i32
  }
  func.func @transform_2(%arg0: i32) -> i32 {
    %c0_i32 = arith.constant 0 : i32
    %c0_i32_0 = arith.constant 0 : i32
    return %c0_i32 : i32
  }
  func.func @transform_3(%arg0: i32) -> i32 {
    %c0_i32 = arith.constant 0 : i32
    %c0_i32_0 = arith.constant 0 : i32
    return %c0_i32 : i32
  }
  func.func @transform_4(%arg0: i32) -> i32 {
    %c0_i32 = arith.constant 0 : i32
    %c0_i32_0 = arith.constant 0 : i32
    return %c0_i32 : i32
  }
  func.func @transform_5(%arg0: i32) -> i32 {
    %c0_i32 = arith.constant 0 : i32
    %c0_i32_0 = arith.constant 0 : i32
    return %c0_i32 : i32
  }
  func.func @transform_6(%arg0: i32) -> (i32, i32, i32) {
    %c0_i32 = arith.constant 0 : i32
    %c0_i32_0 = arith.constant 0 : i32
    %c0_i32_1 = arith.constant 0 : i32
    return %c0_i32, %arg0, %c0_i32_0 : i32, i32, i32
  }
  func.func @transform_7(%arg0: i32) -> (i32, i32, i32) {
    %c0_i32 = arith.constant 0 : i32
    %c0_i32_0 = arith.constant 0 : i32
    %c0_i32_1 = arith.constant 0 : i32
    return %c0_i32, %arg0, %c0_i32_0 : i32, i32, i32
  }
}

</mosaic_0001>

<bundles_post_ra>
// kernel: tpu_custom_call.1
= control target key start
LH: loop header
LB: loop body
LE: loop exit
PB: predicated region body
PF: predicated region fallthrough
CT: control target
= control target key end

     0   :  { %s2654_s0 = inlined_call_operand.hbm [shape: f32[48], index: 0, kind: input, shape index: {}]   ;;  %s2655_s1 = inlined_call_operand.hbm [shape: f32[12], index: 1, kind: input, shape index: {}]   ;;  %s2656_s2 = inlined_call_operand.hbm [shape: f32[144], index: 2, kind: input, shape index: {}]   ;;  %s2657_s3 = inlined_call_operand.vmem [shape: f32[12], index: 3, kind: input, shape index: {}]   ;;  %s2658_s4 = inlined_call_operand.vmem [shape: f32[36], index: 4, kind: input, shape index: {}]   ;;  %s2659_s5 = inlined_call_operand.vmem [shape: f32[3], index: 5, kind: input, shape index: {}]   ;;  %s2660_s6 = inlined_call_operand.hbm [shape: f32[4,8,128], index: 6, kind: input, shape index: {}]   ;;  %s2661_s7 = inlined_call_operand.hbm [shape: f32[3,8,128], index: 7, kind: output, shape index: {}]  }
   0x1   :  { %2666 = sst [smem:[#allocation61_spill]] %s2661_s7 }
   0x2   :  { %12 = vsyncpa [#allocation5], 0 }
   0x3   :  { %13 = vsyncpa [#allocation8], 0 }
   0x4   :  { %14 = vsyncpa [#allocation6], 0 }
   0x5   :  { %15 = vsyncpa [#allocation12], 0 }
   0x6   :  { %16 = vsyncpa [#allocation3], 0  ;;  %s32_s26 = sshll.u32 %s2655_s1, 4  ;;  %s33_s26 = int_to_ptr.hbm [resolvable:$true] %s32_s26 }
   0x7   :  { %17 = vsyncpa [#allocation4], 0  ;;  %s59_s29 = sshll.u32 %s2658_s4, 4  ;;  %s1525_s30 = smov [#allocation7]   ;;  %s60_s29 = int_to_ptr.vmem [resolvable:$true] %s59_s29 }
   0x8   :  { %35 = dma.hbm_to_smem %s33_s26, 16, %s1525_s30, [#allocation8]  }
   0x9   :  { %s1526_s8 = smov [#allocation11]   ;;  %s23_s11 = sshll.u32 %s2654_s0, 4  ;;  %s24_s11 = int_to_ptr.hbm [resolvable:$true] %s23_s11 }
   0xa   :  { %62 = dma.vmem_to_smem %s60_s29, 16, %s1526_s8, [#allocation12]  }
   0xb   :  { %s41_s1 = sshll.u32 %s2656_s2, 4  ;;  %s1527_s14 = smov [#allocation2]   ;;  %s42_s1 = int_to_ptr.hbm [resolvable:$true] %s41_s1 }
   0xc   :  { %26 = dma.hbm_to_smem %s24_s11, 16, %s1527_s14, [#allocation5]  }
   0xd   :  { %s1528_s15 = smov [#allocation9]   ;;  %s50_s17 = sshll.u32 %s2657_s3, 4  ;;  %s51_s17 = int_to_ptr.vmem [resolvable:$true] %s50_s17 }
   0xe   :  { %44 = dma.hbm_to_smem %s42_s1, 32, %s1528_s15, [#allocation8]  }
   0xf   :  { %s68_s20 = sshll.u32 %s2659_s5, 4  ;;  %s1529_s0 = smov [#allocation10]   ;;  %s69_s20 = int_to_ptr.vmem [resolvable:$true] %s68_s20 }
  0x10   :  { %53 = dma.vmem_to_smem %s51_s17, 16, %s1529_s0, [#allocation6]  }
  0x11   :  { %s1530_s21 = smov [#allocation13]   ;;  %s76_s23 = sshll.u32 %s2660_s6, 4  ;;  %s77_s23 = int_to_ptr.hbm [resolvable:$true] %s76_s23 }
  0x12   :  { %71 = dma.vmem_to_smem %s69_s20, 16, %s1530_s21, [#allocation12]  }
  0x13   :  { %s1531_s24 = smov [#allocation14]   ;;  %s2662_s26 = smov 128  }
  0x14   :  { %s78_s25 = sshll.u32 %s1531_s24, 4  ;;  %s2663_s3 = smov 8   ;;  %s79_s25 = int_to_ptr.vmem [resolvable:$true] %s78_s25 }
  0x15   :  { %84 = dma.hbm_to_vmem [thread:$0]  %s77_s23, 512, %s79_s25, [#allocation3], %s2662_s26, %s2662_s26, %s2663_s3  }
  0x16   :  { %1513 = dma.done.wait [#allocation5], 16  }
  0x17   :  { %1514 = vsyncadd [#allocation5], 4294967280 }
  0x18   :  { %1515 = dma.done.wait [#allocation8], 48  }
  0x19   :  { %1516 = vsyncadd [#allocation8], 4294967248 }
  0x1a   :  { %1517 = dma.done.wait [#allocation6], 16  }
  0x1b   :  { %1518 = vsyncadd [#allocation6], 4294967280 }
  0x1c   :  { %1519 = dma.done.wait [#allocation12], 32  }
  0x1d   :  { %1520 = vsyncadd [#allocation12], 4294967264 }
  0x1e   :  { %1521 = dma.done.wait [#allocation3], 512  }
  0x1f   :  { %1522 = vsyncadd [#allocation3], 4294966784 }
  0x20   :  { %113 = sfence }
  0x21   :  { %s1599_s5 = sld [smem:[#allocation2]]  ;;  %v1717_v0 = vld [vmem:[#allocation14] sm:$0xff]  ;;  %v1719_v1 = vld [vmem:[#allocation14 + $0x8] sm:$0xff]  ;;  %v1735_v8 = vld [vmem:[#allocation14 + $0x10] sm:$0xff] }
  0x22   :  { %s1601_s6 = sld [smem:[#allocation2 + $0xc]]  ;;  %v1752_v17 = vld [vmem:[#allocation14 + $0x18] sm:$0xff] }
  0x23   :  { %s1603_s27 = sld [smem:[#allocation2 + $0x18]] }
  0x24   :  { %s1605_s28 = sld [smem:[#allocation2 + $0x24]] }
  0x25   :  { %s1607_s29 = sld [smem:[#allocation7]] }
  0x26   :  { %s1609_s30 = sld [smem:[#allocation2 + $0x1]] }
  0x27   :  { %s1611_s8 = sld [smem:[#allocation2 + $0xd]]  ;;  %v119_v2 = vstv %s1599_s5 }
  0x28   :  { %s1613_s9 = sld [smem:[#allocation2 + $0x19]]  ;;  %v122_v3 = vstv %s1601_s6  ;;  %v120_v6 = vmul.f32 %v119_v2, %v1717_v0 }
  0x29   :  { %s1615_s10 = sld [smem:[#allocation2 + $0x25]]  ;;  %v123_v7 = vmul.f32 %v122_v3, %v1719_v1  ;;  %v126_v9 = vstv %s1603_s27 }
  0x2a   :  { %s1617_s11 = sld [smem:[#allocation7 + $0x1]]  ;;  %v127_v14 = vmul.f32 %v126_v9, %v1735_v8  ;;  %v130_v18 = vstv %s1605_s28 }
  0x2b   :  { %s1619_s12 = sld [smem:[#allocation2 + $0x2]]  ;;  %v124_v13 = vadd.f32 %v123_v7, %v120_v6  ;;  %v131_v25 = vmul.f32 %v130_v18, %v1752_v17  ;;  %v134_v36 = vstv %s1607_s29 }
  0x2c   :  { %s1621_s13 = sld [smem:[#allocation2 + $0xe]]  ;;  %v137_v4 = vstv %s1609_s30 }
  0x2d   :  { %s1623_s1 = sld [smem:[#allocation2 + $0x1a]]  ;;  %v140_v5 = vstv %s1611_s8  ;;  %v138_v10 = vmul.f32 %v137_v4, %v1717_v0  ;;  %v128_v24 = vadd.f32 %v127_v14, %v124_v13 }
  0x2e   :  { %s1625_s14 = sld [smem:[#allocation2 + $0x26]]  ;;  %v141_v11 = vmul.f32 %v140_v5, %v1719_v1  ;;  %v144_v12 = vstv %s1613_s9 }
  0x2f   :  { %s1627_s15 = sld [smem:[#allocation7 + $0x2]]  ;;  %v145_v20 = vmul.f32 %v144_v12, %v1735_v8  ;;  %v148_v21 = vstv %s1615_s10  ;;  %v132_v35 = vadd.f32 %v131_v25, %v128_v24 }
  0x30   :  { %2667 = sst [smem:[#allocation22_spill]] %s1617_s11  ;;  %v142_v19 = vadd.f32 %v141_v11, %v138_v10  ;;  %v149_v29 = vmul.f32 %v148_v21, %v1752_v17 }
  0x31   :  { %s1629_s4 = sld [smem:[#allocation2 + $0x3]]  ;;  %v155_v15 = vstv %s1619_s12  ;;  %v135_v63 = vadd.f32 %v134_v36, %v132_v35 }
  0x32   :  { %s1631_s16 = sld [smem:[#allocation2 + $0xf]]  ;;  %v158_v16 = vstv %s1621_s13  ;;  %v156_v22 = vmul.f32 %v155_v15, %v1717_v0  ;;  %v146_v28 = vadd.f32 %v145_v20, %v142_v19 }
  0x33   :  { %s1633_s17 = sld [smem:[#allocation2 + $0x1b]]  ;;  %v159_v23 = vmul.f32 %v158_v16, %v1719_v1  ;;  %v162_v26 = vstv %s1623_s1 }
  0x34   :  { %s1635_s18 = sld [smem:[#allocation2 + $0x27]]  ;;  %v163_v32 = vmul.f32 %v162_v26, %v1735_v8  ;;  %v166_v37 = vstv %s1625_s14  ;;  %v150_v47 = vadd.f32 %v149_v29, %v146_v28 }
  0x35   :  { %2668 = sst [smem:[#allocation23_spill]] %s1627_s15  ;;  %v160_v31 = vadd.f32 %v159_v23, %v156_v22  ;;  %v167_v49 = vmul.f32 %v166_v37, %v1752_v17 }
  0x36   :  { %s1637_s19 = sld [smem:[#allocation7 + $0x3]] }
  0x37   :  { %s1639_s20 = sld [smem:[#allocation2 + $0x4]]  ;;  %v173_v27 = vstv %s1629_s4  ;;  %v164_v48 = vadd.f32 %v163_v32, %v160_v31 }
  0x38   :  { %s1641_s0 = sld [smem:[#allocation2 + $0x10]]  ;;  %v176_v30 = vstv %s1631_s16  ;;  %v174_v38 = vmul.f32 %v173_v27, %v1717_v0  ;;  %v1845_v27 = vmax.f32 %v135_v63, 0.0 }
  0x39   :  { %s1643_s21 = sld [smem:[#allocation2 + $0x1c]]  ;;  %v177_v39 = vmul.f32 %v176_v30, %v1719_v1  ;;  %v180_v40 = vstv %s1633_s17  ;;  %v168_v3 = vadd.f32 %v167_v49, %v164_v48 }
  0x3a   :  { %2669 = sst [smem:[#allocation24_spill]] %s1635_s18  ;;  %v181_v52 = vmul.f32 %v180_v40, %v1735_v8 }
  0x3b   :  { %s1645_s2 = sld [smem:[#allocation2 + $0x28]]  ;;  %v178_v59 = vadd.f32 %v177_v39, %v174_v38 }
  0x3c   :  { %2670 = sst [smem:[#allocation25_spill]] %s1637_s19 }
  0x3d   :  { %s1647_s22 = sld [smem:[#allocation7 + $0x4]]  ;;  %v191_v33 = vstv %s1639_s20  ;;  %v182_v14 = vadd.f32 %v181_v52, %v178_v59 }
  0x3e   :  { %s1649_s23 = sld [smem:[#allocation2 + $0x5]]  ;;  %v194_v34 = vstv %s1641_s0  ;;  %v192_v43 = vmul.f32 %v191_v33, %v1717_v0 }
  0x3f   :  { %2671 = sst [smem:[#allocation26_spill]] %s1643_s21  ;;  %v195_v44 = vmul.f32 %v194_v34, %v1719_v1 }
  0x40   :  { %s1651_s24 = sld [smem:[#allocation2 + $0x11]] }
  0x41   :  { %2672 = sst [smem:[#allocation27_spill]] %s1645_s2  ;;  %v196_v60 = vadd.f32 %v195_v44, %v192_v43 }
  0x42   :  { %s1653_s25 = sld [smem:[#allocation2 + $0x1d]] }
  0x43   :  { %2673 = sst [smem:[#allocation28_spill]] %s1647_s22 }
  0x44   :  { %s1655_s26 = sld [smem:[#allocation2 + $0x29]]  ;;  %v209_v41 = vstv %s1649_s23 }
  0x45   :  { %s1657_s3 = sld [smem:[#allocation7 + $0x5]]  ;;  %v210_v53 = vmul.f32 %v209_v41, %v1717_v0 }
  0x46   :  { %s1659_s7 = sld [smem:[#allocation2 + $0x6]]  ;;  %v212_v42 = vstv %s1651_s24 }
  0x47   :  { %s1661_s19 = sld [smem:[#allocation2 + $0x12]]  ;;  %v213_v54 = vmul.f32 %v212_v42, %v1719_v1 }
  0x48   :  { %2674 = sst [smem:[#allocation29_spill]] %s1653_s25 }
  0x49   :  { %s1663_s15 = sld [smem:[#allocation2 + $0x1e]]  ;;  %v214_v5 = vadd.f32 %v213_v54, %v210_v53 }
  0x4a   :  { %2675 = sst [smem:[#allocation30_spill]] %s1655_s26 }
  0x4b   :  { %2676 = sst [smem:[#allocation31_spill]] %s1657_s3 }
  0x4c   :  { %2677 = sst [smem:[#allocation32_spill]] %s1659_s7 }
  0x4d   :  { %2678 = sst [smem:[#allocation33_spill]] %s1661_s19 }
  0x4e   :  { %s1665_s18 = sld [smem:[#allocation2 + $0x2a]] }
  0x4f   :  { %2679 = sst [smem:[#allocation34_spill]] %s1663_s15 }
  0x50   :  { %s1667_s2 = sld [smem:[#allocation7 + $0x6]] }
  0x51   :  { %s1669_s22 = sld [smem:[#allocation2 + $0x7]] }
  0x52   :  { %s1671_s11 = sld [smem:[#allocation2 + $0x13]] }
  0x53   :  { %s1673_s21 = sld [smem:[#allocation2 + $0x1f]] }
  0x54   :  { %2680 = sst [smem:[#allocation35_spill]] %s1665_s18 }
  0x55   :  { %s1675_s25 = sld [smem:[#allocation2 + $0x2b]] }
  0x56   :  { %2681 = sst [smem:[#allocation36_spill]] %s1667_s2 }
  0x57   :  { %s1677_s26 = sld [smem:[#allocation7 + $0x7]]  ;;  %v245_v7 = vstv %s1669_s22 }
  0x58   :  { %2682 = sst [smem:[#allocation37_spill]] %s1671_s11  ;;  %v246_v20 = vmul.f32 %v245_v7, %v1717_v0 }
  0x59   :  { %2683 = sst [smem:[#allocation38_spill]] %s1673_s21 }
  0x5a   :  { %s1679_s3 = sld [smem:[#allocation2 + $0x8]] }
  0x5b   :  { %2684 = sst [smem:[#allocation39_spill]] %s1675_s25 }
  0x5c   :  { %s1681_s7 = sld [smem:[#allocation2 + $0x14]] }
  0x5d   :  { %2685 = sst [smem:[#allocation40_spill]] %s1677_s26 }
  0x5e   :  { %s1683_s19 = sld [smem:[#allocation2 + $0x20]] }
  0x5f   :  { %s1685_s15 = sld [smem:[#allocation2 + $0x2c]] }
  0x60   :  { %2686 = sst [smem:[#allocation41_spill]] %s1679_s3 }
  0x61   :  { %s1687_s18 = sld [smem:[#allocation7 + $0x8]] }
  0x62   :  { %2687 = sst [smem:[#allocation42_spill]] %s1681_s7 }
  0x63   :  { %s1689_s2 = sld [smem:[#allocation2 + $0x9]] }
  0x64   :  { %2688 = sst [smem:[#allocation43_spill]] %s1683_s19 }
  0x65   :  { %2689 = sst [smem:[#allocation44_spill]] %s1685_s15 }
  0x66   :  { %s1691_s11 = sld [smem:[#allocation2 + $0x15]] }
  0x67   :  { %2690 = sst [smem:[#allocation45_spill]] %s1687_s18 }
  0x68   :  { %s1693_s21 = sld [smem:[#allocation2 + $0x21]] }
  0x69   :  { %2691 = sst [smem:[#allocation46_spill]] %s1689_s2 }
  0x6a   :  { %s1695_s25 = sld [smem:[#allocation2 + $0x2d]] }
  0x6b   :  { %s1697_s26 = sld [smem:[#allocation7 + $0x9]] }
  0x6c   :  { %2692 = sst [smem:[#allocation47_spill]] %s1691_s11 }
  0x6d   :  { %s1699_s7 = sld [smem:[#allocation2 + $0xa]] }
  0x6e   :  { %s1701_s19 = sld [smem:[#allocation2 + $0x16]] }
  0x6f   :  { %s1703_s15 = sld [smem:[#allocation2 + $0x22]] }
  0x70   :  { %2693 = sst [smem:[#allocation48_spill]] %s1695_s25 }
  0x71   :  { %2694 = sst [smem:[#allocation49_spill]] %s1697_s26 }
  0x72   :  { %s1705_s18 = sld [smem:[#allocation2 + $0x2e]] }
  0x73   :  { %s1707_s2 = sld [smem:[#allocation7 + $0xa]] }
  0x74   :  { %s1709_s11 = sld [smem:[#allocation2 + $0xb]] }
  0x75   :  { %2695 = sst [smem:[#allocation50_spill]] %s1703_s15 }
  0x76   :  { %s1711_s3 = sld [smem:[#allocation2 + $0x17]] }
  0x77   :  { %s1713_s25 = sld [smem:[#allocation2 + $0x23]] }
  0x78   :  { %2696 = sst [smem:[#allocation51_spill]] %s1705_s18 }
  0x79   :  { %2697 = sst [smem:[#allocation52_spill]] %s1707_s2 }
  0x7a   :  { %s1715_s26 = sld [smem:[#allocation2 + $0x2f]] }
  0x7b   :  { %s1723_s15 = sld [smem:[#allocation7 + $0xb]] }
  0x7c   :  { %s1725_s18 = sld [smem:[#allocation9]] }
  0x7d   :  { %s1729_s2 = sld [smem:[#allocation9 + $0xc]] }
  0x7e   :  { %s1738_s5 = sld [smem:[#allocation9 + $0x24]] }
  0x7f   :  { %s1742_s6 = sld [smem:[#allocation9 + $0x30]] }
  0x80   :  { %2698 = sst [smem:[#allocation53_spill]] %s1715_s26 }
  0x81   :  { %2699 = sst [smem:[#allocation54_spill]] %s1723_s15 }
  0x82   :  { %s1733_s26 = sld [smem:[#allocation9 + $0x18]]  ;;  %v347_v42 = vstv %s1725_s18 }
  0x83   :  { %s1745_s30 = sld [smem:[#allocation9 + $0x3c]]  ;;  %v350_v43 = vstv %s1729_s2  ;;  %v348_v54 = vmul.f32 %v347_v42, %v1845_v27 }
  0x84   :  { %s1750_s27 = sld [smem:[#allocation9 + $0x48]] }
  0x85   :  { %s1755_s8 = sld [smem:[#allocation9 + $0x54]] }
  0x86   :  { %s1758_s9 = sld [smem:[#allocation9 + $0x60]] }
  0x87   :  { %s1763_s12 = sld [smem:[#allocation9 + $0x6c]] }
  0x88   :  { %s1767_s28 = sld [smem:[#allocation9 + $0x78]] }
  0x89   :  { %s1770_s13 = sld [smem:[#allocation9 + $0x84]] }
  0x8a   :  { %s1774_s10 = sld [smem:[#allocation10]] }
  0x8b   :  { %2700 = sst [smem:[#allocation55_spill]] %s1755_s8 }
  0x8c   :  { %2701 = sst [smem:[#allocation56_spill]] %s1758_s9 }
  0x8d   :  { %2702 = sst [smem:[#allocation57_spill]] %s1763_s12 }
  0x8e   :  { %2703 = sst [smem:[#allocation58_spill]] %s1767_s28 }
  0x8f   :  { %2704 = sst [smem:[#allocation59_spill]] %s1770_s13 }
  0x90   :  { %2705 = sst [smem:[#allocation60_spill]] %s1774_s10 }
  0x91   :  { %s2706_s12 = sld [smem:[#allocation32_spill]] }
  0x92   :  { %s2707_s1 = sld [smem:[#allocation33_spill]] }
  0x93   :  { %s1779_s28 = sld [smem:[#allocation9 + $0x1]] }
  0x94   :  { %s2708_s4 = sld [smem:[#allocation26_spill]] }
  0x95   :  { %s1784_s13 = sld [smem:[#allocation9 + $0xd]] }
  0x96   :  { %s2709_s16 = sld [smem:[#allocation22_spill]] }
  0x97   :  { %s1790_s10 = sld [smem:[#allocation9 + $0x19]]  ;;  %v227_v45 = vstv %s2706_s12 }
  0x98   :  { %s2710_s20 = sld [smem:[#allocation24_spill]]  ;;  %v230_v46 = vstv %s2707_s1  ;;  %v228_v57 = vmul.f32 %v227_v45, %v1717_v0 }
  0x99   :  { %s2711_s0 = sld [smem:[#allocation29_spill]]  ;;  %v231_v58 = vmul.f32 %v230_v46, %v1719_v1 }
  0x9a   :  { %s1796_s29 = sld [smem:[#allocation9 + $0x25]]  ;;  %v198_v50 = vstv %s2708_s4 }
  0x9b   :  { %s2712_s14 = sld [smem:[#allocation34_spill]]  ;;  %v199_v61 = vmul.f32 %v198_v50, %v1735_v8  ;;  %v232_v12 = vadd.f32 %v231_v58, %v228_v57  ;;  %v354_v57 = vstv %s1733_s26 }
  0x9c   :  { %s1800_s17 = sld [smem:[#allocation9 + $0x31]]  ;;  %v152_v51 = vstv %s2709_s16 }
  0x9d   :  { %s2713_s23 = sld [smem:[#allocation27_spill]]  ;;  %v153_v2 = vadd.f32 %v152_v51, %v150_v47  ;;  %v200_v15 = vadd.f32 %v199_v61, %v196_v60 }
  0x9e   :  { %s1806_s24 = sld [smem:[#allocation9 + $0x3d]]  ;;  %v184_v55 = vstv %s2710_s20 }
  0x9f   :  { %v216_v56 = vstv %s2711_s0  ;;  %s2715_s12 = sld [smem:[#allocation37_spill]]  ;;  %v185_v10 = vmul.f32 %v184_v55, %v1752_v17  ;;  %v1849_v31 = vmax.f32 %v153_v2, 0.0 }
  0xa0   :  { %s1812_s1 = sld [smem:[#allocation9 + $0x49]]  ;;  %v217_v6 = vmul.f32 %v216_v56, %v1735_v8 }
  0xa1   :  { %s2717_s4 = sld [smem:[#allocation30_spill]]  ;;  %v234_v62 = vstv %s2712_s14  ;;  %v186_v29 = vadd.f32 %v185_v10, %v182_v14  ;;  %v351_v55 = vmul.f32 %v350_v43, %v1849_v31  ;;  %v288_v14 = vstv %s1693_s21 }
  0xa2   :  { %s1816_s16 = sld [smem:[#allocation9 + $0x55]]  ;;  %v235_v13 = vmul.f32 %v234_v62, %v1735_v8  ;;  %v218_v22 = vadd.f32 %v217_v6, %v214_v5 }
  0xa3   :  { %s2719_s20 = sld [smem:[#allocation35_spill]]  ;;  %v202_v4 = vstv %s2713_s23  ;;  %v352_v6 = vadd.f32 %v351_v55, %v348_v54 }
  0xa4   :  { %2714 = sst [smem:[#allocation32_spill]] %s1806_s24  ;;  %v203_v16 = vmul.f32 %v202_v4, %v1752_v17  ;;  %v236_v25 = vadd.f32 %v235_v13, %v232_v12  ;;  %v358_v12 = vstv %s1738_s5 }
  0xa5   :  { %s1819_s0 = sld [smem:[#allocation9 + $0x61]]  ;;  %v248_v9 = vstv %s2715_s12 }
  0xa6   :  { %2716 = sst [smem:[#allocation33_spill]] %s1812_s1  ;;  %v249_v21 = vmul.f32 %v248_v9, %v1719_v1  ;;  %v204_v30 = vadd.f32 %v203_v16, %v200_v15  ;;  %v397_v15 = vstv %s1779_s28  ;;  %v400_v16 = vstv %s1784_s13 }
  0xa7   :  { %s2721_s15 = sld [smem:[#allocation23_spill]]  ;;  %v220_v11 = vstv %s2717_s4 }
  0xa8   :  { %2718 = sst [smem:[#allocation26_spill]] %s1816_s16  ;;  %v221_v23 = vmul.f32 %v220_v11, %v1752_v17  ;;  %v250_v34 = vadd.f32 %v249_v21, %v246_v20  ;;  %v299_v20 = vstv %s1699_s7  ;;  %v302_v21 = vstv %s1701_s19 }
  0xa9   :  { %s1824_s1 = sld [smem:[#allocation9 + $0x6d]]  ;;  %v238_v18 = vstv %s2719_s20 }
  0xaa   :  { %s2723_s14 = sld [smem:[#allocation38_spill]]  ;;  %v239_v26 = vmul.f32 %v238_v18, %v1752_v17  ;;  %v222_v36 = vadd.f32 %v221_v23, %v218_v22 }
  0xab   :  { %2720 = sst [smem:[#allocation22_spill]] %s1819_s0 }
  0xac   :  { %s1829_s16 = sld [smem:[#allocation9 + $0x79]]  ;;  %v240_v41 = vadd.f32 %v239_v26, %v236_v25  ;;  %v289_v26 = vmul.f32 %v288_v14, %v1735_v8 }
  0xad   :  { %s1833_s23 = sld [smem:[#allocation9 + $0x85]]  ;;  %v170_v19 = vstv %s2721_s15 }
  0xae   :  { %s2726_s22 = sld [smem:[#allocation25_spill]]  ;;  %v171_v28 = vadd.f32 %v170_v19, %v168_v3 }
  0xaf   :  { %2722 = sst [smem:[#allocation24_spill]] %s1824_s1 }
  0xb0   :  { %s2727_s12 = sld [smem:[#allocation28_spill]]  ;;  %v252_v24 = vstv %s2723_s14  ;;  %v1869_v47 = vmax.f32 %v171_v28, 0.0  ;;  %v362_v28 = vstv %s1742_s6 }
  0xb1   :  { %s1838_s4 = sld [smem:[#allocation10 + $0x1]]  ;;  %v253_v35 = vmul.f32 %v252_v24, %v1735_v8 }
  0xb2   :  { %2724 = sst [smem:[#allocation29_spill]] %s1829_s16  ;;  %v355_v7 = vmul.f32 %v354_v57, %v1869_v47 }
  0xb3   :  { %2725 = sst [smem:[#allocation34_spill]] %s1833_s23  ;;  %v254_v48 = vadd.f32 %v253_v35, %v250_v34  ;;  %v303_v34 = vmul.f32 %v302_v21, %v1719_v1  ;;  %v404_v35 = vstv %s1790_s10 }
  0xb4   :  { %s1842_s16 = sld [smem:[#allocation9 + $0x2]]  ;;  %v188_v32 = vstv %s2726_s22  ;;  %v356_v24 = vadd.f32 %v355_v7, %v352_v6  ;;  %v412_v7 = vstv %s1800_s17 }
  0xb5   :  { %s2729_s1 = sld [smem:[#allocation39_spill]]  ;;  %v189_v44 = vadd.f32 %v188_v32, %v186_v29  ;;  %v398_v29 = vmul.f32 %v397_v15, %v1845_v27 }
  0xb6   :  { %s2730_s20 = sld [smem:[#allocation41_spill]]  ;;  %v206_v33 = vstv %s2727_s12 }
  0xb7   :  { %2728 = sst [smem:[#allocation27_spill]] %s1838_s4  ;;  %v207_v45 = vadd.f32 %v206_v33, %v204_v30  ;;  %v1888_v60 = vmax.f32 %v189_v44, 0.0  ;;  %v401_v30 = vmul.f32 %v400_v16, %v1849_v31  ;;  %v300_v33 = vmul.f32 %v299_v20, %v1717_v0 }
  0xb8   :  { %s2731_s15 = sld [smem:[#allocation42_spill]] }
  0xb9   :  { %s1847_s23 = sld [smem:[#allocation9 + $0xe]]  ;;  %v1890_v61 = vmax.f32 %v207_v45, 0.0  ;;  %v359_v25 = vmul.f32 %v358_v12, %v1888_v60  ;;  %v366_v45 = vstv %s1745_s30 }
  0xba   :  { %s2732_s0 = sld [smem:[#allocation31_spill]] }
  0xbb   :  { %s1851_s14 = sld [smem:[#allocation9 + $0x1a]]  ;;  %v256_v37 = vstv %s2729_s1  ;;  %v360_v42 = vadd.f32 %v359_v25, %v356_v24  ;;  %v363_v43 = vmul.f32 %v362_v28, %v1890_v61 }
  0xbc   :  { %s2734_s4 = sld [smem:[#allocation36_spill]]  ;;  %v263_v38 = vstv %s2730_s20  ;;  %v257_v49 = vmul.f32 %v256_v37, %v1752_v17 }
  0xbd   :  { %s1856_s9 = sld [smem:[#allocation9 + $0x26]]  ;;  %v264_v50 = vmul.f32 %v263_v38, %v1717_v0  ;;  %v364_v57 = vadd.f32 %v363_v43, %v360_v42 }
  0xbe   :  { %v266_v39 = vstv %s2731_s15  ;;  %s1861_s24 = sld [smem:[#allocation9 + $0x32]]  ;;  %v258_v62 = vadd.f32 %v257_v49, %v254_v48  ;;  %v405_v48 = vmul.f32 %v404_v35, %v1869_v47 }
  0xbf   :  { %s2735_s8 = sld [smem:[#allocation43_spill]]  ;;  %v267_v51 = vmul.f32 %v266_v39, %v1719_v1 }
  0xc0   :  { %v224_v40 = vstv %s2732_s0  ;;  %s2736_s22 = sld [smem:[#allocation44_spill]] }
  0xc1   :  { %2733 = sst [smem:[#allocation37_spill]] %s1851_s14  ;;  %v225_v52 = vadd.f32 %v224_v40, %v222_v36  ;;  %v268_v63 = vadd.f32 %v267_v51, %v264_v50  ;;  %v317_v40 = vstv %s1709_s11  ;;  %v304_v50 = vadd.f32 %v303_v34, %v300_v33 }
  0xc2   :  { %s1866_s14 = sld [smem:[#allocation9 + $0x3e]]  ;;  %v242_v46 = vstv %s2734_s4  ;;  %v318_v54 = vmul.f32 %v317_v40, %v1717_v0 }
  0xc3   :  { %s2737_s12 = sld [smem:[#allocation46_spill]]  ;;  %v243_v56 = vadd.f32 %v242_v46, %v240_v41  ;;  %v1899_v5 = vmax.f32 %v225_v52, 0.0  ;;  %v320_v41 = vstv %s1711_s3  ;;  %v402_v46 = vadd.f32 %v401_v30, %v398_v29 }
  0xc4   :  { %s1871_s1 = sld [smem:[#allocation9 + $0x4a]]  ;;  %v408_v52 = vstv %s1796_s29  ;;  %v321_v55 = vmul.f32 %v320_v41, %v1719_v1  ;;  %v458_v34 = vstv %s1856_s9 }
  0xc5   :  { %s1876_s18 = sld [smem:[#allocation9 + $0x56]]  ;;  %v270_v53 = vstv %s2735_s8  ;;  %v1906_v11 = vmax.f32 %v243_v56, 0.0  ;;  %v324_v56 = vstv %s1713_s25  ;;  %v459_v43 = vmul.f32 %v458_v34, %v1888_v60 }
  0xc6   :  { %s2738_s2 = sld [smem:[#allocation47_spill]]  ;;  %v274_v58 = vstv %s2736_s22  ;;  %v271_v2 = vmul.f32 %v270_v53, %v1735_v8 }
  0xc7   :  { %s2739_s0 = sld [smem:[#allocation40_spill]]  ;;  %v275_v9 = vmul.f32 %v274_v58, %v1752_v17  ;;  %v367_v58 = vmul.f32 %v366_v45, %v1899_v5 }
  0xc8   :  { %s1881_s4 = sld [smem:[#allocation9 + $0x62]]  ;;  %v272_v19 = vadd.f32 %v271_v2, %v268_v63  ;;  %v370_v2 = vstv %s1750_s27 }
  0xc9   :  { %s1884_s20 = sld [smem:[#allocation9 + $0x6e]]  ;;  %v281_v59 = vstv %s2737_s12  ;;  %v368_v15 = vadd.f32 %v367_v58, %v364_v57  ;;  %v371_v16 = vmul.f32 %v370_v2, %v1906_v11 }
  0xca   :  { %s1892_s15 = sld [smem:[#allocation9 + $0x7a]]  ;;  %v282_v10 = vmul.f32 %v281_v59, %v1717_v0  ;;  %v276_v36 = vadd.f32 %v275_v9, %v272_v19  ;;  %v447_v59 = vstv %s1842_s16  ;;  %v409_v0 = vmul.f32 %v408_v52, %v1888_v60 }
  0xcb   :  { %s1896_s26 = sld [smem:[#allocation9 + $0x86]]  ;;  %v322_v9 = vadd.f32 %v321_v55, %v318_v54  ;;  %v448_v12 = vmul.f32 %v447_v59, %v1845_v27 }
  0xcc   :  { %v284_v3 = vstv %s2738_s2  ;;  %s1902_s8 = sld [smem:[#allocation10 + $0x2]] }
  0xcd   :  { %v260_v4 = vstv %s2739_s0  ;;  %s2742_s22 = sld [smem:[#allocation45_spill]]  ;;  %v285_v13 = vmul.f32 %v284_v3, %v1719_v1  ;;  %v406_v3 = vadd.f32 %v405_v48, %v402_v46  ;;  %v462_v48 = vstv %s1861_s24 }
  0xce   :  { %s2743_s12 = sld [smem:[#allocation48_spill]]  ;;  %v261_v18 = vadd.f32 %v260_v4, %v258_v62  ;;  %v450_v62 = vstv %s1847_s23 }
  0xcf   :  { %s1909_s2 = sld [smem:[#allocation9 + $0x3]]  ;;  %v286_v32 = vadd.f32 %v285_v13, %v282_v10  ;;  %v325_v10 = vmul.f32 %v324_v56, %v1735_v8  ;;  %v451_v13 = vmul.f32 %v450_v62, %v1849_v31  ;;  %v410_v20 = vadd.f32 %v409_v0, %v406_v3 }
  0xd0   :  { %s1915_s0 = sld [smem:[#allocation9 + $0xf]]  ;;  %v1939_v39 = vmax.f32 %v261_v18, 0.0  ;;  %v463_v56 = vmul.f32 %v462_v48, %v1890_v61  ;;  %v466_v62 = vstv %s1866_s14 }
  0xd1   :  { %2740 = sst [smem:[#allocation30_spill]] %s1896_s26  ;;  %v290_v49 = vadd.f32 %v289_v26, %v286_v32  ;;  %v326_v25 = vadd.f32 %v325_v10, %v322_v9  ;;  %v452_v28 = vadd.f32 %v451_v13, %v448_v12  ;;  %v372_v32 = vadd.f32 %v371_v16, %v368_v15 }
  0xd2   :  { %2741 = sst [smem:[#allocation35_spill]] %s1902_s8  ;;  %v467_v9 = vmul.f32 %v466_v62, %v1899_v5  ;;  %v470_v12 = vstv %s1871_s1 }
  0xd3   :  { %s1919_s8 = sld [smem:[#allocation9 + $0x1b]]  ;;  %v278_v22 = vstv %s2742_s22 }
  0xd4   :  { %v292_v23 = vstv %s2743_s12  ;;  %s2744_s5 = sld [smem:[#allocation50_spill]]  ;;  %v279_v63 = vadd.f32 %v278_v22, %v276_v36 }
  0xd5   :  { %s1924_s26 = sld [smem:[#allocation9 + $0x27]]  ;;  %v293_v37 = vmul.f32 %v292_v23, %v1752_v17  ;;  %v497_v3 = vstv %s1909_s2 }
  0xd6   :  { %s1930_s7 = sld [smem:[#allocation9 + $0x33]]  ;;  %v1990_v23 = vmax.f32 %v279_v63, 0.0  ;;  %v500_v0 = vstv %s1915_s0  ;;  %v498_v13 = vmul.f32 %v497_v3, %v1845_v27 }
  0xd7   :  { %s2745_s19 = sld [smem:[#allocation49_spill]]  ;;  %v294_v1 = vadd.f32 %v293_v37, %v290_v49 }
  0xd8   :  { %s1935_s21 = sld [smem:[#allocation9 + $0x3f]] }
  0xd9   :  { %s1941_s6 = sld [smem:[#allocation9 + $0x4b]] }
  0xda   :  { %v306_v38 = vstv %s2744_s5  ;;  %s2746_s28 = sld [smem:[#allocation51_spill]] }
  0xdb   :  { %s1946_s13 = sld [smem:[#allocation9 + $0x57]]  ;;  %v307_v51 = vmul.f32 %v306_v38, %v1735_v8  ;;  %v413_v8 = vmul.f32 %v412_v7, %v1890_v61 }
  0xdc   :  { %s1951_s10 = sld [smem:[#allocation9 + $0x63]]  ;;  %v512_v48 = vstv %s1930_s7 }
  0xdd   :  { %v296_v44 = vstv %s2745_s19  ;;  %s1955_s3 = sld [smem:[#allocation9 + $0x6f]]  ;;  %v308_v4 = vadd.f32 %v307_v51, %v304_v50  ;;  %v414_v36 = vadd.f32 %v413_v8, %v410_v20 }
  0xde   :  { %s1961_s11 = sld [smem:[#allocation9 + $0x7b]]  ;;  %v297_v21 = vadd.f32 %v296_v44, %v294_v1  ;;  %v516_v3 = vstv %s1935_s21 }
  0xdf   :  { %s1966_s30 = sld [smem:[#allocation9 + $0x87]] }
  0xe0   :  { %v310_v53 = vstv %s2746_s28  ;;  %s2750_s22 = sld [smem:[#allocation53_spill]] }
  0xe1   :  { %s2751_s29 = sld [smem:[#allocation37_spill]]  ;;  %v311_v6 = vmul.f32 %v310_v53, %v1752_v17 }
  0xe2   :  { %s1970_s12 = sld [smem:[#allocation10 + $0x3]] }
  0xe3   :  { %2747 = sst [smem:[#allocation23_spill]] %s1955_s3  ;;  %v312_v22 = vadd.f32 %v311_v6, %v308_v4 }
  0xe4   :  { %2748 = sst [smem:[#allocation38_spill]] %s1961_s11 }
  0xe5   :  { %2749 = sst [smem:[#allocation25_spill]] %s1966_s30 }
  0xe6   :  { %s2753_s5 = sld [smem:[#allocation55_spill]]  ;;  %v328_v14 = vstv %s2750_s22 }
  0xe7   :  { %s1974_s25 = sld [smem:[#allocation9 + $0x4]]  ;;  %v454_v18 = vstv %s2751_s29  ;;  %v329_v26 = vmul.f32 %v328_v14, %v1752_v17  ;;  %v2008_v17 = vmax.f32 %v297_v21, 0.0  ;;  %v501_v14 = vmul.f32 %v500_v0, %v1849_v31 }
  0xe8   :  { %2752 = sst [smem:[#allocation28_spill]] %s1970_s12  ;;  %v455_v29 = vmul.f32 %v454_v18, %v1869_v47  ;;  %v471_v21 = vmul.f32 %v470_v12, %v1906_v11 }
  0xe9   :  { %s2754_s16 = sld [smem:[#allocation32_spill]]  ;;  %v330_v41 = vadd.f32 %v329_v26, %v326_v25  ;;  %v502_v25 = vadd.f32 %v501_v14, %v498_v13  ;;  %v486_v14 = vstv %s1892_s15 }
  0xea   :  { %s1979_s27 = sld [smem:[#allocation9 + $0x10]]  ;;  %v456_v42 = vadd.f32 %v455_v29, %v452_v28 }
  0xeb   :  { %s2755_s23 = sld [smem:[#allocation52_spill]] }
  0xec   :  { %s1984_s19 = sld [smem:[#allocation9 + $0x1c]]  ;;  %v374_v19 = vstv %s2753_s5  ;;  %v460_v55 = vadd.f32 %v459_v43, %v456_v42 }
  0xed   :  { %s1988_s17 = sld [smem:[#allocation9 + $0x28]]  ;;  %v375_v33 = vmul.f32 %v374_v19, %v1939_v39  ;;  %v504_v19 = vstv %s1919_s8 }
  0xee   :  { %s2756_s28 = sld [smem:[#allocation56_spill]]  ;;  %v464_v7 = vadd.f32 %v463_v56, %v460_v55  ;;  %v505_v26 = vmul.f32 %v504_v19, %v1869_v47  ;;  %v517_v19 = vmul.f32 %v516_v3, %v1899_v5 }
  0xef   :  { %v416_v24 = vstv %s2754_s16  ;;  %s1993_s22 = sld [smem:[#allocation9 + $0x34]]  ;;  %v376_v45 = vadd.f32 %v375_v33, %v372_v32  ;;  %v508_v32 = vstv %s1924_s26 }
  0xf0   :  { %s2757_s12 = sld [smem:[#allocation33_spill]]  ;;  %v417_v37 = vmul.f32 %v416_v24, %v1899_v5  ;;  %v468_v8 = vadd.f32 %v467_v9, %v464_v7  ;;  %v474_v24 = vstv %s1876_s18  ;;  %v506_v42 = vadd.f32 %v505_v26, %v502_v25 }
  0xf1   :  { %s1997_s29 = sld [smem:[#allocation9 + $0x40]]  ;;  %v314_v30 = vstv %s2755_s23  ;;  %v509_v43 = vmul.f32 %v508_v32, %v1888_v60 }
  0xf2   :  { %s2758_s5 = sld [smem:[#allocation54_spill]]  ;;  %v315_v40 = vadd.f32 %v314_v30, %v312_v22  ;;  %v418_v50 = vadd.f32 %v417_v37, %v414_v36  ;;  %v475_v36 = vmul.f32 %v474_v24, %v1939_v39  ;;  %v547_v37 = vstv %s1974_s25 }
  0xf3   :  { %s2002_s30 = sld [smem:[#allocation9 + $0x4c]]  ;;  %v510_v62 = vadd.f32 %v509_v43, %v506_v42 }
  0xf4   :  { %v378_v35 = vstv %s2756_s28  ;;  %s2759_s16 = sld [smem:[#allocation57_spill]]  ;;  %v2028_v54 = vmax.f32 %v315_v40, 0.0 }
  0xf5   :  { %s2006_s11 = sld [smem:[#allocation9 + $0x58]]  ;;  %v379_v46 = vmul.f32 %v378_v35, %v1990_v23  ;;  %v472_v35 = vadd.f32 %v471_v21, %v468_v8 }
  0xf6   :  { %v420_v38 = vstv %s2757_s12  ;;  %s2761_s3 = sld [smem:[#allocation26_spill]]  ;;  %v487_v32 = vmul.f32 %v486_v14, %v2028_v54 }
  0xf7   :  { %s2011_s23 = sld [smem:[#allocation9 + $0x64]]  ;;  %v421_v51 = vmul.f32 %v420_v38, %v1906_v11  ;;  %v380_v57 = vadd.f32 %v379_v46, %v376_v45  ;;  %v550_v38 = vstv %s1979_s27  ;;  %v476_v55 = vadd.f32 %v475_v36, %v472_v35 }
  0xf8   :  { %s2014_s9 = sld [smem:[#allocation9 + $0x70]]  ;;  %v332_v44 = vstv %s2758_s5  ;;  %v524_v36 = vstv %s1946_s13 }
  0xf9   :  { %s2764_s28 = sld [smem:[#allocation58_spill]]  ;;  %v333_v53 = vadd.f32 %v332_v44, %v330_v41  ;;  %v422_v63 = vadd.f32 %v421_v51, %v418_v50  ;;  %v478_v41 = vstv %s1881_s4  ;;  %v551_v50 = vmul.f32 %v550_v38, %v1849_v31 }
  0xfa   :  { %v382_v49 = vstv %s2759_s16  ;;  %s2023_s12 = sld [smem:[#allocation9 + $0x88]]  ;;  %v479_v56 = vmul.f32 %v478_v41, %v1990_v23 }
  0xfb   :  { %2760 = sst [smem:[#allocation39_spill]] %s2006_s11  ;;  %v383_v58 = vmul.f32 %v382_v49, %v2008_v17  ;;  %v2046_v4 = vmax.f32 %v333_v53, 0.0  ;;  %v548_v49 = vmul.f32 %v547_v37, %v1845_v27 }
  0xfc   :  { %s2019_s11 = sld [smem:[#allocation9 + $0x7c]]  ;;  %v424_v52 = vstv %s2761_s3  ;;  %v480_v12 = vadd.f32 %v479_v56, %v476_v55 }
  0xfd   :  { %2762 = sst [smem:[#allocation41_spill]] %s2011_s23  ;;  %v425_v2 = vmul.f32 %v424_v52, %v1939_v39  ;;  %v384_v15 = vadd.f32 %v383_v58, %v380_v57  ;;  %v554_v57 = vstv %s1984_s19  ;;  %v552_v7 = vadd.f32 %v551_v50, %v548_v49 }
  0xfe   :  { %2763 = sst [smem:[#allocation42_spill]] %s2014_s9  ;;  %v555_v9 = vmul.f32 %v554_v57, %v1869_v47  ;;  %v525_v50 = vmul.f32 %v524_v36, %v1939_v39 }
  0xff   :  { %s2026_s23 = sld [smem:[#allocation10 + $0x4]]  ;;  %v386_v59 = vstv %s2764_s28  ;;  %v426_v16 = vadd.f32 %v425_v2, %v422_v63  ;;  %v513_v63 = vmul.f32 %v512_v48, %v1890_v61 }
 0x100   :  { %2766 = sst [smem:[#allocation36_spill]] %s2023_s12  ;;  %v387_v6 = vmul.f32 %v386_v59, %v2028_v54  ;;  %v482_v59 = vstv %s1884_s20  ;;  %v556_v26 = vadd.f32 %v555_v9, %v552_v7  ;;  %v570_v9 = vstv %s2002_s30 }
 0x101   :  { %s2768_s5 = sld [smem:[#allocation22_spill]]  ;;  %v483_v13 = vmul.f32 %v482_v59, %v2008_v17 }
 0x102   :  { %2765 = sst [smem:[#allocation31_spill]] %s2019_s11  ;;  %v388_v28 = vadd.f32 %v387_v6, %v384_v15  ;;  %v558_v15 = vstv %s1988_s17 }
 0x103   :  { %s2031_s24 = sld [smem:[#allocation9 + $0x5]] }
 0x104   :  { %s2769_s16 = sld [smem:[#allocation59_spill]] }
 0x105   :  { %2767 = sst [smem:[#allocation43_spill]] %s2026_s23 }
 0x106   :  { %s2036_s12 = sld [smem:[#allocation9 + $0x11]] }
 0x107   :  { %s2041_s3 = sld [smem:[#allocation9 + $0x1d]]  ;;  %v428_v1 = vstv %s2768_s5 }
 0x108   :  { %s2044_s23 = sld [smem:[#allocation9 + $0x29]]  ;;  %v429_v18 = vmul.f32 %v428_v1, %v1990_v23 }
 0x109   :  { %s2770_s11 = sld [smem:[#allocation24_spill]]  ;;  %v597_v51 = vstv %s2031_s24 }
 0x10a   :  { %s2050_s14 = sld [smem:[#allocation9 + $0x35]]  ;;  %v390_v10 = vstv %s2769_s16  ;;  %v430_v29 = vadd.f32 %v429_v18, %v426_v16  ;;  %v598_v0 = vmul.f32 %v597_v51, %v1845_v27  ;;  %v514_v18 = vadd.f32 %v513_v63, %v510_v62 }
 0x10b   :  { %s2056_s2 = sld [smem:[#allocation9 + $0x41]]  ;;  %v391_v22 = vmul.f32 %v390_v10, %v2046_v4  ;;  %v528_v51 = vstv %s1951_s10 }
 0x10c   :  { %s2060_s0 = sld [smem:[#allocation9 + $0x4d]]  ;;  %v600_v52 = vstv %s2036_s12  ;;  %v529_v7 = vmul.f32 %v528_v51, %v1990_v23 }
 0x10d   :  { %s2771_s28 = sld [smem:[#allocation60_spill]]  ;;  %v392_v44 = vadd.f32 %v391_v22, %v388_v28  ;;  %v601_v1 = vmul.f32 %v600_v52, %v1849_v31  ;;  %v604_v10 = vstv %s2041_s3  ;;  %v559_v28 = vmul.f32 %v558_v15, %v1888_v60 }
 0x10e   :  { %s2772_s5 = sld [smem:[#allocation29_spill]]  ;;  %v605_v21 = vmul.f32 %v604_v10, %v1869_v47  ;;  %v566_v52 = vstv %s1997_s29 }
 0x10f   :  { %v432_v20 = vstv %s2770_s11  ;;  %s2063_s16 = sld [smem:[#allocation9 + $0x59]]  ;;  %v602_v8 = vadd.f32 %v601_v1, %v598_v0  ;;  %v567_v0 = vmul.f32 %v566_v52, %v1899_v5 }
 0x110   :  { %s2066_s1 = sld [smem:[#allocation9 + $0x65]]  ;;  %v433_v30 = vmul.f32 %v432_v20, %v2008_v17  ;;  %v520_v20 = vstv %s1941_s6  ;;  %v612_v48 = vstv %s2050_s14 }
 0x111   :  { %s2774_s8 = sld [smem:[#allocation34_spill]]  ;;  %v521_v35 = vmul.f32 %v520_v20, %v1906_v11  ;;  %v606_v41 = vadd.f32 %v605_v21, %v602_v8  ;;  %v613_v63 = vmul.f32 %v612_v48, %v1890_v61  ;;  %v616_v1 = vstv %s2056_s2 }
 0x112   :  { %s2071_s9 = sld [smem:[#allocation9 + $0x71]]  ;;  %v434_v45 = vadd.f32 %v433_v30, %v430_v29  ;;  %v608_v29 = vstv %s2044_s23  ;;  %v484_v30 = vadd.f32 %v483_v13, %v480_v12  ;;  %v617_v20 = vmul.f32 %v616_v1, %v1899_v5 }
 0x113   :  { %s2075_s11 = sld [smem:[#allocation9 + $0x7d]]  ;;  %v394_v33 = vstv %s2771_s28  ;;  %v609_v42 = vmul.f32 %v608_v29, %v1888_v60 }
 0x114   :  { %v436_v34 = vstv %s2772_s5  ;;  %s2084_s18 = sld [smem:[#allocation10 + $0x5]]  ;;  %v2111_v2 = vadd.f32 %v394_v33, %v392_v44 }
 0x115   :  { %s2089_s26 = sld [smem:[#allocation9 + $0x6]]  ;;  %v437_v46 = vmul.f32 %v436_v34, %v2028_v54  ;;  %v562_v34 = vstv %s1993_s22  ;;  %v610_v62 = vadd.f32 %v609_v42, %v606_v41 }
 0x116   :  { %2773 = sst [smem:[#allocation44_spill]] %s2066_s1 }
 0x117   :  { %s2079_s1 = sld [smem:[#allocation9 + $0x89]]  ;;  %v440_v40 = vstv %s2774_s8  ;;  %v438_v6 = vadd.f32 %v437_v46, %v434_v45  ;;  %v560_v45 = vadd.f32 %v559_v28, %v556_v26  ;;  %v563_v46 = vmul.f32 %v562_v34, %v1890_v61 }
 0x118   :  { %s2775_s28 = sld [smem:[#allocation27_spill]]  ;;  %v441_v53 = vmul.f32 %v440_v40, %v2046_v4  ;;  %v518_v40 = vadd.f32 %v517_v19, %v514_v18  ;;  %v614_v19 = vadd.f32 %v613_v63, %v610_v62 }
 0x119   :  { %s2093_s25 = sld [smem:[#allocation9 + $0x12]]  ;;  %v564_v3 = vadd.f32 %v563_v46, %v560_v45  ;;  %v624_v45 = vstv %s2063_s16 }
 0x11a   :  { %s2099_s4 = sld [smem:[#allocation9 + $0x1e]]  ;;  %v442_v25 = vadd.f32 %v441_v53, %v438_v6  ;;  %v488_v53 = vadd.f32 %v487_v32, %v484_v30  ;;  %v522_v59 = vadd.f32 %v521_v35, %v518_v40 }
 0x11b   :  { %s2104_s27 = sld [smem:[#allocation9 + $0x2a]]  ;;  %v647_v22 = vstv %s2089_s26 }
 0x11c   :  { %s2109_s7 = sld [smem:[#allocation9 + $0x36]]  ;;  %v648_v37 = vmul.f32 %v647_v22, %v1845_v27  ;;  %v526_v21 = vadd.f32 %v525_v50, %v522_v59  ;;  %v568_v22 = vadd.f32 %v567_v0, %v564_v3 }
 0x11d   :  { %s2776_s12 = sld [smem:[#allocation30_spill]] }
 0x11e   :  { %v444_v58 = vstv %s2775_s28  ;;  %s2116_s19 = sld [smem:[#allocation9 + $0x42]]  ;;  %v530_v41 = vadd.f32 %v529_v7, %v526_v21  ;;  %v632_v21 = vstv %s2071_s9 }
 0x11f   :  { %s2120_s20 = sld [smem:[#allocation9 + $0x4e]]  ;;  %v650_v24 = vstv %s2093_s25  ;;  %v2161_v49 = vadd.f32 %v444_v58, %v442_v25  ;;  %v620_v25 = vstv %s2060_s0 }
 0x120   :  { %s2125_s21 = sld [smem:[#allocation9 + $0x5a]]  ;;  %v651_v38 = vmul.f32 %v650_v24, %v1849_v31  ;;  %v654_v43 = vstv %s2099_s4  ;;  %v571_v24 = vmul.f32 %v570_v9, %v1906_v11 }
 0x121   :  { %s2130_s24 = sld [smem:[#allocation9 + $0x66]]  ;;  %v655_v56 = vmul.f32 %v654_v43, %v1869_v47  ;;  %v658_v57 = vstv %s2104_s27 }
 0x122   :  { %s2135_s3 = sld [smem:[#allocation9 + $0x72]]  ;;  %v652_v55 = vadd.f32 %v651_v38, %v648_v37  ;;  %v659_v10 = vmul.f32 %v658_v57, %v1888_v60  ;;  %v662_v14 = vstv %s2109_s7  ;;  %v621_v38 = vmul.f32 %v620_v25, %v1906_v11 }
 0x123   :  { %v490_v16 = vstv %s2776_s12  ;;  %s2139_s15 = sld [smem:[#allocation9 + $0x7e]]  ;;  %v663_v30 = vmul.f32 %v662_v14, %v1890_v61  ;;  %v572_v42 = vadd.f32 %v571_v24, %v568_v22 }
 0x124   :  { %s2777_s17 = sld [smem:[#allocation35_spill]]  ;;  %v491_v33 = vmul.f32 %v490_v16, %v2046_v4  ;;  %v656_v13 = vadd.f32 %v655_v56, %v652_v55  ;;  %v666_v34 = vstv %s2116_s19 }
 0x125   :  { %s2144_s6 = sld [smem:[#allocation9 + $0x8a]]  ;;  %v667_v51 = vmul.f32 %v666_v34, %v1899_v5 }
 0x126   :  { %s2150_s23 = sld [smem:[#allocation9 + $0x7]]  ;;  %v2201_v26 = vadd.f32 %v491_v33, %v488_v53  ;;  %v660_v32 = vadd.f32 %v659_v10, %v656_v13  ;;  %v618_v33 = vadd.f32 %v617_v20, %v614_v19  ;;  %v670_v53 = vstv %s2120_s20 }
 0x127   :  { %s2154_s22 = sld [smem:[#allocation9 + $0x13]]  ;;  %v671_v7 = vmul.f32 %v670_v53, %v1906_v11  ;;  %v674_v9 = vstv %s2125_s21  ;;  %v678_v34 = vstv %s2130_s24 }
 0x128   :  { %s2778_s5 = sld [smem:[#allocation23_spill]]  ;;  %v664_v52 = vadd.f32 %v663_v30, %v660_v32  ;;  %v622_v59 = vadd.f32 %v621_v38, %v618_v33  ;;  %v633_v38 = vmul.f32 %v632_v21, %v2008_v17  ;;  %v682_v53 = vstv %s2135_s3 }
 0x129   :  { %s2159_s13 = sld [smem:[#allocation9 + $0x1f]] }
 0x12a   :  { %v494_v44 = vstv %s2777_s17  ;;  %s2166_s8 = sld [smem:[#allocation10 + $0x6]] }
 0x12b   :  { %s2170_s14 = sld [smem:[#allocation9 + $0x2b]] }
 0x12c   :  { %s2174_s10 = sld [smem:[#allocation9 + $0x37]]  ;;  %v697_v6 = vstv %s2150_s23 }
 0x12d   :  { %s2179_s29 = sld [smem:[#allocation9 + $0x43]]  ;;  %v700_v12 = vstv %s2154_s22  ;;  %v698_v15 = vmul.f32 %v697_v6, %v1845_v27 }
 0x12e   :  { %v532_v58 = vstv %s2778_s5  ;;  %s2185_s26 = sld [smem:[#allocation9 + $0x4f]]  ;;  %v701_v16 = vmul.f32 %v700_v12, %v1849_v31  ;;  %v668_v12 = vadd.f32 %v667_v51, %v664_v52 }
 0x12f   :  { %s2779_s28 = sld [smem:[#allocation38_spill]]  ;;  %v533_v18 = vmul.f32 %v532_v58, %v2008_v17  ;;  %v704_v8 = vstv %s2159_s13  ;;  %v625_v58 = vmul.f32 %v624_v45, %v1939_v39 }
 0x130   :  { %s2780_s25 = sld [smem:[#allocation39_spill]]  ;;  %v702_v35 = vadd.f32 %v701_v16, %v698_v15  ;;  %v705_v36 = vmul.f32 %v704_v8, %v1869_v47  ;;  %v672_v32 = vadd.f32 %v671_v7, %v668_v12  ;;  %v683_v7 = vmul.f32 %v682_v53, %v2008_v17 }
 0x131   :  { %s2190_s2 = sld [smem:[#allocation9 + $0x5b]]  ;;  %v708_v40 = vstv %s2170_s14  ;;  %v534_v63 = vadd.f32 %v533_v18, %v530_v41  ;;  %v626_v18 = vadd.f32 %v625_v58, %v622_v59 }
 0x132   :  { %s2195_s30 = sld [smem:[#allocation9 + $0x67]]  ;;  %v706_v55 = vadd.f32 %v705_v36, %v702_v35  ;;  %v709_v56 = vmul.f32 %v708_v40, %v1888_v60  ;;  %v712_v62 = vstv %s2174_s10 }
 0x133   :  { %s2781_s4 = sld [smem:[#allocation25_spill]]  ;;  %v713_v14 = vmul.f32 %v712_v62, %v1890_v61  ;;  %v716_v20 = vstv %s2179_s29 }
 0x134   :  { %s2199_s27 = sld [smem:[#allocation9 + $0x73]]  ;;  %v710_v13 = vadd.f32 %v709_v56, %v706_v55  ;;  %v717_v36 = vmul.f32 %v716_v20, %v1899_v5  ;;  %v720_v40 = vstv %s2185_s26 }
 0x135   :  { %v536_v28 = vstv %s2779_s28  ;;  %s2206_s7 = sld [smem:[#allocation9 + $0x7f]]  ;;  %v721_v56 = vmul.f32 %v720_v40, %v1906_v11 }
 0x136   :  { %v574_v29 = vstv %s2780_s25  ;;  %s2782_s12 = sld [smem:[#allocation41_spill]]  ;;  %v537_v46 = vmul.f32 %v536_v28, %v2028_v54  ;;  %v714_v35 = vadd.f32 %v713_v14, %v710_v13 }
 0x137   :  { %s2783_s23 = sld [smem:[#allocation42_spill]]  ;;  %v575_v43 = vmul.f32 %v574_v29, %v1939_v39  ;;  %v675_v29 = vmul.f32 %v674_v9, %v1939_v39  ;;  %v686_v9 = vstv %s2139_s15 }
 0x138   :  { %s2210_s22 = sld [smem:[#allocation9 + $0x8b]]  ;;  %v538_v25 = vadd.f32 %v537_v46, %v534_v63  ;;  %v718_v55 = vadd.f32 %v717_v36, %v714_v35  ;;  %v724_v63 = vstv %s2190_s2 }
 0x139   :  { %v540_v37 = vstv %s2781_s4  ;;  %s2215_s0 = sld [smem:[#allocation9 + $0x8]]  ;;  %v576_v3 = vadd.f32 %v575_v43, %v572_v42  ;;  %v636_v42 = vstv %s2075_s11  ;;  %v676_v52 = vadd.f32 %v675_v29, %v672_v32 }
 0x13a   :  { %s2219_s19 = sld [smem:[#allocation9 + $0x14]]  ;;  %v541_v57 = vmul.f32 %v540_v37, %v2046_v4  ;;  %v637_v62 = vmul.f32 %v636_v42, %v2028_v54  ;;  %v722_v13 = vadd.f32 %v721_v56, %v718_v55  ;;  %v725_v14 = vmul.f32 %v724_v63, %v1939_v39 }
 0x13b   :  { %s2784_s5 = sld [smem:[#allocation44_spill]]  ;;  %v732_v40 = vstv %s2199_s27  ;;  %v736_v63 = vstv %s2206_s7 }
 0x13c   :  { %v578_v48 = vstv %s2782_s12  ;;  %s2225_s13 = sld [smem:[#allocation9 + $0x20]]  ;;  %v2288_v59 = vadd.f32 %v541_v57, %v538_v25  ;;  %v687_v25 = vmul.f32 %v686_v9, %v2028_v54  ;;  %v726_v35 = vadd.f32 %v725_v14, %v722_v13 }
 0x13d   :  { %v582_v50 = vstv %s2783_s23  ;;  %s2229_s14 = sld [smem:[#allocation10 + $0x7]]  ;;  %v579_v0 = vmul.f32 %v578_v48, %v1990_v23  ;;  %v640_v48 = vstv %s2079_s1  ;;  %v694_v9 = vstv %s2166_s8 }
 0x13e   :  { %s2234_s16 = sld [smem:[#allocation9 + $0x2c]]  ;;  %v583_v6 = vmul.f32 %v582_v50, %v2008_v17  ;;  %v679_v50 = vmul.f32 %v678_v34, %v1990_v23  ;;  %v641_v57 = vmul.f32 %v640_v48, %v2046_v4  ;;  %v740_v13 = vstv %s2210_s22 }
 0x13f   :  { %s2785_s28 = sld [smem:[#allocation31_spill]]  ;;  %v747_v10 = vstv %s2215_s0  ;;  %v580_v8 = vadd.f32 %v579_v0, %v576_v3 }
 0x140   :  { %s2238_s20 = sld [smem:[#allocation9 + $0x38]]  ;;  %v750_v15 = vstv %s2219_s19  ;;  %v748_v22 = vmul.f32 %v747_v10, %v1845_v27  ;;  %v680_v12 = vadd.f32 %v679_v50, %v676_v52 }
 0x141   :  { %v628_v1 = vstv %s2784_s5  ;;  %s2244_s25 = sld [smem:[#allocation9 + $0x44]]  ;;  %v751_v24 = vmul.f32 %v750_v15, %v1849_v31  ;;  %v584_v41 = vadd.f32 %v583_v6, %v580_v8 }
 0x142   :  { %s2786_s10 = sld [smem:[#allocation28_spill]]  ;;  %v629_v19 = vmul.f32 %v628_v1, %v1990_v23  ;;  %v754_v30 = vstv %s2225_s13  ;;  %v684_v34 = vadd.f32 %v683_v7, %v680_v12 }
 0x143   :  { %s2248_s4 = sld [smem:[#allocation9 + $0x50]]  ;;  %v752_v43 = vadd.f32 %v751_v24, %v748_v22  ;;  %v755_v45 = vmul.f32 %v754_v30, %v1869_v47 }
 0x144   :  { %s2253_s12 = sld [smem:[#allocation9 + $0x5c]]  ;;  %v630_v33 = vadd.f32 %v629_v19, %v626_v18  ;;  %v758_v51 = vstv %s2234_s16  ;;  %v728_v18 = vstv %s2195_s30  ;;  %v688_v53 = vadd.f32 %v687_v25, %v684_v34 }
 0x145   :  { %v586_v16 = vstv %s2785_s28  ;;  %s2258_s21 = sld [smem:[#allocation9 + $0x68]]  ;;  %v756_v1 = vadd.f32 %v755_v45, %v752_v43  ;;  %v759_v6 = vmul.f32 %v758_v51, %v1888_v60  ;;  %v729_v36 = vmul.f32 %v728_v18, %v1990_v23 }
 0x146   :  { %s2263_s23 = sld [smem:[#allocation9 + $0x74]]  ;;  %v587_v37 = vmul.f32 %v586_v16, %v2028_v54  ;;  %v634_v58 = vadd.f32 %v633_v38, %v630_v33  ;;  %v762_v10 = vstv %s2238_s20  ;;  %v690_v38 = vstv %s2144_s6 }
 0x147   :  { %s2787_s29 = sld [smem:[#allocation36_spill]]  ;;  %v760_v8 = vadd.f32 %v759_v6, %v756_v1  ;;  %v763_v21 = vmul.f32 %v762_v10, %v1890_v61  ;;  %v766_v29 = vstv %s2244_s25  ;;  %v644_v51 = vstv %s2084_s18 }
 0x148   :  { %v544_v28 = vstv %s2786_s10  ;;  %s2267_s9 = sld [smem:[#allocation9 + $0x80]]  ;;  %v588_v3 = vadd.f32 %v587_v37, %v584_v41  ;;  %v638_v16 = vadd.f32 %v637_v62, %v634_v58  ;;  %v767_v43 = vmul.f32 %v766_v29, %v1899_v5 }
 0x149   :  { %s2272_s0 = sld [smem:[#allocation9 + $0x8c]]  ;;  %v764_v42 = vadd.f32 %v763_v21, %v760_v8  ;;  %v770_v52 = vstv %s2248_s4  ;;  %v691_v55 = vmul.f32 %v690_v38, %v2046_v4  ;;  %v730_v56 = vadd.f32 %v729_v36, %v726_v35 }
 0x14a   :  { %s2276_s24 = sld [smem:[#allocation9 + $0x9]]  ;;  %v642_v50 = vadd.f32 %v641_v57, %v638_v16  ;;  %v733_v58 = vmul.f32 %v732_v40, %v2008_v17  ;;  %v2348_v62 = vadd.f32 %v494_v44, %v2201_v26  ;;  %v2357_v1 = vadd.f32 %v544_v28, %v2288_v59 }
 0x14b   :  { %s2282_s19 = sld [smem:[#allocation9 + $0x15]]  ;;  %v768_v6 = vadd.f32 %v767_v43, %v764_v42  ;;  %v771_v57 = vmul.f32 %v770_v52, %v1906_v11  ;;  %v774_v10 = vstv %s2253_s12  ;;  %v692_v12 = vadd.f32 %v691_v55, %v688_v53 }
 0x14c   :  { %s2286_s11 = sld [smem:[#allocation9 + $0x21]]  ;;  %v2365_v26 = vadd.f32 %v644_v51, %v642_v50  ;;  %v734_v28 = vadd.f32 %v733_v58, %v730_v56  ;;  %v737_v59 = vmul.f32 %v736_v63, %v2028_v54 }
 0x14d   :  { %v590_v46 = vstv %s2787_s29  ;;  %s2292_s1 = sld [smem:[#allocation9 + $0x2d]] }
 0x14e   :  { %v591_v0 = vmul.f32 %v590_v46, %v2046_v4  ;;  %s2296_s3 = sld [smem:[#allocation9 + $0x39]]  ;;  %v738_v40 = vadd.f32 %v737_v59, %v734_v28  ;;  %v786_v51 = vstv %s2267_s9 }
 0x14f   :  { %s2302_s26 = sld [smem:[#allocation10 + $0x8]]  ;;  %v790_v52 = vstv %s2272_s0  ;;  %v787_v28 = vmul.f32 %v786_v51, %v2028_v54 }
 0x150   :  { %v797_v15 = vstv %s2276_s24  ;;  %s2306_s2 = sld [smem:[#allocation9 + $0x45]]  ;;  %v592_v48 = vadd.f32 %v591_v0, %v588_v3 }
 0x151   :  { %v798_v19 = vmul.f32 %v797_v15, %v1845_v27  ;;  %v800_v20 = vstv %s2282_s19  ;;  %s2311_s5 = sld [smem:[#allocation9 + $0x51]] }
 0x152   :  { %s2788_s15 = sld [smem:[#allocation43_spill]]  ;;  %v801_v22 = vmul.f32 %v800_v20, %v1849_v31  ;;  %v804_v24 = vstv %s2286_s11  ;;  %v775_v20 = vmul.f32 %v774_v10, %v1939_v39  ;;  %v2424_v10 = vadd.f32 %v694_v9, %v692_v12 }
 0x153   :  { %s2316_s13 = sld [smem:[#allocation9 + $0x5d]]  ;;  %v805_v30 = vmul.f32 %v804_v24, %v1869_v47  ;;  %v808_v32 = vstv %s2292_s1  ;;  %v778_v24 = vstv %s2258_s21 }
 0x154   :  { %s2322_s30 = sld [smem:[#allocation9 + $0x69]]  ;;  %v802_v37 = vadd.f32 %v801_v22, %v798_v19  ;;  %v809_v41 = vmul.f32 %v808_v32, %v1888_v60  ;;  %v812_v46 = vstv %s2296_s3  ;;  %v772_v19 = vadd.f32 %v771_v57, %v768_v6 }
 0x155   :  { %s2325_s16 = sld [smem:[#allocation9 + $0x75]]  ;;  %v813_v0 = vmul.f32 %v812_v46, %v1890_v61  ;;  %v741_v22 = vmul.f32 %v740_v13, %v2046_v4  ;;  %v779_v42 = vmul.f32 %v778_v24, %v1990_v23  ;;  %v782_v46 = vstv %s2263_s23 }
 0x156   :  { %s2331_s28 = sld [smem:[#allocation9 + $0x81]]  ;;  %v806_v45 = vadd.f32 %v805_v30, %v802_v37  ;;  %v816_v7 = vstv %s2306_s2  ;;  %v783_v57 = vmul.f32 %v782_v46, %v2008_v17  ;;  %v2448_v24 = vmax.f32 %v2111_v2, 0.0 }
 0x157   :  { %s2335_s20 = sld [smem:[#allocation9 + $0x8d]]  ;;  %v817_v15 = vmul.f32 %v816_v7, %v1899_v5  ;;  %v820_v16 = vstv %s2311_s5 }
 0x158   :  { %v594_v33 = vstv %s2788_s15  ;;  %s2339_s6 = sld [smem:[#allocation9 + $0xa]]  ;;  %v810_v3 = vadd.f32 %v809_v41, %v806_v45  ;;  %v821_v30 = vmul.f32 %v820_v16, %v1906_v11  ;;  %v776_v41 = vadd.f32 %v775_v20, %v772_v19 }
 0x159   :  { %s2343_s27 = sld [smem:[#allocation9 + $0x16]]  ;;  %v2363_v44 = vadd.f32 %v594_v33, %v592_v48  ;;  %v824_v32 = vstv %s2316_s13  ;;  %v744_v45 = vstv %s2229_s14 }
 0x15a   :  { %s2352_s18 = sld [smem:[#allocation9 + $0x22]]  ;;  %v814_v14 = vadd.f32 %v813_v0, %v810_v3  ;;  %v825_v53 = vmul.f32 %v824_v32, %v1939_v39  ;;  %v828_v58 = vstv %s2322_s30  ;;  %v742_v0 = vadd.f32 %v741_v22, %v738_v40 }
 0x15b   :  { %s2361_s17 = sld [smem:[#allocation9 + $0x2e]]  ;;  %v780_v6 = vadd.f32 %v779_v42, %v776_v41  ;;  %v829_v16 = vmul.f32 %v828_v58, %v1990_v23  ;;  %v832_v12 = vstv %s2325_s16 }
 0x15c   :  { %s2369_s7 = sld [smem:[#allocation9 + $0x3a]]  ;;  %v818_v36 = vadd.f32 %v817_v15, %v814_v14  ;;  %v2431_v14 = vmul.f32 %v790_v52, %v2046_v4  ;;  %v794_v15 = vstv %s2302_s26 }
 0x15d   :  { %s2373_s25 = sld [smem:[#allocation9 + $0x46]] }
 0x15e   :  { %v847_v18 = vstv %s2339_s6  ;;  %s2378_s8 = sld [smem:[#allocation9 + $0x52]]  ;;  %v822_v56 = vadd.f32 %v821_v30, %v818_v36 }
 0x15f   :  { %v848_v8 = vmul.f32 %v847_v18, %v1845_v27  ;;  %v850_v21 = vstv %s2343_s27  ;;  %s2383_s22 = sld [smem:[#allocation9 + $0x5e]] }
 0x160   :  { %s2387_s10 = sld [smem:[#allocation10 + $0x9]]  ;;  %v851_v25 = vmul.f32 %v850_v21, %v1849_v31  ;;  %v854_v29 = vstv %s2352_s18  ;;  %v826_v9 = vadd.f32 %v825_v53, %v822_v56  ;;  %v784_v21 = vadd.f32 %v783_v57, %v780_v6 }
 0x161   :  { %v855_v34 = vmul.f32 %v854_v29, %v1869_v47  ;;  %v858_v35 = vstv %s2361_s17  ;;  %s2395_s4 = sld [smem:[#allocation9 + $0x6a]]  ;;  %v2498_v6 = vmax.f32 %v2363_v44, 0.0 }
 0x162   :  { %v852_v37 = vadd.f32 %v851_v25, %v848_v8  ;;  %v859_v33 = vmul.f32 %v858_v35, %v1888_v60  ;;  %v862_v38 = vstv %s2369_s7  ;;  %s2399_s12 = sld [smem:[#allocation9 + $0x76]]  ;;  %v2442_v8 = vadd.f32 %v744_v45, %v742_v0 }
 0x163   :  { %v866_v43 = vstv %s2373_s25  ;;  %s2403_s21 = sld [smem:[#allocation9 + $0x82]]  ;;  %v863_v50 = vmul.f32 %v862_v38, %v1890_v61  ;;  %v788_v52 = vadd.f32 %v787_v28, %v784_v21 }
 0x164   :  { %v856_v48 = vadd.f32 %v855_v34, %v852_v37  ;;  %s2408_s29 = sld [smem:[#allocation9 + $0x8e]]  ;;  %v870_v55 = vstv %s2378_s8  ;;  %v867_v3 = vmul.f32 %v866_v43, %v1899_v5  ;;  %v833_v34 = vmul.f32 %v832_v12, %v2008_v17 }
 0x165   :  { %s2414_s24 = sld [smem:[#allocation9 + $0xb]]  ;;  %v874_v7 = vstv %s2383_s22  ;;  %v871_v13 = vmul.f32 %v870_v55, %v1906_v11  ;;  %v830_v37 = vadd.f32 %v829_v16, %v826_v9  ;;  %v792_v28 = vadd.f32 %v2431_v14, %v788_v52 }
 0x166   :  { %v860_v63 = vadd.f32 %v859_v33, %v856_v48  ;;  %s2418_s14 = sld [smem:[#allocation9 + $0x17]]  ;;  %v875_v20 = vmul.f32 %v874_v7, %v1939_v39  ;;  %v844_v16 = vstv %s2387_s10  ;;  %v2517_v9 = vmax.f32 %v2424_v10, 0.0 }
 0x167   :  { %s2422_s23 = sld [smem:[#allocation9 + $0x23]]  ;;  %v878_v18 = vstv %s2395_s4  ;;  %v834_v53 = vadd.f32 %v833_v34, %v830_v37 }
 0x168   :  { %v864_v59 = vadd.f32 %v863_v50, %v860_v63  ;;  %s2428_s9 = sld [smem:[#allocation9 + $0x2f]]  ;;  %v879_v29 = vmul.f32 %v878_v18, %v1990_v23  ;;  %v882_v35 = vstv %s2399_s12 }
 0x169   :  { %s2436_s0 = sld [smem:[#allocation9 + $0x3b]]  ;;  %v886_v48 = vstv %s2403_s21 }
 0x16a   :  { %v868_v19 = vadd.f32 %v867_v3, %v864_v59  ;;  %s2440_s19 = sld [smem:[#allocation9 + $0x47]]  ;;  %v887_v3 = vmul.f32 %v886_v48, %v2028_v54  ;;  %v890_v57 = vstv %s2408_s29 }
 0x16b   :  { %v897_v22 = vstv %s2414_s24  ;;  %s2445_s11 = sld [smem:[#allocation9 + $0x53]]  ;;  %v891_v14 = vmul.f32 %v890_v57, %v2046_v4 }
 0x16c   :  { %v872_v25 = vadd.f32 %v871_v13, %v868_v19  ;;  %v898_v30 = vmul.f32 %v897_v22, %v1845_v27  ;;  %v900_v32 = vstv %s2418_s14  ;;  %s2453_s1 = sld [smem:[#allocation9 + $0x5f]]  ;;  %v836_v27 = vstv %s2331_s28 }
 0x16d   :  { %s2457_s3 = sld [smem:[#allocation10 + $0xa]]  ;;  %v901_v36 = vmul.f32 %v900_v32, %v1849_v31  ;;  %v904_v2 = vstv %s2422_s23  ;;  %v883_v31 = vmul.f32 %v882_v35, %v2008_v17  ;;  %v837_v55 = vmul.f32 %v836_v27, %v2028_v54 }
 0x16e   :  { %v876_v33 = vadd.f32 %v875_v20, %v872_v25  ;;  %v905_v38 = vmul.f32 %v904_v2, %v1869_v47  ;;  %v908_v40 = vstv %s2428_s9  ;;  %s2463_s2 = sld [smem:[#allocation9 + $0x6b]]  ;;  %v2475_v47 = vmax.f32 %v2161_v49, 0.0 }
 0x16f   :  { %v902_v41 = vadd.f32 %v901_v36, %v898_v30  ;;  %v909_v42 = vmul.f32 %v908_v40, %v1888_v60  ;;  %v912_v43 = vstv %s2436_s0  ;;  %s2468_s5 = sld [smem:[#allocation9 + $0x77]]  ;;  %v2482_v60 = vmax.f32 %v2348_v62, 0.0 }
 0x170   :  { %v880_v45 = vadd.f32 %v879_v29, %v876_v33  ;;  %v916_v46 = vstv %s2440_s19  ;;  %s2472_s15 = sld [smem:[#allocation9 + $0x83]]  ;;  %v913_v51 = vmul.f32 %v912_v43, %v1890_v61  ;;  %v840_v49 = vstv %s2335_s20 }
 0x171   :  { %v906_v50 = vadd.f32 %v905_v38, %v902_v41  ;;  %s2479_s13 = sld [smem:[#allocation9 + $0x8f]]  ;;  %v920_v56 = vstv %s2445_s11  ;;  %v917_v63 = vmul.f32 %v916_v46, %v1899_v5  ;;  %v2491_v61 = vmax.f32 %v2357_v1, 0.0 }
 0x172   :  { %s2486_s30 = sld [smem:[#allocation11]]  ;;  %v884_v62 = vadd.f32 %v883_v31, %v880_v45  ;;  %v924_v0 = vstv %s2453_s1  ;;  %v921_v5 = vmul.f32 %v920_v56, %v1906_v11  ;;  %v2505_v1 = vmax.f32 %v2365_v26, 0.0 }
 0x173   :  { %v910_v58 = vadd.f32 %v909_v42, %v906_v50  ;;  %s2493_s16 = sld [smem:[#allocation11 + $0x3]]  ;;  %v838_v59 = vadd.f32 %v837_v55, %v834_v53  ;;  %v841_v13 = vmul.f32 %v840_v49, %v2046_v4  ;;  %v925_v11 = vmul.f32 %v924_v0, %v1939_v39 }
 0x174   :  { %s2500_s28 = sld [smem:[#allocation11 + $0x6]]  ;;  %v928_v44 = vstv %s2463_s2  ;;  %v888_v26 = vadd.f32 %v887_v3, %v884_v62  ;;  %v894_v42 = vstv %s2457_s3 }
 0x175   :  { %v914_v7 = vadd.f32 %v913_v51, %v910_v58  ;;  %s2507_s20 = sld [smem:[#allocation11 + $0x9]]  ;;  %v932_v12 = vstv %s2468_s5  ;;  %v929_v21 = vmul.f32 %v928_v44, %v1990_v23  ;;  %v842_v22 = vadd.f32 %v841_v13, %v838_v59 }
 0x176   :  { %s2512_s6 = sld [smem:[#allocation11 + $0xc]]  ;;  %v936_v25 = vstv %s2472_s15  ;;  %v933_v34 = vmul.f32 %v932_v12, %v2008_v17  ;;  %v892_v38 = vadd.f32 %v891_v14, %v888_v26  ;;  %v795_v17 = vadd.f32 %v794_v15, %v792_v28 }
 0x177   :  { %v918_v18 = vadd.f32 %v917_v63, %v914_v7  ;;  %s2519_s27 = sld [smem:[#allocation11 + $0xf]]  ;;  %v940_v36 = vstv %s2479_s13  ;;  %v937_v27 = vmul.f32 %v936_v25, %v2028_v54  ;;  %v845_v31 = vadd.f32 %v844_v16, %v842_v22 }
 0x178   :  { %v959_v19 = vstv %s2486_s30  ;;  %s2524_s18 = sld [smem:[#allocation11 + $0x12]]  ;;  %v941_v48 = vmul.f32 %v940_v36, %v2046_v4  ;;  %v2559_v54 = vmax.f32 %v2442_v8, 0.0  ;;  %v895_v52 = vadd.f32 %v894_v42, %v892_v38 }
 0x179   :  { %v922_v20 = vadd.f32 %v921_v5, %v918_v18  ;;  %v960_v39 = vmul.f32 %v959_v19, %v2448_v24  ;;  %v962_v10 = vstv %s2493_s16  ;;  %s2529_s17 = sld [smem:[#allocation11 + $0x15]]  ;;  %v2564_v49 = vmax.f32 %v795_v17, 0.0 }
 0x17a   :  { %s2532_s7 = sld [smem:[#allocation10 + $0xb]]  ;;  %v963_v29 = vmul.f32 %v962_v10, %v2475_v47  ;;  %v966_v30 = vstv %s2500_s28  ;;  %v2567_v62 = vmax.f32 %v845_v31, 0.0  ;;  %v2576_v5 = vmax.f32 %v895_v52, 0.0 }
 0x17b   :  { %v926_v32 = vadd.f32 %v925_v11, %v922_v20  ;;  %v967_v23 = vmul.f32 %v966_v30, %v2482_v60  ;;  %v970_v35 = vstv %s2507_s20  ;;  %s2539_s25 = sld [smem:[#allocation11 + $0x18]] }
 0x17c   :  { %v964_v2 = vadd.f32 %v963_v29, %v960_v39  ;;  %v971_v37 = vmul.f32 %v970_v35, %v2491_v61  ;;  %v974_v33 = vstv %s2512_s6  ;;  %s2544_s8 = sld [smem:[#allocation11 + $0x1b]] }
 0x17d   :  { %v930_v40 = vadd.f32 %v929_v21, %v926_v32  ;;  %v978_v41 = vstv %s2519_s27  ;;  %s2548_s22 = sld [smem:[#allocation11 + $0x1e]]  ;;  %v975_v45 = vmul.f32 %v974_v33, %v2498_v6 }
 0x17e   :  { %v968_v43 = vadd.f32 %v967_v23, %v964_v2  ;;  %s2554_s10 = sld [smem:[#allocation11 + $0x21]]  ;;  %v982_v50 = vstv %s2524_s18  ;;  %v979_v15 = vmul.f32 %v978_v41, %v2505_v1 }
 0x17f   :  { %v934_v46 = vadd.f32 %v933_v34, %v930_v40  ;;  %s1357_s4 = sld [smem:[#allocation11 + $0x1]]  ;;  %v986_v55 = vstv %s2529_s17  ;;  %v983_v4 = vmul.f32 %v982_v50, %v2517_v9 }
 0x180   :  { %v972_v51 = vadd.f32 %v971_v37, %v968_v43  ;;  %s1358_s26 = sld [smem:[#allocation11 + $0x4]]  ;;  %v944_v56 = vstv %s2532_s7  ;;  %v987_v0 = vmul.f32 %v986_v55, %v2559_v54 }
 0x181   :  { %v938_v53 = vadd.f32 %v937_v27, %v934_v46  ;;  %s1359_s12 = sld [smem:[#allocation11 + $0x7]]  ;;  %v990_v8 = vstv %s2539_s25  ;;  %s1534_s25 = smov [#allocation15]  }
 0x182   :  { %v976_v58 = vadd.f32 %v975_v45, %v972_v51  ;;  %s1360_s21 = sld [smem:[#allocation11 + $0xa]]  ;;  %v994_v57 = vstv %s2544_s8  ;;  %v991_v13 = vmul.f32 %v990_v8, %v2564_v49  ;;  %s1115_s8 = sshll.u32 %s1534_s25, 4  ;;  %s1116_s8 = int_to_ptr.vmem [resolvable:$true] %s1115_s8 }
 0x183   :  { %v942_v63 = vadd.f32 %v941_v48, %v938_v53  ;;  %s2570_s29 = sld [smem:[#allocation11 + $0xd]]  ;;  %v995_v18 = vmul.f32 %v994_v57, %v2567_v62  ;;  %v998_v11 = vstv %s2548_s22 }
 0x184   :  { %v980_v3 = vadd.f32 %v979_v15, %v976_v58  ;;  %s2574_s24 = sld [smem:[#allocation11 + $0x10]]  ;;  %v1002_v39 = vstv %s2554_s10  ;;  %v999_v30 = vmul.f32 %v998_v11, %v2576_v5 }
 0x185   :  { %v945_v7 = vadd.f32 %v944_v56, %v942_v63  ;;  %v1009_v28 = vstv %s1357_s4  ;;  %s2578_s14 = sld [smem:[#allocation11 + $0x13]] }
 0x186   :  { %v984_v59 = vadd.f32 %v983_v4, %v980_v3  ;;  %v1010_v44 = vmul.f32 %v1009_v28, %v2448_v24  ;;  %v1012_v16 = vstv %s1358_s26  ;;  %s2582_s23 = sld [smem:[#allocation11 + $0x16]] }
 0x187   :  { %s2586_s9 = sld [smem:[#allocation13]]  ;;  %v1013_v26 = vmul.f32 %v1012_v16, %v2475_v47  ;;  %v1016_v14 = vstv %s1359_s12  ;;  %v2589_v12 = vmax.f32 %v945_v7, 0.0  ;;  %s2790_s12 = smov 8  }
 0x188   :  { %v988_v19 = vadd.f32 %v987_v0, %v984_v59  ;;  %v1017_v20 = vmul.f32 %v1016_v14, %v2482_v60  ;;  %v1020_v21 = vstv %s1360_s21  ;;  %s2592_s0 = sld [smem:[#allocation11 + $0x19]]  ;;  %s2791_s21 = smov 128  }
 0x189   :  { %v1014_v10 = vadd.f32 %v1013_v26, %v1010_v44  ;;  %v1021_v22 = vmul.f32 %v1020_v21, %v2491_v61  ;;  %v1024_v25 = vstv %s2570_s29  ;;  %s2597_s19 = sld [smem:[#allocation11 + $0x1c]]  ;;  %v1003_v36 = vmul.f32 %v1002_v39, %v2589_v12 }
 0x18a   :  { %v992_v29 = vadd.f32 %v991_v13, %v988_v19  ;;  %v1028_v32 = vstv %s2574_s24  ;;  %s2601_s11 = sld [smem:[#allocation11 + $0x1f]]  ;;  %v1025_v23 = vmul.f32 %v1024_v25, %v2498_v6 }
 0x18b   :  { %v1018_v34 = vadd.f32 %v1017_v20, %v1014_v10  ;;  %s2604_s1 = sld [smem:[#allocation11 + $0x22]]  ;;  %v1032_v2 = vstv %s2578_s14  ;;  %v1029_v33 = vmul.f32 %v1028_v32, %v2505_v1 }
 0x18c   :  { %v996_v35 = vadd.f32 %v995_v18, %v992_v29  ;;  %s1370_s3 = sld [smem:[#allocation11 + $0x2]]  ;;  %v1036_v40 = vstv %s2582_s23  ;;  %v1033_v17 = vmul.f32 %v1032_v2, %v2517_v9 }
 0x18d   :  { %v1022_v37 = vadd.f32 %v1021_v22, %v1018_v34  ;;  %s1371_s2 = sld [smem:[#allocation11 + $0x5]]  ;;  %v1006_v27 = vstv %s2586_s9  ;;  %v1037_v31 = vmul.f32 %v1036_v40, %v2559_v54 }
 0x18e   :  { %v1000_v38 = vadd.f32 %v999_v30, %v996_v35  ;;  %s1372_s5 = sld [smem:[#allocation11 + $0x8]]  ;;  %v1040_v43 = vstv %s2592_s0 }
 0x18f   :  { %v1026_v41 = vadd.f32 %v1025_v23, %v1022_v37  ;;  %s1373_s15 = sld [smem:[#allocation11 + $0xb]]  ;;  %v1044_v48 = vstv %s2597_s19  ;;  %v1041_v15 = vmul.f32 %v1040_v43, %v2564_v49 }
 0x190   :  { %v1004_v42 = vadd.f32 %v1003_v36, %v1000_v38  ;;  %s2613_s13 = sld [smem:[#allocation11 + $0xe]]  ;;  %v1048_v55 = vstv %s2601_s11  ;;  %v1045_v63 = vmul.f32 %v1044_v48, %v2567_v62 }
 0x191   :  { %v1030_v45 = vadd.f32 %v1029_v33, %v1026_v41  ;;  %s2616_s30 = sld [smem:[#allocation11 + $0x11]] }
 0x192   :  { %v1007_v46 = vadd.f32 %v1006_v27, %v1004_v42  ;;  %v1059_v50 = vstv %s1370_s3  ;;  %s2619_s16 = sld [smem:[#allocation11 + $0x14]] }
 0x193   :  { %v1034_v51 = vadd.f32 %v1033_v17, %v1030_v45  ;;  %v1060_v52 = vmul.f32 %v1059_v50, %v2448_v24  ;;  %v1062_v53 = vstv %s1371_s2  ;;  %s2623_s28 = sld [smem:[#allocation11 + $0x17]]  ;;  %v1052_v24 = vstv %s2604_s1 }
 0x194   :  { %s2626_s20 = sld [smem:[#allocation13 + $0x1]]  ;;  %v1063_v56 = vmul.f32 %v1062_v53, %v2475_v47  ;;  %v1066_v58 = vstv %s1372_s5  ;;  %1108 = vst [vmem:[#allocation15] sm:$0xff] %v1007_v46  ;;  %v1049_v47 = vmul.f32 %v1048_v55, %v2576_v5 }
 0x195   :  { %v1038_v4 = vadd.f32 %v1037_v31, %v1034_v51  ;;  %v1067_v8 = vmul.f32 %v1066_v58, %v2482_v60  ;;  %v1070_v3 = vstv %s1373_s15  ;;  %s1378_s6 = sld [smem:[#allocation11 + $0x1a]]  ;;  %v1053_v60 = vmul.f32 %v1052_v24, %v2589_v12 }
 0x196   :  { %v1064_v0 = vadd.f32 %v1063_v56, %v1060_v52  ;;  %v1071_v57 = vmul.f32 %v1070_v3, %v2491_v61  ;;  %v1074_v7 = vstv %s2613_s13  ;;  %s1379_s27 = sld [smem:[#allocation11 + $0x1d]] }
 0x197   :  { %v1042_v28 = vadd.f32 %v1041_v15, %v1038_v4  ;;  %v1078_v59 = vstv %s2616_s30  ;;  %v1075_v44 = vmul.f32 %v1074_v7, %v2498_v6  ;;  %s1380_s18 = sld [smem:[#allocation11 + $0x20]] }
 0x198   :  { %v1068_v13 = vadd.f32 %v1067_v8, %v1064_v0  ;;  %v1082_v18 = vstv %s2619_s16  ;;  %v1079_v26 = vmul.f32 %v1078_v59, %v2505_v1  ;;  %s1381_s17 = sld [smem:[#allocation11 + $0x23]] }
 0x199   :  { %v1046_v16 = vadd.f32 %v1045_v63, %v1042_v28  ;;  %v1086_v61 = vstv %s2623_s28  ;;  %v1083_v21 = vmul.f32 %v1082_v18, %v2517_v9  ;;  %s1382_s7 = sld [smem:[#allocation13 + $0x2]] }
 0x19a   :  { %v1072_v11 = vadd.f32 %v1071_v57, %v1068_v13  ;;  %v1056_v19 = vstv %s2626_s20  ;;  %v1087_v6 = vmul.f32 %v1086_v61, %v2559_v54  ;;  %s2789_s4 = sld [smem:[#allocation61_spill]] }
 0x19b   :  { %v1050_v14 = vadd.f32 %v1049_v47, %v1046_v16  ;;  %v1090_v10 = vstv %s1378_s6 }
 0x19c   :  { %v1076_v20 = vadd.f32 %v1075_v44, %v1072_v11  ;;  %v1094_v29 = vstv %s1379_s27  ;;  %v1091_v32 = vmul.f32 %v1090_v10, %v2564_v49 }
 0x19d   :  { %v1054_v39 = vadd.f32 %v1053_v60, %v1050_v14  ;;  %v1098_v34 = vstv %s1380_s18  ;;  %v1095_v23 = vmul.f32 %v1094_v29, %v2567_v62 }
 0x19e   :  { %v1080_v22 = vadd.f32 %v1079_v26, %v1076_v20  ;;  %v1102_v35 = vstv %s1381_s17  ;;  %v1099_v9 = vmul.f32 %v1098_v34, %v2576_v5 }
 0x19f   :  { %v1057_v25 = vadd.f32 %v1056_v19, %v1054_v39  ;;  %v1103_v37 = vmul.f32 %v1102_v35, %v2589_v12  ;;  %v1106_v54 = vstv %s1382_s7 }
 0x1a0   :  { %v1084_v30 = vadd.f32 %v1083_v21, %v1080_v22  ;;  %s1117_s26 = sshll.u32 %s2789_s4, 4  ;;  %s1118_s26 = int_to_ptr.hbm [resolvable:$true] %s1117_s26 }
 0x1a1   :  { %1109 = vst [vmem:[#allocation15 + $0x8] sm:$0xff] %v1057_v25 }
 0x1a2   :  { %v1088_v1 = vadd.f32 %v1087_v6, %v1084_v30 }
 0x1a4   :  { %v1092_v36 = vadd.f32 %v1091_v32, %v1088_v1 }
 0x1a6   :  { %v1096_v2 = vadd.f32 %v1095_v23, %v1092_v36 }
 0x1a8   :  { %v1100_v33 = vadd.f32 %v1099_v9, %v1096_v2 }
 0x1aa   :  { %v1104_v49 = vadd.f32 %v1103_v37, %v1100_v33 }
 0x1ac   :  { %v1107_v38 = vadd.f32 %v1106_v54, %v1104_v49 }
 0x1ae   :  { %1110 = vst [vmem:[#allocation15 + $0x10] sm:$0xff] %v1107_v38 }
 0x1af   :  { %1123 = dma.vmem_to_hbm [thread:$0]  %s1116_s8, 384, %s1118_s26, [#allocation4], %s2791_s21, %s2791_s21, %s2790_s12  }
 0x1b0   :  { %1523 = dma.done.wait [#allocation4], 384  }
 0x1b1   :  { %1524 = vsyncadd [#allocation4], 4294966912 }
 0x1b2   :  { %1128 = vsyncpa [#allocation3], 1 }
 0x1b3   :  { %1129 = vsyncpa [#allocation4], 1 }
 0x1b4   :  { %1130 = vsyncpa [#allocation5], 1 }
 0x1b5   :  { %1131 = vsyncpa [#allocation8], 1 }
 0x1b6   :  { %1132 = vsyncpa [#allocation6], 1 }
 0x1b7   :  { %1133 = vsyncpa [#allocation12], 1 }

</bundles_post_ra>
